<compile_context>
chip_gen: v7x
topology: tpu7x:2x2x1
jax: 0.10.0
libtpu: 0.0.40
codegen_flags: <defaults>
</compile_context>

<pallas_src>
import numpy as np
import jax
import jax.numpy as jnp
from jax.experimental import pallas as pl
from jax.experimental.pallas import tpu as pltpu

EPS = 1e-5          # PyTorch BatchNorm default eps

# ----- static module configuration -----
Z_DIM = 8
H_DIM = 16          # h_dim[0] == planes_rev[0]
C1 = 32             # channels after deconv layer 1
C2 = 256            # channels after deconv layer 2
S2 = 4              # 2x2 spatial positions after deconv layer 2
S4 = 16             # 4x4 spatial positions after the final unpool
FEAT = S4 * C2      # 4096 = reconstruction input features
OUT_DIM = 256       # prod(input_shape) = 1*16*16
B = 4


# --------------------- host-side (numpy) constant folding ---------------------

def _bilinear_matrix_np(n_in, n_out):
    """1-D align_corners=True interpolation matrix (UpsamplingBilinear2d)."""
    if n_in == 1:
        return np.ones((n_out, 1), np.float64)
    pos = np.arange(n_out, dtype=np.float64) * (n_in - 1) / (n_out - 1)
    lo = np.clip(np.floor(pos).astype(np.int64), 0, n_in - 1)
    hi = np.clip(lo + 1, 0, n_in - 1)
    frac = pos - lo
    m = np.zeros((n_out, n_in), np.float64)
    m[np.arange(n_out), lo] += 1.0 - frac
    m[np.arange(n_out), hi] += frac
    return m


# (16, 4) bilinear 2x2 -> 4x4 matrix; used as trace-time Python-float constants.
_U2D_NP = np.kron(_bilinear_matrix_np(2, 4), _bilinear_matrix_np(2, 4))
U2D = tuple(tuple(float(v) for v in row) for row in _U2D_NP)


def _dense_deconv_matrix_2x2(w, K=3, pad=1):
    """ConvTranspose2d(stride=1, padding=pad) mapping a 2x2 input to a 2x2 output,
    as a dense (4*Cin, 4*Cout) matrix on channel-last flattened images.
    Row index = (ih*2+iw)*Cin + cin, column index = (oh*2+ow)*Cout + cout."""
    w = np.asarray(w, np.float32)                 # (Cin, Cout, K, K)
    cin, cout = w.shape[0], w.shape[1]
    m = np.zeros((4 * cin, 4 * cout), np.float32)
    for ih in range(2):
        for iw in range(2):
            for oh in range(2):
                for ow in range(2):
                    kh, kw = oh - ih + pad, ow - iw + pad   # ConvTranspose tap indices
                    if 0 <= kh < K and 0 <= kw < K:
                        m[(ih * 2 + iw) * cin:(ih * 2 + iw + 1) * cin,
                          (oh * 2 + ow) * cout:(oh * 2 + ow + 1) * cout] = w[:, :, kh, kw]
    return m


# ------------------------------ fused Pallas kernel ------------------------------

def _fused_decoder_kernel(z_ref,
                          hw_ref, hb_ref, hg_ref, hbt_ref,          # hidden Linear + BN1d
                          w1_ref, b1_ref, g1_ref, bt1_ref,          # gated deconv 1 + BN2d
                          w2_ref, b2_ref, g2_ref, bt2_ref,          # gated deconv 2 + BN2d
                          rg_ref, rbt_ref, rw_ref, rb_ref,          # recon BN1d + Linear
                          o_ref):
    def bn_cols(y, gamma, beta):
        # BatchNorm with batch statistics, one statistic per column.
        m = jnp.mean(y, axis=0, keepdims=True)
        v = jnp.mean((y - m) ** 2, axis=0, keepdims=True)
        return (y - m) * jax.lax.rsqrt(v + EPS) * gamma + beta

    # ---- hidden: Linear(8,16) -> BatchNorm1d -> ReLU ----
    # TODO(synk): F.dropout is stochastic; treated as identity (eval semantics).
    h = jnp.dot(z_ref[...], hw_ref[...], preferred_element_type=jnp.float32) + hb_ref[...]
    h = jnp.maximum(bn_cols(h, hg_ref[...], hbt_ref[...]), 0.0)              # (B, 16)

    # ---- gated deconv 1 (1x1 spatial): centre-tap matmul, h|g concatenated ----
    y1 = jnp.dot(h, w1_ref[...], preferred_element_type=jnp.float32) + b1_ref[...]
    a1 = jnp.maximum(y1[:, :C1], 0.0) * jax.nn.sigmoid(y1[:, C1:])           # relu gate
    # spatial is 1x1, so BatchNorm2d per-channel == per-column over the batch.
    x1 = jnp.maximum(bn_cols(a1, g1_ref[...], bt1_ref[...]), 0.0)            # (B, 32)

    # ---- gated deconv 2 (2x2 spatial), with the 1x1->2x2 unpool folded into w2 ----
    # TODO(synk): F.dropout2d(0.3) is stochastic; treated as identity (eval semantics).
    y2 = jnp.dot(x1, w2_ref[...], preferred_element_type=jnp.float32) + b2_ref[...]
    a2 = jnp.maximum(y2[:, :S2 * C2], 0.0) * jax.nn.sigmoid(y2[:, S2 * C2:])  # (B, 1024)

    # BatchNorm2d: per-channel statistics over (batch, 2x2 spatial). Columns are
    # ordered (spatial, channel), so average the four 256-wide column blocks.
    col_mean = jnp.mean(a2, axis=0, keepdims=True)                            # (1, 1024)
    ch_mean = (col_mean[:, 0:C2] + col_mean[:, C2:2 * C2]
               + col_mean[:, 2 * C2:3 * C2] + col_mean[:, 3 * C2:4 * C2]) * 0.25
    mean_t = jnp.concatenate([ch_mean] * S2, axis=1)                          # (1, 1024)
    d = a2 - mean_t
    col_var = jnp.mean(d * d, axis=0, keepdims=True)
    ch_var = (col_var[:, 0:C2] + col_var[:, C2:2 * C2]
              + col_var[:, 2 * C2:3 * C2] + col_var[:, 3 * C2:4 * C2]) * 0.25
    inv_t = jnp.concatenate([jax.lax.rsqrt(ch_var + EPS)] * S2, axis=1)
    x2 = jnp.maximum(d * inv_t * g2_ref[...] + bt2_ref[...], 0.0)             # (B, 1024)

    # ---- bilinear 2x2 -> 4x4 unpool (align_corners=True) as static scalar combos ----
    blocks = [x2[:, q * C2:(q + 1) * C2] for q in range(S2)]                  # 4 x (B, 256)
    out_blocks = []
    for p in range(S4):
        acc = None
        for q in range(S2):
            wgt = U2D[p][q]                   # Python float, trace-time constant
            if wgt == 0.0:
                continue
            term = blocks[q] if wgt == 1.0 else blocks[q] * wgt
            acc = term if acc is None else acc + term
        out_blocks.append(acc)
    x4 = jnp.concatenate(out_blocks, axis=1)                                  # (B, 4096), (h,w,c)

    # ---- reconstruction_bn -> reconstruction Linear (bf16 weight, f32 acc) -> Tanh ----
    # recon weight / gamma / beta rows are pre-permuted host-side to the channel-last
    # order above, so no transpose/flatten of activations is needed.
    xm = jnp.mean(x4, axis=0, keepdims=True)
    xv = jnp.mean((x4 - xm) ** 2, axis=0, keepdims=True)
    xn = (x4 - xm) * jax.lax.rsqrt(xv + EPS) * rg_ref[...] + rbt_ref[...]
    y = jnp.dot(xn.astype(jnp.bfloat16), rw_ref[...],
                preferred_element_type=jnp.float32) + rb_ref[...]
    o_ref[...] = jnp.tanh(y)


def conv_decoder_forward(params, z):
    args = (z,
            params["hidden_w"], params["hidden_b"],
            params["hidden_gamma"], params["hidden_beta"],
            params["w1"], params["b1"], params["bn1_gamma"], params["bn1_beta"],
            params["w2"], params["b2"], params["bn2_gamma_t"], params["bn2_beta_t"],
            params["recon_gamma"], params["recon_beta"],
            params["recon_w"], params["recon_b"])
    # Single invocation, whole arrays resident in VMEM (~2.5 MiB of inputs: fits the
    # scoped-VMEM default on every TPU generation; limit set explicitly for v5e safety).
    # TODO(synk): if B or the channel counts grow, add a 'parallel' grid axis over the
    # reconstruction output columns so v7x's second TensorCore splits the weight read.
    return pl.pallas_call(
        _fused_decoder_kernel,
        out_shape=jax.ShapeDtypeStruct((z.shape[0], OUT_DIM), jnp.float32),
        in_specs=[pl.BlockSpec(memory_space=pltpu.MemorySpace.VMEM)] * len(args),
        out_specs=pl.BlockSpec(memory_space=pltpu.MemorySpace.VMEM),
        compiler_params=pltpu.CompilerParams(vmem_limit_bytes=32 * 1024 * 1024),
    )(*args)


# ----------------------------- parameter construction -----------------------------

def _dense_init(key, fan_in, fan_out):
    kw, kb = jax.random.split(key)
    w = jax.random.normal(kw, (fan_in, fan_out), jnp.float32) / jnp.sqrt(float(fan_in))
    b = 0.01 * jax.random.normal(kb, (1, fan_out), jnp.float32)
    return w, b


def build_params(key):
    ks = iter(jax.random.split(key, 32))
    p = {}

    # hidden: Linear(z_dim, h_dim[0]) + BatchNorm1d(h_dim[0])
    p["hidden_w"], p["hidden_b"] = _dense_init(next(ks), Z_DIM, H_DIM)
    p["hidden_gamma"] = 1.0 + 0.1 * jax.random.normal(next(ks), (1, H_DIM), jnp.float32)
    p["hidden_beta"] = 0.1 * jax.random.normal(next(ks), (1, H_DIM), jnp.float32)

    # gated deconv 1: GatedConvTranspose2d(16 -> 32, K=3, pad=1) on a 1x1 input.
    wh1 = 0.1 * jax.random.normal(next(ks), (H_DIM, C1, 3, 3), jnp.float32)
    bh1 = 0.01 * jax.random.normal(next(ks), (1, C1), jnp.float32)
    wg1 = 0.1 * jax.random.normal(next(ks), (H_DIM, C1, 3, 3), jnp.float32)
    bg1 = 0.01 * jax.random.normal(next(ks), (1, C1), jnp.float32)
    # 1x1 input, pad=1, stride=1 -> 1x1 output: only the centre tap (1,1) contributes.
    p["w1"] = jnp.concatenate([wh1[:, :, 1, 1], wg1[:, :, 1, 1]], axis=1)   # (16, 64)
    p["b1"] = jnp.concatenate([bh1, bg1], axis=1)                            # (1, 64)
    p["bn1_gamma"] = 1.0 + 0.1 * jax.random.normal(next(ks), (1, C1), jnp.float32)
    p["bn1_beta"] = 0.1 * jax.random.normal(next(ks), (1, C1), jnp.float32)

    # gated deconv 2: GatedConvTranspose2d(32 -> 256, K=3, pad=1) on a 2x2 input,
    # pre-baked into a dense matrix with the 1x1->2x2 bilinear unpool (broadcast) folded in.
    wh2 = 0.1 * jax.random.normal(next(ks), (C1, C2, 3, 3), jnp.float32)
    bh2 = 0.01 * jax.random.normal(next(ks), (1, C2), jnp.float32)
    wg2 = 0.1 * jax.random.normal(next(ks), (C1, C2, 3, 3), jnp.float32)
    bg2 = 0.01 * jax.random.normal(next(ks), (1, C2), jnp.float32)
    m2h = _dense_deconv_matrix_2x2(np.asarray(wh2))          # (128, 1024)
    m2g = _dense_deconv_matrix_2x2(np.asarray(wg2))
    up1 = np.tile(np.eye(C1, dtype=np.float32), (1, S2)).T   # (128, 32) won't be used; see below
    up1 = np.tile(np.eye(C1, dtype=np.float32), (1, S2))     # (32, 128): 1x1->2x2 bilinear == broadcast
    w2 = np.concatenate([up1 @ m2h, up1 @ m2g], axis=1)      # (32, 2048)  [h | g]
    b2 = np.concatenate([np.tile(np.asarray(bh2), (1, S2)),
                         np.tile(np.asarray(bg2), (1, S2))], axis=1)        # (1, 2048)
    p["w2"] = jnp.asarray(w2)
    p["b2"] = jnp.asarray(b2)
    g2 = 1.0 + 0.1 * jax.random.normal(next(ks), (1, C2), jnp.float32)
    bt2 = 0.1 * jax.random.normal(next(ks), (1, C2), jnp.float32)
    p["bn2_gamma_t"] = jnp.tile(g2, (1, S2))                 # per-channel params tiled over 2x2
    p["bn2_beta_t"] = jnp.tile(bt2, (1, S2))

    # reconstruction: BatchNorm1d(4096) -> Linear(4096, 256) -> Tanh.
    # Built in PyTorch NCHW-flatten order, then row-permuted to the kernel's
    # channel-last order: perm[(h*4+w)*256 + c] = c*16 + (h*4+w).
    rg_t = 1.0 + 0.1 * jax.random.normal(next(ks), (1, FEAT), jnp.float32)
    rbt_t = 0.1 * jax.random.normal(next(ks), (1, FEAT), jnp.float32)
    rw_t, rbias = _dense_init(next(ks), FEAT, OUT_DIM)
    perm = (np.arange(C2)[None, :] * S4 + np.arange(S4)[:, None]).reshape(-1)
    p["recon_gamma"] = jnp.asarray(np.asarray(rg_t)[:, perm])
    p["recon_beta"] = jnp.asarray(np.asarray(rbt_t)[:, perm])
    p["recon_w"] = jnp.asarray(np.asarray(rw_t)[perm, :]).astype(jnp.bfloat16)  # bf16 HBM/MXU
    p["recon_b"] = rbias
    return p


# ------------------------- pure-JAX reference (correctness) -------------------------

def _reference_forward(params, z):
    hp = jax.lax.Precision.HIGHEST

    def bn_cols(y, gamma, beta):
        m = jnp.mean(y, axis=0, keepdims=True)
        v = jnp.mean((y - m) ** 2, axis=0, keepdims=True)
        return (y - m) * jax.lax.rsqrt(v + EPS) * gamma + beta

    h = jnp.dot(z, params["hidden_w"], precision=hp) + params["hidden_b"]
    h = jnp.maximum(bn_cols(h, params["hidden_gamma"], params["hidden_beta"]), 0.0)
    y1 = jnp.dot(h, params["w1"], precision=hp) + params["b1"]
    a1 = jnp.maximum(y1[:, :C1], 0.0) * jax.nn.sigmoid(y1[:, C1:])
    x1 = jnp.maximum(bn_cols(a1, params["bn1_gamma"], params["bn1_beta"]), 0.0)
    y2 = jnp.dot(x1, params["w2"], precision=hp) + params["b2"]
    a2 = jnp.maximum(y2[:, :S2 * C2], 0.0) * jax.nn.sigmoid(y2[:, S2 * C2:])
    a2r = a2.reshape(z.shape[0], S2, C2)
    chm = jnp.mean(a2r, axis=(0, 1))
    chv = jnp.mean((a2r - chm) ** 2, axis=(0, 1))
    x2 = ((a2r - chm) * jax.lax.rsqrt(chv + EPS)).reshape(z.shape[0], S2 * C2)
    x2 = jnp.maximum(x2 * params["bn2_gamma_t"] + params["bn2_beta_t"], 0.0)
    u = jnp.asarray(_U2D_NP, jnp.float32)
    x4 = jnp.einsum("pq,bqc->bpc", u, x2.reshape(z.shape[0], S2, C2),
                    precision=hp).reshape(z.shape[0], FEAT)
    xm = jnp.mean(x4, axis=0, keepdims=True)
    xv = jnp.mean((x4 - xm) ** 2, axis=0, keepdims=True)
    xn = (x4 - xm) * jax.lax.rsqrt(xv + EPS) * params["recon_gamma"] + params["recon_beta"]
    y = jnp.dot(xn.astype(jnp.bfloat16), params["recon_w"],
                preferred_element_type=jnp.float32, precision=hp) + params["recon_b"]
    return jnp.tanh(y)


# --------------------------------------- driver ---------------------------------------

if __name__ == "__main__":
    key = jax.random.PRNGKey(0)
    kp, kz = jax.random.split(key)

    params = build_params(kp)
    z = jax.random.normal(kz, (B, Z_DIM), jnp.float32)

    out = conv_decoder_forward(params, z)
    out = jax.block_until_ready(out)

    assert out.shape == (B, OUT_DIM) and out.dtype == jnp.float32
    assert bool(jnp.all(jnp.isfinite(out)))

    ref = jax.block_until_ready(_reference_forward(params, z))
    max_err = float(jnp.max(jnp.abs(out - ref)))
    assert max_err < 5e-2, f"kernel/reference mismatch: {max_err}"

    print("KERNEL_OK")
</pallas_src>

<mosaic_0001>
module attributes {stable_mosaic.version = 11 : i64} {
  func.func @_fused_decoder_kernel(%arg0: memref<4x8xf32, #tpu.memory_space<vmem>>, %arg1: memref<8x16xf32, #tpu.memory_space<vmem>>, %arg2: memref<1x16xf32, #tpu.memory_space<vmem>>, %arg3: memref<1x16xf32, #tpu.memory_space<vmem>>, %arg4: memref<1x16xf32, #tpu.memory_space<vmem>>, %arg5: memref<16x64xf32, #tpu.memory_space<vmem>>, %arg6: memref<1x64xf32, #tpu.memory_space<vmem>>, %arg7: memref<1x32xf32, #tpu.memory_space<vmem>>, %arg8: memref<1x32xf32, #tpu.memory_space<vmem>>, %arg9: memref<32x2048xf32, #tpu.memory_space<vmem>>, %arg10: memref<1x2048xf32, #tpu.memory_space<vmem>>, %arg11: memref<1x1024xf32, #tpu.memory_space<vmem>>, %arg12: memref<1x1024xf32, #tpu.memory_space<vmem>>, %arg13: memref<1x4096xf32, #tpu.memory_space<vmem>>, %arg14: memref<1x4096xf32, #tpu.memory_space<vmem>>, %arg15: memref<4096x256xbf16, #tpu.memory_space<vmem>>, %arg16: memref<1x256xf32, #tpu.memory_space<vmem>>, %arg17: memref<4x256xf32, #tpu.memory_space<vmem>>) attributes {dimension_semantics = [], scalar_prefetch = 0 : i64, scratch_operands = 0 : i64, tpu.core_type = #tpu.core_type<tc>} {
    %c0 = arith.constant 0 : index
    %c0_0 = arith.constant 0 : index
    %0 = vector.load %arg0[%c0, %c0_0] : memref<4x8xf32, #tpu.memory_space<vmem>>, vector<4x8xf32>
    %c0_1 = arith.constant 0 : index
    %c0_2 = arith.constant 0 : index
    %1 = vector.load %arg1[%c0_1, %c0_2] : memref<8x16xf32, #tpu.memory_space<vmem>>, vector<8x16xf32>
    %cst = arith.constant dense<0.000000e+00> : vector<4x16xf32>
    %2 = tpu.matmul %0, %1, %cst {dimension_numbers = #tpu.dot_dimension_numbers<[1], [0], [0], [1], [0, 0, 1, 1], [], []>} : vector<4x8xf32>, vector<8x16xf32>, vector<4x16xf32> -> vector<4x16xf32>
    %c0_3 = arith.constant 0 : index
    %c0_4 = arith.constant 0 : index
    %3 = vector.load %arg2[%c0_3, %c0_4] : memref<1x16xf32, #tpu.memory_space<vmem>>, vector<1x16xf32>
    %4 = vector.broadcast %3 : vector<1x16xf32> to vector<4x16xf32>
    %5 = arith.addf %2, %4 : vector<4x16xf32>
    %c0_5 = arith.constant 0 : index
    %c0_6 = arith.constant 0 : index
    %6 = vector.load %arg3[%c0_5, %c0_6] : memref<1x16xf32, #tpu.memory_space<vmem>>, vector<1x16xf32>
    %c0_7 = arith.constant 0 : index
    %c0_8 = arith.constant 0 : index
    %7 = vector.load %arg4[%c0_7, %c0_8] : memref<1x16xf32, #tpu.memory_space<vmem>>, vector<1x16xf32>
    %cst_9 = arith.constant dense<0.000000e+00> : vector<16xf32>
    %8 = vector.multi_reduction <add>, %5, %cst_9 [0] : vector<4x16xf32> to vector<16xf32>
    %9 = vector.shape_cast %8 : vector<16xf32> to vector<1x16xf32>
    %cst_10 = arith.constant 4.000000e+00 : f32
    %10 = vector.broadcast %cst_10 : f32 to vector<1x16xf32>
    %11 = arith.divf %9, %10 : vector<1x16xf32>
    %12 = vector.broadcast %11 : vector<1x16xf32> to vector<4x16xf32>
    %13 = arith.subf %5, %12 : vector<4x16xf32>
    %14 = arith.mulf %13, %13 : vector<4x16xf32>
    %cst_11 = arith.constant dense<0.000000e+00> : vector<16xf32>
    %15 = vector.multi_reduction <add>, %14, %cst_11 [0] : vector<4x16xf32> to vector<16xf32>
    %16 = vector.shape_cast %15 : vector<16xf32> to vector<1x16xf32>
    %cst_12 = arith.constant 4.000000e+00 : f32
    %17 = vector.broadcast %cst_12 : f32 to vector<1x16xf32>
    %18 = arith.divf %16, %17 : vector<1x16xf32>
    %19 = vector.broadcast %11 : vector<1x16xf32> to vector<4x16xf32>
    %20 = arith.subf %5, %19 : vector<4x16xf32>
    %cst_13 = arith.constant 9.99999974E-6 : f32
    %21 = vector.broadcast %cst_13 : f32 to vector<1x16xf32>
    %22 = arith.addf %18, %21 : vector<1x16xf32>
    %23 = math.rsqrt %22 : vector<1x16xf32>
    %24 = vector.broadcast %23 : vector<1x16xf32> to vector<4x16xf32>
    %25 = arith.mulf %20, %24 : vector<4x16xf32>
    %26 = vector.broadcast %6 : vector<1x16xf32> to vector<4x16xf32>
    %27 = arith.mulf %25, %26 : vector<4x16xf32>
    %28 = vector.broadcast %7 : vector<1x16xf32> to vector<4x16xf32>
    %29 = arith.addf %27, %28 : vector<4x16xf32>
    %cst_14 = arith.constant 0.000000e+00 : f32
    %30 = vector.broadcast %cst_14 : f32 to vector<4x16xf32>
    %31 = arith.maximumf %29, %30 : vector<4x16xf32>
    %c0_15 = arith.constant 0 : index
    %c0_16 = arith.constant 0 : index
    %32 = vector.load %arg5[%c0_15, %c0_16] : memref<16x64xf32, #tpu.memory_space<vmem>>, vector<16x64xf32>
    %cst_17 = arith.constant dense<0.000000e+00> : vector<4x64xf32>
    %33 = tpu.matmul %31, %32, %cst_17 {dimension_numbers = #tpu.dot_dimension_numbers<[1], [0], [0], [1], [0, 0, 1, 1], [], []>} : vector<4x16xf32>, vector<16x64xf32>, vector<4x64xf32> -> vector<4x64xf32>
    %c0_18 = arith.constant 0 : index
    %c0_19 = arith.constant 0 : index
    %34 = vector.load %arg6[%c0_18, %c0_19] : memref<1x64xf32, #tpu.memory_space<vmem>>, vector<1x64xf32>
    %35 = vector.broadcast %34 : vector<1x64xf32> to vector<4x64xf32>
    %36 = arith.addf %33, %35 : vector<4x64xf32>
    %37 = vector.extract_strided_slice %36 {offsets = [0, 0], sizes = [4, 32], strides = [1, 1]} : vector<4x64xf32> to vector<4x32xf32>
    %cst_20 = arith.constant 0.000000e+00 : f32
    %38 = vector.broadcast %cst_20 : f32 to vector<4x32xf32>
    %39 = arith.maximumf %37, %38 : vector<4x32xf32>
    %40 = vector.extract_strided_slice %36 {offsets = [0, 32], sizes = [4, 32], strides = [1, 1]} : vector<4x64xf32> to vector<4x32xf32>
    %41 = arith.negf %40 : vector<4x32xf32>
    %42 = math.exp %41 : vector<4x32xf32>
    %cst_21 = arith.constant 1.000000e+00 : f32
    %43 = vector.broadcast %cst_21 : f32 to vector<4x32xf32>
    %44 = arith.addf %43, %42 : vector<4x32xf32>
    %45 = arith.divf %43, %44 : vector<4x32xf32>
    %46 = arith.mulf %39, %45 : vector<4x32xf32>
    %c0_22 = arith.constant 0 : index
    %c0_23 = arith.constant 0 : index
    %47 = vector.load %arg7[%c0_22, %c0_23] : memref<1x32xf32, #tpu.memory_space<vmem>>, vector<1x32xf32>
    %c0_24 = arith.constant 0 : index
    %c0_25 = arith.constant 0 : index
    %48 = vector.load %arg8[%c0_24, %c0_25] : memref<1x32xf32, #tpu.memory_space<vmem>>, vector<1x32xf32>
    %cst_26 = arith.constant dense<0.000000e+00> : vector<32xf32>
    %49 = vector.multi_reduction <add>, %46, %cst_26 [0] : vector<4x32xf32> to vector<32xf32>
    %50 = vector.shape_cast %49 : vector<32xf32> to vector<1x32xf32>
    %cst_27 = arith.constant 4.000000e+00 : f32
    %51 = vector.broadcast %cst_27 : f32 to vector<1x32xf32>
    %52 = arith.divf %50, %51 : vector<1x32xf32>
    %53 = vector.broadcast %52 : vector<1x32xf32> to vector<4x32xf32>
    %54 = arith.subf %46, %53 : vector<4x32xf32>
    %55 = arith.mulf %54, %54 : vector<4x32xf32>
    %cst_28 = arith.constant dense<0.000000e+00> : vector<32xf32>
    %56 = vector.multi_reduction <add>, %55, %cst_28 [0] : vector<4x32xf32> to vector<32xf32>
    %57 = vector.shape_cast %56 : vector<32xf32> to vector<1x32xf32>
    %cst_29 = arith.constant 4.000000e+00 : f32
    %58 = vector.broadcast %cst_29 : f32 to vector<1x32xf32>
    %59 = arith.divf %57, %58 : vector<1x32xf32>
    %60 = vector.broadcast %52 : vector<1x32xf32> to vector<4x32xf32>
    %61 = arith.subf %46, %60 : vector<4x32xf32>
    %cst_30 = arith.constant 9.99999974E-6 : f32
    %62 = vector.broadcast %cst_30 : f32 to vector<1x32xf32>
    %63 = arith.addf %59, %62 : vector<1x32xf32>
    %64 = math.rsqrt %63 : vector<1x32xf32>
    %65 = vector.broadcast %64 : vector<1x32xf32> to vector<4x32xf32>
    %66 = arith.mulf %61, %65 : vector<4x32xf32>
    %67 = vector.broadcast %47 : vector<1x32xf32> to vector<4x32xf32>
    %68 = arith.mulf %66, %67 : vector<4x32xf32>
    %69 = vector.broadcast %48 : vector<1x32xf32> to vector<4x32xf32>
    %70 = arith.addf %68, %69 : vector<4x32xf32>
    %cst_31 = arith.constant 0.000000e+00 : f32
    %71 = vector.broadcast %cst_31 : f32 to vector<4x32xf32>
    %72 = arith.maximumf %70, %71 : vector<4x32xf32>
    %c0_32 = arith.constant 0 : index
    %c0_33 = arith.constant 0 : index
    %73 = vector.load %arg9[%c0_32, %c0_33] : memref<32x2048xf32, #tpu.memory_space<vmem>>, vector<32x2048xf32>
    %cst_34 = arith.constant dense<0.000000e+00> : vector<4x2048xf32>
    %74 = tpu.matmul %72, %73, %cst_34 {dimension_numbers = #tpu.dot_dimension_numbers<[1], [0], [0], [1], [0, 0, 1, 1], [], []>} : vector<4x32xf32>, vector<32x2048xf32>, vector<4x2048xf32> -> vector<4x2048xf32>
    %c0_35 = arith.constant 0 : index
    %c0_36 = arith.constant 0 : index
    %75 = vector.load %arg10[%c0_35, %c0_36] : memref<1x2048xf32, #tpu.memory_space<vmem>>, vector<1x2048xf32>
    %76 = vector.broadcast %75 : vector<1x2048xf32> to vector<4x2048xf32>
    %77 = arith.addf %74, %76 : vector<4x2048xf32>
    %78 = vector.extract_strided_slice %77 {offsets = [0, 0], sizes = [4, 1024], strides = [1, 1]} : vector<4x2048xf32> to vector<4x1024xf32>
    %cst_37 = arith.constant 0.000000e+00 : f32
    %79 = vector.broadcast %cst_37 : f32 to vector<4x1024xf32>
    %80 = arith.maximumf %78, %79 : vector<4x1024xf32>
    %81 = vector.extract_strided_slice %77 {offsets = [0, 1024], sizes = [4, 1024], strides = [1, 1]} : vector<4x2048xf32> to vector<4x1024xf32>
    %82 = arith.negf %81 : vector<4x1024xf32>
    %83 = math.exp %82 : vector<4x1024xf32>
    %cst_38 = arith.constant 1.000000e+00 : f32
    %84 = vector.broadcast %cst_38 : f32 to vector<4x1024xf32>
    %85 = arith.addf %84, %83 : vector<4x1024xf32>
    %86 = arith.divf %84, %85 : vector<4x1024xf32>
    %87 = arith.mulf %80, %86 : vector<4x1024xf32>
    %cst_39 = arith.constant dense<0.000000e+00> : vector<1024xf32>
    %88 = vector.multi_reduction <add>, %87, %cst_39 [0] : vector<4x1024xf32> to vector<1024xf32>
    %89 = vector.shape_cast %88 : vector<1024xf32> to vector<1x1024xf32>
    %cst_40 = arith.constant 4.000000e+00 : f32
    %90 = vector.broadcast %cst_40 : f32 to vector<1x1024xf32>
    %91 = arith.divf %89, %90 : vector<1x1024xf32>
    %92 = vector.extract_strided_slice %91 {offsets = [0, 0], sizes = [1, 256], strides = [1, 1]} : vector<1x1024xf32> to vector<1x256xf32>
    %93 = vector.extract_strided_slice %91 {offsets = [0, 256], sizes = [1, 256], strides = [1, 1]} : vector<1x1024xf32> to vector<1x256xf32>
    %94 = arith.addf %92, %93 : vector<1x256xf32>
    %95 = vector.extract_strided_slice %91 {offsets = [0, 512], sizes = [1, 256], strides = [1, 1]} : vector<1x1024xf32> to vector<1x256xf32>
    %96 = arith.addf %94, %95 : vector<1x256xf32>
    %97 = vector.extract_strided_slice %91 {offsets = [0, 768], sizes = [1, 256], strides = [1, 1]} : vector<1x1024xf32> to vector<1x256xf32>
    %98 = arith.addf %96, %97 : vector<1x256xf32>
    %cst_41 = arith.constant 2.500000e-01 : f32
    %99 = vector.broadcast %cst_41 : f32 to vector<1x256xf32>
    %100 = arith.mulf %98, %99 : vector<1x256xf32>
    %101 = tpu.concatenate %100, %100, %100, %100 in 1 : vector<1x256xf32>, vector<1x256xf32>, vector<1x256xf32>, vector<1x256xf32> -> vector<1x1024xf32>
    %102 = vector.broadcast %101 : vector<1x1024xf32> to vector<4x1024xf32>
    %103 = arith.subf %87, %102 : vector<4x1024xf32>
    %104 = arith.mulf %103, %103 : vector<4x1024xf32>
    %cst_42 = arith.constant dense<0.000000e+00> : vector<1024xf32>
    %105 = vector.multi_reduction <add>, %104, %cst_42 [0] : vector<4x1024xf32> to vector<1024xf32>
    %106 = vector.shape_cast %105 : vector<1024xf32> to vector<1x1024xf32>
    %cst_43 = arith.constant 4.000000e+00 : f32
    %107 = vector.broadcast %cst_43 : f32 to vector<1x1024xf32>
    %108 = arith.divf %106, %107 : vector<1x1024xf32>
    %109 = vector.extract_strided_slice %108 {offsets = [0, 0], sizes = [1, 256], strides = [1, 1]} : vector<1x1024xf32> to vector<1x256xf32>
    %110 = vector.extract_strided_slice %108 {offsets = [0, 256], sizes = [1, 256], strides = [1, 1]} : vector<1x1024xf32> to vector<1x256xf32>
    %111 = arith.addf %109, %110 : vector<1x256xf32>
    %112 = vector.extract_strided_slice %108 {offsets = [0, 512], sizes = [1, 256], strides = [1, 1]} : vector<1x1024xf32> to vector<1x256xf32>
    %113 = arith.addf %111, %112 : vector<1x256xf32>
    %114 = vector.extract_strided_slice %108 {offsets = [0, 768], sizes = [1, 256], strides = [1, 1]} : vector<1x1024xf32> to vector<1x256xf32>
    %115 = arith.addf %113, %114 : vector<1x256xf32>
    %cst_44 = arith.constant 2.500000e-01 : f32
    %116 = vector.broadcast %cst_44 : f32 to vector<1x256xf32>
    %117 = arith.mulf %115, %116 : vector<1x256xf32>
    %cst_45 = arith.constant 9.99999974E-6 : f32
    %118 = vector.broadcast %cst_45 : f32 to vector<1x256xf32>
    %119 = arith.addf %117, %118 : vector<1x256xf32>
    %120 = math.rsqrt %119 : vector<1x256xf32>
    %121 = tpu.concatenate %120, %120, %120, %120 in 1 : vector<1x256xf32>, vector<1x256xf32>, vector<1x256xf32>, vector<1x256xf32> -> vector<1x1024xf32>
    %122 = vector.broadcast %121 : vector<1x1024xf32> to vector<4x1024xf32>
    %123 = arith.mulf %103, %122 : vector<4x1024xf32>
    %c0_46 = arith.constant 0 : index
    %c0_47 = arith.constant 0 : index
    %124 = vector.load %arg11[%c0_46, %c0_47] : memref<1x1024xf32, #tpu.memory_space<vmem>>, vector<1x1024xf32>
    %125 = vector.broadcast %124 : vector<1x1024xf32> to vector<4x1024xf32>
    %126 = arith.mulf %123, %125 : vector<4x1024xf32>
    %c0_48 = arith.constant 0 : index
    %c0_49 = arith.constant 0 : index
    %127 = vector.load %arg12[%c0_48, %c0_49] : memref<1x1024xf32, #tpu.memory_space<vmem>>, vector<1x1024xf32>
    %128 = vector.broadcast %127 : vector<1x1024xf32> to vector<4x1024xf32>
    %129 = arith.addf %126, %128 : vector<4x1024xf32>
    %cst_50 = arith.constant 0.000000e+00 : f32
    %130 = vector.broadcast %cst_50 : f32 to vector<4x1024xf32>
    %131 = arith.maximumf %129, %130 : vector<4x1024xf32>
    %132 = vector.extract_strided_slice %131 {offsets = [0, 0], sizes = [4, 256], strides = [1, 1]} : vector<4x1024xf32> to vector<4x256xf32>
    %133 = vector.extract_strided_slice %131 {offsets = [0, 256], sizes = [4, 256], strides = [1, 1]} : vector<4x1024xf32> to vector<4x256xf32>
    %134 = vector.extract_strided_slice %131 {offsets = [0, 512], sizes = [4, 256], strides = [1, 1]} : vector<4x1024xf32> to vector<4x256xf32>
    %135 = vector.extract_strided_slice %131 {offsets = [0, 768], sizes = [4, 256], strides = [1, 1]} : vector<4x1024xf32> to vector<4x256xf32>
    %cst_51 = arith.constant 0.666666686 : f32
    %136 = vector.broadcast %cst_51 : f32 to vector<4x256xf32>
    %137 = arith.mulf %132, %136 : vector<4x256xf32>
    %cst_52 = arith.constant 0.333333343 : f32
    %138 = vector.broadcast %cst_52 : f32 to vector<4x256xf32>
    %139 = arith.mulf %133, %138 : vector<4x256xf32>
    %140 = arith.addf %137, %139 : vector<4x256xf32>
    %cst_53 = arith.constant 0.333333343 : f32
    %141 = vector.broadcast %cst_53 : f32 to vector<4x256xf32>
    %142 = arith.mulf %132, %141 : vector<4x256xf32>
    %cst_54 = arith.constant 0.666666686 : f32
    %143 = vector.broadcast %cst_54 : f32 to vector<4x256xf32>
    %144 = arith.mulf %133, %143 : vector<4x256xf32>
    %145 = arith.addf %142, %144 : vector<4x256xf32>
    %cst_55 = arith.constant 0.666666686 : f32
    %146 = vector.broadcast %cst_55 : f32 to vector<4x256xf32>
    %147 = arith.mulf %132, %146 : vector<4x256xf32>
    %cst_56 = arith.constant 0.333333343 : f32
    %148 = vector.broadcast %cst_56 : f32 to vector<4x256xf32>
    %149 = arith.mulf %134, %148 : vector<4x256xf32>
    %150 = arith.addf %147, %149 : vector<4x256xf32>
    %cst_57 = arith.constant 0.444444448 : f32
    %151 = vector.broadcast %cst_57 : f32 to vector<4x256xf32>
    %152 = arith.mulf %132, %151 : vector<4x256xf32>
    %cst_58 = arith.constant 0.222222224 : f32
    %153 = vector.broadcast %cst_58 : f32 to vector<4x256xf32>
    %154 = arith.mulf %133, %153 : vector<4x256xf32>
    %155 = arith.addf %152, %154 : vector<4x256xf32>
    %cst_59 = arith.constant 0.222222224 : f32
    %156 = vector.broadcast %cst_59 : f32 to vector<4x256xf32>
    %157 = arith.mulf %134, %156 : vector<4x256xf32>
    %158 = arith.addf %155, %157 : vector<4x256xf32>
    %cst_60 = arith.constant 0.111111112 : f32
    %159 = vector.broadcast %cst_60 : f32 to vector<4x256xf32>
    %160 = arith.mulf %135, %159 : vector<4x256xf32>
    %161 = arith.addf %158, %160 : vector<4x256xf32>
    %cst_61 = arith.constant 0.222222224 : f32
    %162 = vector.broadcast %cst_61 : f32 to vector<4x256xf32>
    %163 = arith.mulf %132, %162 : vector<4x256xf32>
    %cst_62 = arith.constant 0.444444448 : f32
    %164 = vector.broadcast %cst_62 : f32 to vector<4x256xf32>
    %165 = arith.mulf %133, %164 : vector<4x256xf32>
    %166 = arith.addf %163, %165 : vector<4x256xf32>
    %cst_63 = arith.constant 0.111111112 : f32
    %167 = vector.broadcast %cst_63 : f32 to vector<4x256xf32>
    %168 = arith.mulf %134, %167 : vector<4x256xf32>
    %169 = arith.addf %166, %168 : vector<4x256xf32>
    %cst_64 = arith.constant 0.222222224 : f32
    %170 = vector.broadcast %cst_64 : f32 to vector<4x256xf32>
    %171 = arith.mulf %135, %170 : vector<4x256xf32>
    %172 = arith.addf %169, %171 : vector<4x256xf32>
    %cst_65 = arith.constant 0.666666686 : f32
    %173 = vector.broadcast %cst_65 : f32 to vector<4x256xf32>
    %174 = arith.mulf %133, %173 : vector<4x256xf32>
    %cst_66 = arith.constant 0.333333343 : f32
    %175 = vector.broadcast %cst_66 : f32 to vector<4x256xf32>
    %176 = arith.mulf %135, %175 : vector<4x256xf32>
    %177 = arith.addf %174, %176 : vector<4x256xf32>
    %cst_67 = arith.constant 0.333333343 : f32
    %178 = vector.broadcast %cst_67 : f32 to vector<4x256xf32>
    %179 = arith.mulf %132, %178 : vector<4x256xf32>
    %cst_68 = arith.constant 0.666666686 : f32
    %180 = vector.broadcast %cst_68 : f32 to vector<4x256xf32>
    %181 = arith.mulf %134, %180 : vector<4x256xf32>
    %182 = arith.addf %179, %181 : vector<4x256xf32>
    %cst_69 = arith.constant 0.222222224 : f32
    %183 = vector.broadcast %cst_69 : f32 to vector<4x256xf32>
    %184 = arith.mulf %132, %183 : vector<4x256xf32>
    %cst_70 = arith.constant 0.111111112 : f32
    %185 = vector.broadcast %cst_70 : f32 to vector<4x256xf32>
    %186 = arith.mulf %133, %185 : vector<4x256xf32>
    %187 = arith.addf %184, %186 : vector<4x256xf32>
    %cst_71 = arith.constant 0.444444448 : f32
    %188 = vector.broadcast %cst_71 : f32 to vector<4x256xf32>
    %189 = arith.mulf %134, %188 : vector<4x256xf32>
    %190 = arith.addf %187, %189 : vector<4x256xf32>
    %cst_72 = arith.constant 0.222222224 : f32
    %191 = vector.broadcast %cst_72 : f32 to vector<4x256xf32>
    %192 = arith.mulf %135, %191 : vector<4x256xf32>
    %193 = arith.addf %190, %192 : vector<4x256xf32>
    %cst_73 = arith.constant 0.111111112 : f32
    %194 = vector.broadcast %cst_73 : f32 to vector<4x256xf32>
    %195 = arith.mulf %132, %194 : vector<4x256xf32>
    %cst_74 = arith.constant 0.222222224 : f32
    %196 = vector.broadcast %cst_74 : f32 to vector<4x256xf32>
    %197 = arith.mulf %133, %196 : vector<4x256xf32>
    %198 = arith.addf %195, %197 : vector<4x256xf32>
    %cst_75 = arith.constant 0.222222224 : f32
    %199 = vector.broadcast %cst_75 : f32 to vector<4x256xf32>
    %200 = arith.mulf %134, %199 : vector<4x256xf32>
    %201 = arith.addf %198, %200 : vector<4x256xf32>
    %cst_76 = arith.constant 0.444444448 : f32
    %202 = vector.broadcast %cst_76 : f32 to vector<4x256xf32>
    %203 = arith.mulf %135, %202 : vector<4x256xf32>
    %204 = arith.addf %201, %203 : vector<4x256xf32>
    %cst_77 = arith.constant 0.333333343 : f32
    %205 = vector.broadcast %cst_77 : f32 to vector<4x256xf32>
    %206 = arith.mulf %133, %205 : vector<4x256xf32>
    %cst_78 = arith.constant 0.666666686 : f32
    %207 = vector.broadcast %cst_78 : f32 to vector<4x256xf32>
    %208 = arith.mulf %135, %207 : vector<4x256xf32>
    %209 = arith.addf %206, %208 : vector<4x256xf32>
    %cst_79 = arith.constant 0.666666686 : f32
    %210 = vector.broadcast %cst_79 : f32 to vector<4x256xf32>
    %211 = arith.mulf %134, %210 : vector<4x256xf32>
    %cst_80 = arith.constant 0.333333343 : f32
    %212 = vector.broadcast %cst_80 : f32 to vector<4x256xf32>
    %213 = arith.mulf %135, %212 : vector<4x256xf32>
    %214 = arith.addf %211, %213 : vector<4x256xf32>
    %cst_81 = arith.constant 0.333333343 : f32
    %215 = vector.broadcast %cst_81 : f32 to vector<4x256xf32>
    %216 = arith.mulf %134, %215 : vector<4x256xf32>
    %cst_82 = arith.constant 0.666666686 : f32
    %217 = vector.broadcast %cst_82 : f32 to vector<4x256xf32>
    %218 = arith.mulf %135, %217 : vector<4x256xf32>
    %219 = arith.addf %216, %218 : vector<4x256xf32>
    %220 = tpu.concatenate %132, %140, %145, %133, %150, %161, %172, %177, %182, %193, %204, %209, %134, %214, %219, %135 in 1 : vector<4x256xf32>, vector<4x256xf32>, vector<4x256xf32>, vector<4x256xf32>, vector<4x256xf32>, vector<4x256xf32>, vector<4x256xf32>, vector<4x256xf32>, vector<4x256xf32>, vector<4x256xf32>, vector<4x256xf32>, vector<4x256xf32>, vector<4x256xf32>, vector<4x256xf32>, vector<4x256xf32>, vector<4x256xf32> -> vector<4x4096xf32>
    %cst_83 = arith.constant dense<0.000000e+00> : vector<4096xf32>
    %221 = vector.multi_reduction <add>, %220, %cst_83 [0] : vector<4x4096xf32> to vector<4096xf32>
    %222 = vector.shape_cast %221 : vector<4096xf32> to vector<1x4096xf32>
    %cst_84 = arith.constant 4.000000e+00 : f32
    %223 = vector.broadcast %cst_84 : f32 to vector<1x4096xf32>
    %224 = arith.divf %222, %223 : vector<1x4096xf32>
    %225 = vector.broadcast %224 : vector<1x4096xf32> to vector<4x4096xf32>
    %226 = arith.subf %220, %225 : vector<4x4096xf32>
    %227 = arith.mulf %226, %226 : vector<4x4096xf32>
    %cst_85 = arith.constant dense<0.000000e+00> : vector<4096xf32>
    %228 = vector.multi_reduction <add>, %227, %cst_85 [0] : vector<4x4096xf32> to vector<4096xf32>
    %229 = vector.shape_cast %228 : vector<4096xf32> to vector<1x4096xf32>
    %cst_86 = arith.constant 4.000000e+00 : f32
    %230 = vector.broadcast %cst_86 : f32 to vector<1x4096xf32>
    %231 = arith.divf %229, %230 : vector<1x4096xf32>
    %232 = vector.broadcast %224 : vector<1x4096xf32> to vector<4x4096xf32>
    %233 = arith.subf %220, %232 : vector<4x4096xf32>
    %cst_87 = arith.constant 9.99999974E-6 : f32
    %234 = vector.broadcast %cst_87 : f32 to vector<1x4096xf32>
    %235 = arith.addf %231, %234 : vector<1x4096xf32>
    %236 = math.rsqrt %235 : vector<1x4096xf32>
    %237 = vector.broadcast %236 : vector<1x4096xf32> to vector<4x4096xf32>
    %238 = arith.mulf %233, %237 : vector<4x4096xf32>
    %c0_88 = arith.constant 0 : index
    %c0_89 = arith.constant 0 : index
    %239 = vector.load %arg13[%c0_88, %c0_89] : memref<1x4096xf32, #tpu.memory_space<vmem>>, vector<1x4096xf32>
    %240 = vector.broadcast %239 : vector<1x4096xf32> to vector<4x4096xf32>
    %241 = arith.mulf %238, %240 : vector<4x4096xf32>
    %c0_90 = arith.constant 0 : index
    %c0_91 = arith.constant 0 : index
    %242 = vector.load %arg14[%c0_90, %c0_91] : memref<1x4096xf32, #tpu.memory_space<vmem>>, vector<1x4096xf32>
    %243 = vector.broadcast %242 : vector<1x4096xf32> to vector<4x4096xf32>
    %244 = arith.addf %241, %243 : vector<4x4096xf32>
    %245 = arith.truncf %244 : vector<4x4096xf32> to vector<4x4096xbf16>
    %c0_92 = arith.constant 0 : index
    %c0_93 = arith.constant 0 : index
    %246 = vector.load %arg15[%c0_92, %c0_93] : memref<4096x256xbf16, #tpu.memory_space<vmem>>, vector<4096x256xbf16>
    %cst_94 = arith.constant dense<0.000000e+00> : vector<4x256xf32>
    %247 = tpu.matmul %245, %246, %cst_94 {dimension_numbers = #tpu.dot_dimension_numbers<[1], [0], [0], [1], [0, 0, 1, 1], [], []>} : vector<4x4096xbf16>, vector<4096x256xbf16>, vector<4x256xf32> -> vector<4x256xf32>
    %c0_95 = arith.constant 0 : index
    %c0_96 = arith.constant 0 : index
    %248 = vector.load %arg16[%c0_95, %c0_96] : memref<1x256xf32, #tpu.memory_space<vmem>>, vector<1x256xf32>
    %249 = vector.broadcast %248 : vector<1x256xf32> to vector<4x256xf32>
    %250 = arith.addf %247, %249 : vector<4x256xf32>
    %251 = math.tanh %250 : vector<4x256xf32>
    %c0_97 = arith.constant 0 : index
    %c0_98 = arith.constant 0 : index
    %252 = vector.load %arg17[%c0_97, %c0_98] : memref<4x256xf32, #tpu.memory_space<vmem>>, vector<4x256xf32>
    tpu.vector_store %arg17[%c0_97, %c0_98], %251 {strides = array<i32>} : memref<4x256xf32, #tpu.memory_space<vmem>>, vector<4x256xf32>,
    return
  }
}

</mosaic_0001>

<bundles_post_ra>
// kernel: tpu_custom_call.1
= control target key start
LH: loop header
LB: loop body
LE: loop exit
PB: predicated region body
PF: predicated region fallthrough
CT: control target
= control target key end

     0   :  { %s9832_s0 = inlined_call_operand.hbm [shape: f32[4,8], index: 0, kind: input, shape index: {}]   ;;  %s9833_s1 = inlined_call_operand.hbm [shape: f32[8,16], index: 1, kind: input, shape index: {}]   ;;  %s9834_s2 = inlined_call_operand.hbm [shape: f32[1,16], index: 2, kind: input, shape index: {}]   ;;  %s9835_s3 = inlined_call_operand.hbm [shape: f32[1,16], index: 3, kind: input, shape index: {}]   ;;  %s9836_s4 = inlined_call_operand.hbm [shape: f32[1,16], index: 4, kind: input, shape index: {}]   ;;  %s9837_s5 = inlined_call_operand.hbm [shape: f32[16,64], index: 5, kind: input, shape index: {}]   ;;  %s9838_s6 = inlined_call_operand.hbm [shape: f32[1,64], index: 6, kind: input, shape index: {}]   ;;  %s9839_s7 = inlined_call_operand.hbm [shape: f32[1,32], index: 7, kind: input, shape index: {}]   ;;  %s9840_s8 = inlined_call_operand.hbm [shape: f32[1,32], index: 8, kind: input, shape index: {}]   ;;  %s9841_s9 = inlined_call_operand.hbm [shape: f32[32,2048], index: 9, kind: input, shape index: {}]   ;;  %s9842_s10 = inlined_call_operand.hbm [shape: f32[1,2048], index: 10, kind: input, shape index: {}]   ;;  %s9843_s11 = inlined_call_operand.hbm [shape: f32[1,1024], index: 11, kind: input, shape index: {}]   ;;  %s9844_s12 = inlined_call_operand.hbm [shape: f32[1,1024], index: 12, kind: input, shape index: {}]   ;;  %s9845_s13 = inlined_call_operand.hbm [shape: f32[1,4096], index: 13, kind: input, shape index: {}]   ;;  %s9846_s14 = inlined_call_operand.hbm [shape: f32[1,4096], index: 14, kind: input, shape index: {}]   ;;  %s9847_s15 = inlined_call_operand.hbm [shape: bf16[4096,256], index: 15, kind: input, shape index: {}]   ;;  %s9848_s16 = inlined_call_operand.hbm [shape: f32[1,256], index: 16, kind: input, shape index: {}]   ;;  %s9849_s17 = inlined_call_operand.hbm [shape: f32[4,256], index: 17, kind: output, shape index: {}]  }
   0x1   :  { %9861 = sst [smem:[#allocation49_spill]] %s9832_s0 }
   0x2   :  { %9862 = sst [smem:[#allocation50_spill]] %s9833_s1 }
   0x3   :  { %22 = vsyncpa [#allocation3], 0 }
   0x4   :  { %23 = vsyncpa [#allocation6], 0 }
   0x5   :  { %24 = vsyncpa [#allocation9], 0 }
   0x6   :  { %25 = vsyncpa [#allocation12], 0 }
   0x7   :  { %26 = vsyncpa [#allocation15], 0 }
   0x8   :  { %27 = vsyncpa [#allocation18], 0 }
   0x9   :  { %28 = vsyncpa [#allocation21], 0 }
   0xa   :  { %29 = vsyncpa [#allocation24], 0 }
   0xb   :  { %30 = vsyncpa [#allocation27], 0 }
   0xc   :  { %31 = vsyncpa [#allocation4], 0  ;;  %s8561_s24 = smov [#allocation5]   ;;  %s8562_s26 = smov [#allocation8]  }
   0xd   :  { %s48_s25 = sshll.u32 %s8561_s24, 4  ;;  %s68_s27 = sshll.u32 %s8562_s26, 4  ;;  %s49_s25 = int_to_ptr.vmem [resolvable:$true] %s48_s25  ;;  %s69_s27 = int_to_ptr.vmem [resolvable:$true] %s68_s27 }
   0xe   :  { %s9863_s0 = sld [smem:[#allocation50_spill]] }
  0x14   :  { %s8145_s30 = scalar_lea.hbm %s9863_s0, 128 }
  0x15   :  { %p8146_p0 = scmp.ne.s32.totalorder %s9863_s0, %s8145_s30  ;;  %p8149_p1 = scmp.lt.u32.totalorder %s8145_s30, %s9863_s0 }
  0x17   :  { %p8151_p2 = pnand %p8149_p1, %p8146_p0 }
  0x19   :  { %8154 = shalt.err (!%p8151_p2)
}
  0x1a   :  { %s8155_s21 = scalar_lea.vmem %s49_s25, 128  ;;  %p8160_p4 = scmp.lt.s32.totalorder %s49_s25, %s49_s25 }
  0x1b   :  { %p8156_p3 = scmp.ne.s32.totalorder %s49_s25, %s8155_s21  ;;  %p8161_p5 = scmp.lt.s32.totalorder %s8155_s21, %s8155_s21 }
  0x1d   :  { %p8162_p6 = por %p8161_p5, %p8160_p4 }
  0x1f   :  { %p8163_p7 = pnand %p8162_p6, %p8156_p3 }
  0x21   :  { %8166 = shalt.err (!%p8163_p7)
}
  0x22   :  { %51 = dma.hbm_to_vmem [thread:$0]  %s9863_s0, 128, %s49_s25, [#allocation6]  }
  0x23   :  { %s8167_s28 = scalar_lea.hbm %s9835_s3, 16 }
  0x24   :  { %p8168_p8 = scmp.ne.s32.totalorder %s9835_s3, %s8167_s28  ;;  %p8171_p9 = scmp.lt.u32.totalorder %s8167_s28, %s9835_s3 }
  0x26   :  { %p8173_p10 = pnand %p8171_p9, %p8168_p8 }
  0x28   :  { %8176 = shalt.err (!%p8173_p10)
}
  0x29   :  { %s8177_s1 = scalar_lea.vmem %s69_s27, 16  ;;  %s8181_s20 = scalar_lea.vmem %s69_s27, 32 }
  0x2a   :  { %p8178_p11 = scmp.ne.s32.totalorder %s69_s27, %s8177_s1  ;;  %p8182_p12 = scmp.lt.s32.totalorder %s69_s27, %s69_s27 }
  0x2b   :  { %p8183_p13 = scmp.lt.s32.totalorder %s8181_s20, %s8177_s1 }
  0x2d   :  { %p8184_p0 = por %p8183_p13, %p8182_p12 }
  0x2f   :  { %p8185_p1 = pnand %p8184_p0, %p8178_p11 }
  0x31   :  { %8188 = shalt.err (!%p8185_p1)
}
  0x32   :  { %71 = dma.hbm_to_vmem [thread:$0]  %s9835_s3, 16, %s69_s27, [#allocation9]  }
  0x33   :  { %s8563_s21 = smov [#allocation11]   ;;  %s8189_s26 = scalar_lea.hbm %s9837_s5, 256 }
  0x34   :  { %s87_s22 = sshll.u32 %s8563_s21, 4  ;;  %p8190_p2 = scmp.ne.s32.totalorder %s9837_s5, %s8189_s26  ;;  %s88_s22 = int_to_ptr.vmem [resolvable:$true] %s87_s22 }
  0x35   :  { %p8193_p3 = scmp.lt.u32.totalorder %s8189_s26, %s9837_s5 }
  0x37   :  { %p8195_p4 = pnand %p8193_p3, %p8190_p2 }
  0x39   :  { %8198 = shalt.err (!%p8195_p4)
}
  0x3a   :  { %s8199_s19 = scalar_lea.vmem %s88_s22, 256  ;;  %p8204_p6 = scmp.lt.s32.totalorder %s88_s22, %s88_s22 }
  0x3b   :  { %p8200_p5 = scmp.ne.s32.totalorder %s88_s22, %s8199_s19  ;;  %p8205_p7 = scmp.lt.s32.totalorder %s8199_s19, %s8199_s19 }
  0x3d   :  { %p8206_p8 = por %p8205_p7, %p8204_p6 }
  0x3f   :  { %p8207_p9 = pnand %p8206_p8, %p8200_p5 }
  0x41   :  { %8210 = shalt.err (!%p8207_p9)
}
  0x42   :  { %s8564_s3 = smov 128   ;;  %s8565_s27 = smov 8  }
  0x43   :  { %93 = dma.hbm_to_vmem [thread:$0]  %s9837_s5, 256, %s88_s22, [#allocation12], %s8564_s3, %s8564_s3, %s8565_s27  }
  0x44   :  { %s8566_s25 = smov [#allocation14]   ;;  %s8567_s21 = smov [#allocation17]  }
  0x45   :  { %s110_s0 = sshll.u32 %s8566_s25, 4  ;;  %s129_s23 = sshll.u32 %s8567_s21, 4  ;;  %s111_s0 = int_to_ptr.vmem [resolvable:$true] %s110_s0  ;;  %s130_s23 = int_to_ptr.vmem [resolvable:$true] %s129_s23 }
  0x46   :  { %s8211_s28 = scalar_lea.hbm %s9839_s7, 16 }
  0x47   :  { %p8212_p10 = scmp.ne.s32.totalorder %s9839_s7, %s8211_s28  ;;  %p8215_p11 = scmp.lt.u32.totalorder %s8211_s28, %s9839_s7 }
  0x49   :  { %p8217_p12 = pnand %p8215_p11, %p8212_p10 }
  0x4b   :  { %8220 = shalt.err (!%p8217_p12)
}
  0x4c   :  { %s8221_s5 = scalar_lea.vmem %s111_s0, 16  ;;  %s8225_s22 = scalar_lea.vmem %s111_s0, 32 }
  0x4d   :  { %p8222_p13 = scmp.ne.s32.totalorder %s111_s0, %s8221_s5  ;;  %p8226_p0 = scmp.lt.s32.totalorder %s111_s0, %s111_s0 }
  0x4e   :  { %p8227_p1 = scmp.lt.s32.totalorder %s8225_s22, %s8221_s5 }
  0x50   :  { %p8228_p2 = por %p8227_p1, %p8226_p0 }
  0x52   :  { %p8229_p3 = pnand %p8228_p2, %p8222_p13 }
  0x54   :  { %8232 = shalt.err (!%p8229_p3)
}
  0x55   :  { %113 = dma.hbm_to_vmem [thread:$0]  %s9839_s7, 16, %s111_s0, [#allocation15]  }
  0x56   :  { %s8233_s24 = scalar_lea.hbm %s9841_s9, 8192 }
  0x57   :  { %p8234_p4 = scmp.ne.s32.totalorder %s9841_s9, %s8233_s24  ;;  %p8237_p5 = scmp.lt.u32.totalorder %s8233_s24, %s9841_s9 }
  0x59   :  { %p8239_p6 = pnand %p8237_p5, %p8234_p4 }
  0x5b   :  { %8242 = shalt.err (!%p8239_p6)
}
  0x5c   :  { %s8243_s30 = scalar_lea.vmem %s130_s23, 8192  ;;  %p8248_p8 = scmp.lt.s32.totalorder %s130_s23, %s130_s23 }
  0x5d   :  { %p8244_p7 = scmp.ne.s32.totalorder %s130_s23, %s8243_s30  ;;  %p8249_p9 = scmp.lt.s32.totalorder %s8243_s30, %s8243_s30 }
  0x5f   :  { %p8250_p10 = por %p8249_p9, %p8248_p8 }
  0x61   :  { %p8251_p11 = pnand %p8250_p10, %p8244_p7 }
  0x63   :  { %8254 = shalt.err (!%p8251_p11)
}
  0x64   :  { %s8568_s7 = smov 2048   ;;  %s8569_s5 = smov [#allocation20]  }
  0x65   :  { %135 = dma.hbm_to_vmem [thread:$0]  %s9841_s9, 8192, %s130_s23, [#allocation18], %s8568_s7, %s8568_s7, %s8564_s3  }
  0x66   :  { %s152_s22 = sshll.u32 %s8569_s5, 4  ;;  %s8570_s1 = smov [#allocation23]   ;;  %s153_s22 = int_to_ptr.vmem [resolvable:$true] %s152_s22 }
  0x67   :  { %s172_s20 = sshll.u32 %s8570_s1, 4  ;;  %s8255_s24 = scalar_lea.hbm %s9843_s11, 128  ;;  %s173_s20 = int_to_ptr.vmem [resolvable:$true] %s172_s20 }
  0x68   :  { %p8256_p12 = scmp.ne.s32.totalorder %s9843_s11, %s8255_s24  ;;  %p8259_p13 = scmp.lt.u32.totalorder %s8255_s24, %s9843_s11 }
  0x6a   :  { %p8261_p0 = pnand %p8259_p13, %p8256_p12 }
  0x6c   :  { %8264 = shalt.err (!%p8261_p0)
}
  0x6d   :  { %s8265_s9 = scalar_lea.vmem %s153_s22, 128  ;;  %p8270_p2 = scmp.lt.s32.totalorder %s153_s22, %s153_s22 }
  0x6e   :  { %p8266_p1 = scmp.ne.s32.totalorder %s153_s22, %s8265_s9  ;;  %p8271_p3 = scmp.lt.s32.totalorder %s8265_s9, %s8265_s9 }
  0x70   :  { %p8272_p4 = por %p8271_p3, %p8270_p2 }
  0x72   :  { %p8273_p5 = pnand %p8272_p4, %p8266_p1 }
  0x74   :  { %8276 = shalt.err (!%p8273_p5)
}
  0x75   :  { %155 = dma.hbm_to_vmem [thread:$0]  %s9843_s11, 128, %s153_s22, [#allocation21]  }
  0x76   :  { %s8277_s19 = scalar_lea.hbm %s9845_s13, 512 }
  0x77   :  { %p8278_p6 = scmp.ne.s32.totalorder %s9845_s13, %s8277_s19  ;;  %p8281_p7 = scmp.lt.u32.totalorder %s8277_s19, %s9845_s13 }
  0x79   :  { %p8283_p8 = pnand %p8281_p7, %p8278_p6 }
  0x7b   :  { %8286 = shalt.err (!%p8283_p8)
}
  0x7c   :  { %s8287_s24 = scalar_lea.vmem %s173_s20, 512  ;;  %p8292_p10 = scmp.lt.s32.totalorder %s173_s20, %s173_s20 }
  0x7d   :  { %p8288_p9 = scmp.ne.s32.totalorder %s173_s20, %s8287_s24  ;;  %p8293_p11 = scmp.lt.s32.totalorder %s8287_s24, %s8287_s24 }
  0x7f   :  { %p8294_p12 = por %p8293_p11, %p8292_p10 }
  0x81   :  { %p8295_p13 = pnand %p8294_p12, %p8288_p9 }
  0x83   :  { %8298 = shalt.err (!%p8295_p13)
}
  0x84   :  { %175 = dma.hbm_to_vmem [thread:$0]  %s9845_s13, 512, %s173_s20, [#allocation24]  }
  0x85   :  { %s8571_s26 = smov [#allocation26]   ;;  %s8572_s29 = smov [#allocation2]  }
  0x86   :  { %s191_s28 = sshll.u32 %s8571_s26, 4  ;;  %s38_s18 = sshll.u32 %s8572_s29, 4  ;;  %s192_s28 = int_to_ptr.vmem [resolvable:$true] %s191_s28  ;;  %s39_s18 = int_to_ptr.vmem [resolvable:$true] %s38_s18 }
  0x87   :  { %s8299_s30 = scalar_lea.hbm %s9847_s15, 65536 }
  0x88   :  { %p8300_p0 = scmp.ne.s32.totalorder %s9847_s15, %s8299_s30  ;;  %p8303_p1 = scmp.lt.u32.totalorder %s8299_s30, %s9847_s15 }
  0x8a   :  { %p8305_p2 = pnand %p8303_p1, %p8300_p0 }
  0x8c   :  { %8308 = shalt.err (!%p8305_p2)
}
  0x8d   :  { %s8309_s13 = scalar_lea.vmem %s192_s28, 65536  ;;  %p8314_p4 = scmp.lt.s32.totalorder %s192_s28, %s192_s28 }
  0x8e   :  { %p8310_p3 = scmp.ne.s32.totalorder %s192_s28, %s8309_s13  ;;  %p8315_p5 = scmp.lt.s32.totalorder %s8309_s13, %s8309_s13 }
  0x90   :  { %p8316_p6 = por %p8315_p5, %p8314_p4 }
  0x92   :  { %p8317_p7 = pnand %p8316_p6, %p8310_p3 }
  0x94   :  { %8320 = shalt.err (!%p8317_p7)
}
  0x95   :  { %197 = dma.hbm_to_vmem [thread:$0]  %s9847_s15, 65536, %s192_s28, [#allocation27], %s8564_s3, %s8564_s3, %s8565_s27  }
  0x96   :  { %s9864_s24 = sld [smem:[#allocation49_spill]] }
  0x9c   :  { %s8321_s11 = scalar_lea.hbm %s9864_s24, 64 }
  0x9d   :  { %p8322_p8 = scmp.ne.s32.totalorder %s9864_s24, %s8321_s11  ;;  %p8325_p9 = scmp.lt.u32.totalorder %s8321_s11, %s9864_s24 }
  0x9f   :  { %p8327_p10 = pnand %p8325_p9, %p8322_p8 }
  0xa1   :  { %8330 = shalt.err (!%p8327_p10)
}
  0xa2   :  { %s8331_s23 = scalar_lea.vmem %s39_s18, 64  ;;  %p8336_p12 = scmp.lt.s32.totalorder %s39_s18, %s39_s18 }
  0xa3   :  { %p8332_p11 = scmp.ne.s32.totalorder %s39_s18, %s8331_s23  ;;  %p8337_p13 = scmp.lt.s32.totalorder %s8331_s23, %s8331_s23 }
  0xa5   :  { %p8338_p0 = por %p8337_p13, %p8336_p12 }
  0xa7   :  { %p8339_p1 = pnand %p8338_p0, %p8332_p11 }
  0xa9   :  { %8342 = shalt.err (!%p8339_p1)
}
  0xaa   :  { %41 = dma.hbm_to_vmem [thread:$0]  %s9864_s24, 64, %s39_s18, [#allocation3]  }
  0xab   :  { %s8573_s27 = smov [#allocation7]   ;;  %s8574_s30 = smov [#allocation10]  }
  0xac   :  { %s58_s28 = sshll.u32 %s8573_s27, 4  ;;  %s78_s7 = sshll.u32 %s8574_s30, 4  ;;  %s59_s28 = int_to_ptr.vmem [resolvable:$true] %s58_s28  ;;  %s79_s7 = int_to_ptr.vmem [resolvable:$true] %s78_s7 }
  0xad   :  { %s8343_s5 = scalar_lea.hbm %s9834_s2, 16 }
  0xae   :  { %p8344_p2 = scmp.ne.s32.totalorder %s9834_s2, %s8343_s5  ;;  %p8347_p3 = scmp.lt.u32.totalorder %s8343_s5, %s9834_s2 }
  0xb0   :  { %p8349_p4 = pnand %p8347_p3, %p8344_p2 }
  0xb2   :  { %8352 = shalt.err (!%p8349_p4)
}
  0xb3   :  { %s8353_s18 = scalar_lea.vmem %s59_s28, 16  ;;  %s8357_s21 = scalar_lea.vmem %s59_s28, 32 }
  0xb4   :  { %p8354_p5 = scmp.ne.s32.totalorder %s59_s28, %s8353_s18  ;;  %p8358_p6 = scmp.lt.s32.totalorder %s59_s28, %s59_s28 }
  0xb5   :  { %p8359_p7 = scmp.lt.s32.totalorder %s8357_s21, %s8353_s18 }
  0xb7   :  { %p8360_p8 = por %p8359_p7, %p8358_p6 }
  0xb9   :  { %p8361_p9 = pnand %p8360_p8, %p8354_p5 }
  0xbb   :  { %8364 = shalt.err (!%p8361_p9)
}
  0xbc   :  { %61 = dma.hbm_to_vmem [thread:$0]  %s9834_s2, 16, %s59_s28, [#allocation6]  }
  0xbd   :  { %s8365_s29 = scalar_lea.hbm %s9836_s4, 16 }
  0xbe   :  { %p8366_p10 = scmp.ne.s32.totalorder %s9836_s4, %s8365_s29  ;;  %p8369_p11 = scmp.lt.u32.totalorder %s8365_s29, %s9836_s4 }
  0xc0   :  { %p8371_p12 = pnand %p8369_p11, %p8366_p10 }
  0xc2   :  { %8374 = shalt.err (!%p8371_p12)
}
  0xc3   :  { %s8375_s27 = scalar_lea.vmem %s79_s7, 16  ;;  %s8379_s30 = scalar_lea.vmem %s79_s7, 32 }
  0xc4   :  { %p8376_p13 = scmp.ne.s32.totalorder %s79_s7, %s8375_s27  ;;  %p8380_p0 = scmp.lt.s32.totalorder %s79_s7, %s79_s7 }
  0xc5   :  { %p8381_p1 = scmp.lt.s32.totalorder %s8379_s30, %s8375_s27 }
  0xc7   :  { %p8382_p2 = por %p8381_p1, %p8380_p0 }
  0xc9   :  { %p8383_p3 = pnand %p8382_p2, %p8376_p13 }
  0xcb   :  { %8386 = shalt.err (!%p8383_p3)
}
  0xcc   :  { %81 = dma.hbm_to_vmem [thread:$0]  %s9836_s4, 16, %s79_s7, [#allocation9]  }
  0xcd   :  { %s8575_s0 = smov [#allocation13]   ;;  %s8576_s5 = smov [#allocation16]  }
  0xce   :  { %s100_s19 = sshll.u32 %s8575_s0, 4  ;;  %s120_s13 = sshll.u32 %s8576_s5, 4  ;;  %s101_s19 = int_to_ptr.vmem [resolvable:$true] %s100_s19  ;;  %s121_s13 = int_to_ptr.vmem [resolvable:$true] %s120_s13 }
  0xcf   :  { %s8387_s25 = scalar_lea.hbm %s9838_s6, 16 }
  0xd0   :  { %p8388_p4 = scmp.ne.s32.totalorder %s9838_s6, %s8387_s25  ;;  %p8391_p5 = scmp.lt.u32.totalorder %s8387_s25, %s9838_s6 }
  0xd2   :  { %p8393_p6 = pnand %p8391_p5, %p8388_p4 }
  0xd4   :  { %8396 = shalt.err (!%p8393_p6)
}
  0xd5   :  { %s8397_s4 = scalar_lea.vmem %s101_s19, 16  ;;  %s8401_s7 = scalar_lea.vmem %s101_s19, 32 }
  0xd6   :  { %p8398_p7 = scmp.ne.s32.totalorder %s101_s19, %s8397_s4  ;;  %p8402_p8 = scmp.lt.s32.totalorder %s101_s19, %s101_s19 }
  0xd7   :  { %p8403_p9 = scmp.lt.s32.totalorder %s8401_s7, %s8397_s4 }
  0xd9   :  { %p8404_p10 = por %p8403_p9, %p8402_p8 }
  0xdb   :  { %p8405_p11 = pnand %p8404_p10, %p8398_p7 }
  0xdd   :  { %8408 = shalt.err (!%p8405_p11)
}
  0xde   :  { %103 = dma.hbm_to_vmem [thread:$0]  %s9838_s6, 16, %s101_s19, [#allocation12]  }
  0xdf   :  { %s8409_s23 = scalar_lea.hbm %s9840_s8, 16 }
  0xe0   :  { %p8410_p12 = scmp.ne.s32.totalorder %s9840_s8, %s8409_s23  ;;  %p8413_p13 = scmp.lt.u32.totalorder %s8409_s23, %s9840_s8 }
  0xe2   :  { %p8415_p0 = pnand %p8413_p13, %p8410_p12 }
  0xe4   :  { %8418 = shalt.err (!%p8415_p0)
}
  0xe5   :  { %s8419_s2 = scalar_lea.vmem %s121_s13, 16  ;;  %s8423_s28 = scalar_lea.vmem %s121_s13, 32 }
  0xe6   :  { %p8420_p1 = scmp.ne.s32.totalorder %s121_s13, %s8419_s2  ;;  %p8424_p2 = scmp.lt.s32.totalorder %s121_s13, %s121_s13 }
  0xe7   :  { %p8425_p3 = scmp.lt.s32.totalorder %s8423_s28, %s8419_s2 }
  0xe9   :  { %p8426_p4 = por %p8425_p3, %p8424_p2 }
  0xeb   :  { %p8427_p5 = pnand %p8426_p4, %p8420_p1 }
  0xed   :  { %8430 = shalt.err (!%p8427_p5)
}
  0xee   :  { %123 = dma.hbm_to_vmem [thread:$0]  %s9840_s8, 16, %s121_s13, [#allocation15]  }
  0xef   :  { %s8577_s19 = smov [#allocation19]   ;;  %s8578_s20 = smov [#allocation22]  }
  0xf0   :  { %s142_s5 = sshll.u32 %s8577_s19, 4  ;;  %s162_s1 = sshll.u32 %s8578_s20, 4  ;;  %s143_s5 = int_to_ptr.vmem [resolvable:$true] %s142_s5  ;;  %s163_s1 = int_to_ptr.vmem [resolvable:$true] %s162_s1 }
  0xf1   :  { %s8431_s21 = scalar_lea.hbm %s9842_s10, 256 }
  0xf2   :  { %p8432_p6 = scmp.ne.s32.totalorder %s9842_s10, %s8431_s21  ;;  %p8435_p7 = scmp.lt.u32.totalorder %s8431_s21, %s9842_s10 }
  0xf4   :  { %p8437_p8 = pnand %p8435_p7, %p8432_p6 }
  0xf6   :  { %8440 = shalt.err (!%p8437_p8)
}
  0xf7   :  { %s8441_s8 = scalar_lea.vmem %s143_s5, 256  ;;  %p8446_p10 = scmp.lt.s32.totalorder %s143_s5, %s143_s5 }
  0xf8   :  { %p8442_p9 = scmp.ne.s32.totalorder %s143_s5, %s8441_s8  ;;  %p8447_p11 = scmp.lt.s32.totalorder %s8441_s8, %s8441_s8 }
  0xfa   :  { %p8448_p12 = por %p8447_p11, %p8446_p10 }
  0xfc   :  { %p8449_p13 = pnand %p8448_p12, %p8442_p9 }
  0xfe   :  { %8452 = shalt.err (!%p8449_p13)
}
  0xff   :  { %145 = dma.hbm_to_vmem [thread:$0]  %s9842_s10, 256, %s143_s5, [#allocation18]  }
 0x100   :  { %s8453_s9 = scalar_lea.hbm %s9844_s12, 128 }
 0x101   :  { %p8454_p0 = scmp.ne.s32.totalorder %s9844_s12, %s8453_s9  ;;  %p8457_p1 = scmp.lt.u32.totalorder %s8453_s9, %s9844_s12 }
 0x103   :  { %p8459_p2 = pnand %p8457_p1, %p8454_p0 }
 0x105   :  { %8462 = shalt.err (!%p8459_p2)
}
 0x106   :  { %s8463_s30 = scalar_lea.vmem %s163_s1, 128  ;;  %p8468_p4 = scmp.lt.s32.totalorder %s163_s1, %s163_s1 }
 0x107   :  { %p8464_p3 = scmp.ne.s32.totalorder %s163_s1, %s8463_s30  ;;  %p8469_p5 = scmp.lt.s32.totalorder %s8463_s30, %s8463_s30 }
 0x109   :  { %p8470_p6 = por %p8469_p5, %p8468_p4 }
 0x10b   :  { %p8471_p7 = pnand %p8470_p6, %p8464_p3 }
 0x10d   :  { %8474 = shalt.err (!%p8471_p7)
}
 0x10e   :  { %165 = dma.hbm_to_vmem [thread:$0]  %s9844_s12, 128, %s163_s1, [#allocation21]  }
 0x10f   :  { %s8579_s28 = smov [#allocation25]   ;;  %s8580_s0 = smov [#allocation28]  }
 0x110   :  { %s182_s6 = sshll.u32 %s8579_s28, 4  ;;  %s204_s19 = sshll.u32 %s8580_s0, 4  ;;  %s183_s6 = int_to_ptr.vmem [resolvable:$true] %s182_s6  ;;  %s205_s19 = int_to_ptr.vmem [resolvable:$true] %s204_s19 }
 0x111   :  { %s8475_s25 = scalar_lea.hbm %s9846_s14, 512 }
 0x112   :  { %p8476_p8 = scmp.ne.s32.totalorder %s9846_s14, %s8475_s25  ;;  %p8479_p9 = scmp.lt.u32.totalorder %s8475_s25, %s9846_s14 }
 0x114   :  { %p8481_p10 = pnand %p8479_p9, %p8476_p8 }
 0x116   :  { %8484 = shalt.err (!%p8481_p10)
}
 0x117   :  { %s8485_s12 = scalar_lea.vmem %s183_s6, 512  ;;  %p8490_p12 = scmp.lt.s32.totalorder %s183_s6, %s183_s6 }
 0x118   :  { %p8486_p11 = scmp.ne.s32.totalorder %s183_s6, %s8485_s12  ;;  %p8491_p13 = scmp.lt.s32.totalorder %s8485_s12, %s8485_s12 }
 0x11a   :  { %p8492_p0 = por %p8491_p13, %p8490_p12 }
 0x11c   :  { %p8493_p1 = pnand %p8492_p0, %p8486_p11 }
 0x11e   :  { %8496 = shalt.err (!%p8493_p1)
}
 0x11f   :  { %185 = dma.hbm_to_vmem [thread:$0]  %s9846_s14, 512, %s183_s6, [#allocation24]  }
 0x120   :  { %s8497_s13 = scalar_lea.hbm %s9848_s16, 32 }
 0x121   :  { %p8498_p2 = scmp.ne.s32.totalorder %s9848_s16, %s8497_s13  ;;  %p8501_p3 = scmp.lt.u32.totalorder %s8497_s13, %s9848_s16 }
 0x123   :  { %p8503_p4 = pnand %p8501_p3, %p8498_p2 }
 0x125   :  { %8506 = shalt.err (!%p8503_p4)
}
 0x126   :  { %s8507_s23 = scalar_lea.vmem %s205_s19, 32  ;;  %p8512_p6 = scmp.lt.s32.totalorder %s205_s19, %s205_s19 }
 0x127   :  { %p8508_p5 = scmp.ne.s32.totalorder %s205_s19, %s8507_s23  ;;  %p8513_p7 = scmp.lt.s32.totalorder %s8507_s23, %s8507_s23 }
 0x129   :  { %p8514_p8 = por %p8513_p7, %p8512_p6 }
 0x12b   :  { %p8515_p9 = pnand %p8514_p8, %p8508_p5 }
 0x12d   :  { %8518 = shalt.err (!%p8515_p9)
}
 0x12e   :  { %207 = dma.hbm_to_vmem [thread:$0]  %s9848_s16, 32, %s205_s19, [#allocation27]  }
 0x12f   :  { %8541 = dma.done.wait [#allocation3], 64  }
 0x130   :  { %8542 = vsyncadd [#allocation3], 4294967232 }
 0x131   :  { %8543 = dma.done.wait [#allocation6], 144  }
 0x132   :  { %8544 = vsyncadd [#allocation6], 4294967152 }
 0x133   :  { %8545 = dma.done.wait [#allocation9], 32  }
 0x134   :  { %8546 = vsyncadd [#allocation9], 4294967264 }
 0x135   :  { %8547 = dma.done.wait [#allocation12], 272  }
 0x136   :  { %8548 = vsyncadd [#allocation12], 4294967024 }
 0x137   :  { %8549 = dma.done.wait [#allocation15], 32  }
 0x138   :  { %8550 = vsyncadd [#allocation15], 4294967264 }
 0x139   :  { %8551 = dma.done.wait [#allocation18], 8448  }
 0x13a   :  { %8552 = vsyncadd [#allocation18], 4294958848 }
 0x13b   :  { %8553 = dma.done.wait [#allocation21], 256  }
 0x13c   :  { %8554 = vsyncadd [#allocation21], 4294967040 }
 0x13d   :  { %8555 = dma.done.wait [#allocation24], 1024  }
 0x13e   :  { %8556 = vsyncadd [#allocation24], 4294966272 }
 0x13f   :  { %8557 = dma.done.wait [#allocation27], 65568  }
 0x140   :  { %8558 = vsyncadd [#allocation27], 4294901728  ;;  %v8581_v0 = vmov 0.0   ;;  %vm8582_vm0 = vmmov 0   ;;  %vm268_vm1 = vcmask 64512   ;;  %v260_v1 = vld [vmem:[#allocation5] sm:$0xff] }
 0x141   :  { %7093 = vmatprep.subr.mxu0 %v8581_v0  ;;  %7095 = vmatprep.mubr.msk.f32.mxu0 %vm8582_vm0, %v8581_v0  ;;  %v259_v2 = vld [vmem:[#allocation2] sm:$0xf]  ;;  %v382_v3 = vld [vmem:[#allocation11] sm:$0xff]  ;;  %v8583_v5 = vmov 0.0|0.0   ;;  %v6551_v7 = vld [vmem:[#allocation7] ss:$0 sm:$0xff] }
 0x142   :  { %7102 = vmatprep.mubr.msk.f32.mxu1 %vm8582_vm0, %v8581_v0  ;;  %7094 = vmatpush3.msra.mxu0 %v260_v1  ;;  %v383_v4 = vld [vmem:[#allocation11 + $0x8] sm:$0xff]  ;;  %vm344_vm2 = vcmask 125952   ;;  %v6553_v31 = vld [vmem:[#allocation8] ss:$0 sm:$0xff]  ;;  %v6554_v33 = vld [vmem:[#allocation10] ss:$0 sm:$0xff] }
 0x143   :  { %7096 = vmatmul.mubr.msk.f32.vlgmr.msra.gmra.mrb[0].mxu0 %vm268_vm1, %v259_v2  ;;  %7105 = vmatprep.subr.bf16.mxu1 %v8583_v5  ;;  %v7106_v6 = vpack.c.bf16 %v383_v4, %v382_v3  ;;  %vm391_vm3 = vcmask 130048   ;;  %v6555_v37 = vld [vmem:[#allocation13] ss:$0 sm:$0xff]  ;;  %s8584_s16 = smov 96   ;;  %v517_v45 = vld [vmem:[#allocation17 + $0x8] sm:$0xff]  ;;  %v516_v50 = vld [vmem:[#allocation17] sm:$0xff] }
 0x144   :  { %732 = vmatprep.mubr.f32.mxu0 %v8581_v0  ;;  %v533_v46 = vld [vmem:[#allocation17 + $0x88] sm:$0xff]  ;;  %v519_v47 = vld [vmem:[#allocation17 + $0x18] sm:$0xff]  ;;  %v532_v51 = vld [vmem:[#allocation17 + $0x80] sm:$0xff]  ;;  %vm479_vm4 = vcmask 257024   ;;  %vm664_vm5 = vcmask 261120   ;;  %vm1300_vm6 = vcmask 1043456  }
 0x145   :  { %7107 = vmatpush3.bf16.msra.mxu1 %v7106_v6  ;;  %v7108_v48 = vpack.c.bf16 %v533_v46, %v517_v45  ;;  %v535_v49 = vld [vmem:[#allocation17 + $0x98] sm:$0xff]  ;;  %v7110_v53 = vpack.c.bf16 %v532_v51, %v516_v50  ;;  %v518_v54 = vld [vmem:[#allocation17 + $0x10] sm:$0xff]  ;;  %v549_v57 = vld [vmem:[#allocation17 + $0x108] sm:$0xff]  ;;  %s8585_s3 = smov [#allocation29]  }
 0x146   :  { %v7116_v52 = vpack.c.bf16 %v535_v49, %v519_v47  ;;  %v534_v55 = vld [vmem:[#allocation17 + $0x90] sm:$0xff]  ;;  %v565_v58 = vld [vmem:[#allocation17 + $0x188] sm:$0xff]  ;;  %v551_v59 = vld [vmem:[#allocation17 + $0x118] sm:$0xff]  ;;  %s6534_s27 = sshll.u32 %s8585_s3, 4  ;;  %s6535_s27 = int_to_ptr.vmem [resolvable:$true] %s6534_s27 }
 0x147   :  { %7109 = vmatprep.subr.bf16.mxu0 %v7108_v48  ;;  %v7118_v56 = vpack.c.bf16 %v534_v55, %v518_v54  ;;  %v7112_v60 = vpack.c.bf16 %v565_v58, %v549_v57  ;;  %v567_v61 = vld [vmem:[#allocation17 + $0x198] sm:$0xff]  ;;  %v548_v62 = vld [vmem:[#allocation17 + $0x100] sm:$0xff]  ;;  %v550_v3 = vld [vmem:[#allocation17 + $0x110] sm:$0xff]  ;;  %s8519_s30 = scalar_lea.vmem %s6535_s27, 128  ;;  %p8524_p11 = scmp.lt.s32.totalorder %s6535_s27, %s6535_s27 }
 0x148   :  { %7117 = vmatprep.subr.bf16.mxu1 %v7116_v52  ;;  %7111 = vmatpush1.bf16.msra.mxu0 %v7110_v53  ;;  %v564_v63 = vld [vmem:[#allocation17 + $0x180] sm:$0xff]  ;;  %v7120_v1 = vpack.c.bf16 %v567_v61, %v551_v59  ;;  %v566_v4 = vld [vmem:[#allocation17 + $0x190] sm:$0xff]  ;;  %v521_v6 = vld [vmem:[#allocation17 + $0x28] sm:$0xff]  ;;  %p8520_p10 = scmp.ne.s32.totalorder %s6535_s27, %s8519_s30  ;;  %p8525_p12 = scmp.lt.s32.totalorder %s8519_s30, %s8519_s30 }
 0x149   :  { %v7114_v2 = vpack.c.bf16 %v564_v63, %v548_v62  ;;  %7113 = vmatprep.subr.bf16.mxu0 %v7112_v60  ;;  %v7122_v5 = vpack.c.bf16 %v566_v4, %v550_v3  ;;  %v555_v45 = vld [vmem:[#allocation17 + $0x138] sm:$0xff]  ;;  %v552_v50 = vld [vmem:[#allocation17 + $0x120] sm:$0xff]  ;;  %v554_v55 = vld [vmem:[#allocation17 + $0x130] sm:$0xff] }
 0x14a   :  { %v571_v46 = vld [vmem:[#allocation17 + $0x1b8] sm:$0xff]  ;;  %v568_v51 = vld [vmem:[#allocation17 + $0x1a0] sm:$0xff]  ;;  %v525_v57 = vld [vmem:[#allocation17 + $0x48] sm:$0xff]  ;;  %p8526_p13 = por %p8525_p12, %p8524_p11 }
 0x14b   :  { %v7136_v54 = vpack.c.bf16 %v571_v46, %v555_v45  ;;  %v541_v58 = vld [vmem:[#allocation17 + $0xc8] sm:$0xff]  ;;  %v527_v59 = vld [vmem:[#allocation17 + $0x58] sm:$0xff]  ;;  %v7130_v61 = vpack.c.bf16 %v568_v51, %v552_v50  ;;  %v524_v63 = vld [vmem:[#allocation17 + $0x40] sm:$0xff] }
 0x14c   :  { %7115 = vmatpush1.bf16.msra.mxu0 %v7114_v2  ;;  %v543_v60 = vld [vmem:[#allocation17 + $0xd8] sm:$0xff]  ;;  %v7140_v2 = vpack.c.bf16 %v541_v58, %v525_v57  ;;  %v526_v4 = vld [vmem:[#allocation17 + $0x50] sm:$0xff]  ;;  %v7257_v45 = vld [vmem:[#allocation26] ss:$8 sps:$4 sm:$0xff]   ;;  %p8527_p0 = pnand %p8526_p13, %p8520_p10 }
 0x14d   :  { %v7148_v3 = vpack.c.bf16 %v543_v60, %v527_v59  ;;  %v7260_v51 = vld [vmem:[#allocation26 + $0x10] ss:$8 sps:$4 sm:$0xff]   ;;  %v7274_v58 = vld [vmem:[#allocation26 + $0x34] ss:$8 sps:$4 sm:$0xff]   ;;  %v7277_v59 = vld [vmem:[#allocation26 + $0x824] ss:$8 sps:$4 sm:$0xff]  }
 0x14e   :  { %v7269_v57 = vld [vmem:[#allocation26 + $0x810] ss:$8 sps:$4 sm:$0xff]  }
 0x216   :  { %v338_v8 = vpop.f32.mrb[0].mxu0 }
 0x217   :  { %v339_v9 = vadd.f32 %v6551_v7, %v338_v8  ;;  %v7097_v10 = vpop.f32.mrb[1].mxu0  ;;  %v537_v7 = vld [vmem:[#allocation17 + $0xa8] sm:$0xff]  ;;  %v523_v8 = vld [vmem:[#allocation17 + $0x38] sm:$0xff] }
 0x218   :  { %v539_v10 = vld [vmem:[#allocation17 + $0xb8] sm:$0xff] }
 0x219   :  { %v345_v11 = vsel %vm344_vm2, %v339_v9, 0.0 }
 0x21a   :  { %v346_v12 = vrot.slane %v345_v11, 4 }
 0x21c   :  { %v347_v13 = vadd.f32 %v346_v12, %v345_v11  ;;  %v7132_v11 = vpack.c.bf16 %v539_v10, %v523_v8  ;;  %v559_v8 = vld [vmem:[#allocation17 + $0x158] sm:$0xff] }
 0x21e   :  { %v348_v14 = vrot.slane %v347_v13, 2 }
 0x220   :  { %v349_v15 = vadd.f32 %v348_v14, %v347_v13 }
 0x222   :  { %v350_v16 = vrot.slane %v349_v15, 1 }
 0x224   :  { %v351_v17 = vadd.f32 %v350_v16, %v349_v15 }
 0x226   :  { %v353_v18 = vmul.f32 0.25, %v351_v17 }
 0x228   :  { %v354_v19 = vsub.f32 %v339_v9, %v353_v18  ;;  %v7124_v9 = vpack.c.bf16 %v537_v7, %v521_v6  ;;  %v557_v6 = vld [vmem:[#allocation17 + $0x148] sm:$0xff] }
 0x229   :  { %v573_v7 = vld [vmem:[#allocation17 + $0x1c8] sm:$0xff] }
 0x22a   :  { %v355_v20 = vmul.f32 %v354_v19, %v354_v19  ;;  %7125 = vmatprep.subr.bf16.mxu0 %v7124_v9  ;;  %v575_v9 = vld [vmem:[#allocation17 + $0x1d8] sm:$0xff] }
 0x22c   :  { %v356_v21 = vsel %vm344_vm2, %v355_v20, 0.0 }
 0x22d   :  { %v357_v22 = vrot.slane %v356_v21, 4 }
 0x22f   :  { %v358_v23 = vadd.f32 %v357_v22, %v356_v21 }
 0x231   :  { %v359_v24 = vrot.slane %v358_v23, 2 }
 0x233   :  { %v360_v25 = vadd.f32 %v359_v24, %v358_v23 }
 0x235   :  { %v361_v26 = vrot.slane %v360_v25, 1 }
 0x237   :  { %v362_v27 = vadd.f32 %v361_v26, %v360_v25 }
 0x239   :  { %v363_v28 = vmul.f32 0.25, %v362_v27 }
 0x23b   :  { %v364_v29 = vadd.f32 1e-05, %v363_v28 }
 0x23d   :  { %8025 = vrsqrt.f32 %v364_v29 }
 0x247   :  { %v8026_v30 = vpop.eup %8025 }
 0x248   :  { %v366_v32 = vmul.f32 %v8026_v30, %v354_v19 }
 0x24a   :  { %v373_v34 = vmul.f32 %v6553_v31, %v366_v32 }
 0x24c   :  { %v380_v35 = vadd.f32 %v6554_v33, %v373_v34 }
 0x24e   :  { %v381_v36 = vmax.f32 %v380_v35, 0.0  ;;  %v6558_v35 = vld [vmem:[#allocation14] ss:$0 sm:$0xff] }
 0x250   :  { %7103 = vmatmul.mubr.msk.f32.vlgmr.msra.gmra.mrb[0].mxu1 %vm391_vm3, %v381_v36 }
 0x251   :  { %803 = vmatprep.mubr.f32.mxu1 %v8581_v0  ;;  %7119 = vmatpush1.bf16.msra.mxu1 %v7118_v56  ;;  %v570_v56 = vld [vmem:[#allocation17 + $0x1b0] sm:$0xff] }
 0x252   :  { %7121 = vmatprep.subr.bf16.mxu1 %v7120_v1  ;;  %v7138_v62 = vpack.c.bf16 %v570_v56, %v554_v55  ;;  %v540_v1 = vld [vmem:[#allocation17 + $0xc0] sm:$0xff]  ;;  %v7271_v55 = vld [vmem:[#allocation26 + $0x814] ss:$8 sps:$4 sm:$0xff]  }
 0x253   :  { %v7142_v10 = vpack.c.bf16 %v540_v1, %v524_v63  ;;  %v7266_v56 = vld [vmem:[#allocation26 + $0x20] ss:$8 sps:$4 sm:$0xff]  }
 0x255   :  { %7123 = vmatpush1.bf16.msra.mxu1 %v7122_v5  ;;  %v542_v5 = vld [vmem:[#allocation17 + $0xd0] sm:$0xff] }
 0x256   :  { %7133 = vmatprep.subr.bf16.mxu1 %v7132_v11  ;;  %v7150_v11 = vpack.c.bf16 %v542_v5, %v526_v4 }
 0x323   :  { %v461_v38 = vpop.f32.mrb[0].mxu1 }
 0x324   :  { %v462_v39 = vadd.f32 %v6555_v37, %v461_v38  ;;  %v7104_v40 = vpop.f32.mrb[1].mxu1  ;;  %v6559_v37 = vld [vmem:[#allocation16] ss:$0 sm:$0xff]  ;;  %v520_v38 = vld [vmem:[#allocation17 + $0x20] sm:$0xff] }
 0x326   :  { %v6557_v41 = vmul.f32 -1.442695, %v462_v39  ;;  %v465_v12 = vmax.f32 %v462_v39, 0.0  ;;  %v536_v39 = vld [vmem:[#allocation17 + $0xa0] sm:$0xff] }
 0x327   :  { %v7126_v48 = vpack.c.bf16 %v536_v39, %v520_v38  ;;  %v576_v39 = vld [vmem:[#allocation17 + $0x1e0] sm:$0xff] }
 0x328   :  { %8027 = vpow2.f32 %v6557_v41  ;;  %v522_v41 = vld [vmem:[#allocation17 + $0x30] sm:$0xff] }
 0x332   :  { %v8028_v42 = vpop.eup %8027 }
 0x333   :  { %v469_v43 = vadd.f32 1.0, %v8028_v42  ;;  %v538_v42 = vld [vmem:[#allocation17 + $0xb0] sm:$0xff] }
 0x334   :  { %v7134_v49 = vpack.c.bf16 %v538_v42, %v522_v41  ;;  %v578_v41 = vld [vmem:[#allocation17 + $0x1f0] sm:$0xff] }
 0x335   :  { %8029 = vrcp.f32 %v469_v43  ;;  %v553_v43 = vld [vmem:[#allocation17 + $0x128] sm:$0xff] }
 0x33f   :  { %v8030_v44 = vpop.eup %8029 }
 0x340   :  { %473 = vrot.lane.b32.xlu0 %v8030_v44, %s8584_s16  ;;  %v569_v44 = vld [vmem:[#allocation17 + $0x1a8] sm:$0xff] }
 0x341   :  { %v7128_v53 = vpack.c.bf16 %v569_v44, %v553_v43  ;;  %v7259_v44 = vld [vmem:[#allocation26 + $0x4] ss:$8 sps:$4 sm:$0xff]  }
 0x3b2   :  { %v474_v13 = vpop.permute.xlu0 %473 }
 0x3b3   :  { %v476_v14 = vmul.f32 %v474_v13, %v465_v12  ;;  %v556_v12 = vld [vmem:[#allocation17 + $0x140] sm:$0xff] }
 0x3b4   :  { %v572_v13 = vld [vmem:[#allocation17 + $0x1c0] sm:$0xff] }
 0x3b5   :  { %v480_v15 = vsel %vm479_vm4, %v476_v14, 0.0 }
 0x3b6   :  { %v481_v16 = vrot.slane %v480_v15, 4 }
 0x3b8   :  { %v482_v17 = vadd.f32 %v481_v16, %v480_v15  ;;  %v7152_v15 = vpack.c.bf16 %v575_v9, %v559_v8  ;;  %v558_v16 = vld [vmem:[#allocation17 + $0x150] sm:$0xff]  ;;  %v7278_v9 = vld [vmem:[#allocation26 + $0x40] ss:$8 sps:$4 sm:$0xff]  }
 0x3ba   :  { %v483_v18 = vrot.slane %v482_v17, 2 }
 0x3bc   :  { %v484_v19 = vadd.f32 %v483_v18, %v482_v17  ;;  %v574_v17 = vld [vmem:[#allocation17 + $0x1d0] sm:$0xff]  ;;  %v529_v18 = vld [vmem:[#allocation17 + $0x68] sm:$0xff] }
 0x3be   :  { %v485_v20 = vrot.slane %v484_v19, 1 }
 0x3c0   :  { %v486_v21 = vadd.f32 %v485_v20, %v484_v19  ;;  %v545_v19 = vld [vmem:[#allocation17 + $0xe8] sm:$0xff]  ;;  %v531_v20 = vld [vmem:[#allocation17 + $0x78] sm:$0xff] }
 0x3c2   :  { %v487_v22 = vmul.f32 0.25, %v486_v21  ;;  %v547_v21 = vld [vmem:[#allocation17 + $0xf8] sm:$0xff] }
 0x3c4   :  { %v488_v23 = vsub.f32 %v476_v14, %v487_v22  ;;  %v7144_v14 = vpack.c.bf16 %v573_v7, %v557_v6  ;;  %v7146_v22 = vpack.c.bf16 %v572_v13, %v556_v12  ;;  %v8932_v6 = vld [vmem:[#allocation19 + $0x8] sm:$0xff]  ;;  %v7286_v13 = vld [vmem:[#allocation26 + $0x54] ss:$8 sps:$4 sm:$0xff]  }
 0x3c6   :  { %v489_v24 = vmul.f32 %v488_v23, %v488_v23 }
 0x3c8   :  { %v490_v25 = vsel %vm479_vm4, %v489_v24, 0.0  ;;  %v528_v24 = vld [vmem:[#allocation17 + $0x60] sm:$0xff] }
 0x3c9   :  { %v491_v26 = vrot.slane %v490_v25, 4 }
 0x3cb   :  { %v492_v27 = vadd.f32 %v491_v26, %v490_v25  ;;  %v544_v25 = vld [vmem:[#allocation17 + $0xe0] sm:$0xff]  ;;  %v7156_v26 = vpack.c.bf16 %v545_v19, %v529_v18  ;;  %v7284_v19 = vld [vmem:[#allocation26 + $0x50] ss:$8 sps:$4 sm:$0xff]  }
 0x3cd   :  { %v493_v28 = vrot.slane %v492_v27, 2 }
 0x3cf   :  { %v494_v29 = vadd.f32 %v493_v28, %v492_v27  ;;  %v7164_v27 = vpack.c.bf16 %v547_v21, %v531_v20  ;;  %v530_v28 = vld [vmem:[#allocation17 + $0x70] sm:$0xff]  ;;  %v7287_v20 = vld [vmem:[#allocation26 + $0x840] ss:$8 sps:$4 sm:$0xff]  }
 0x3d1   :  { %v495_v30 = vrot.slane %v494_v29, 1 }
 0x3d3   :  { %v496_v31 = vadd.f32 %v495_v30, %v494_v29  ;;  %v546_v29 = vld [vmem:[#allocation17 + $0xf0] sm:$0xff]  ;;  %v561_v30 = vld [vmem:[#allocation17 + $0x168] sm:$0xff] }
 0x3d5   :  { %v497_v32 = vmul.f32 0.25, %v496_v31  ;;  %v577_v31 = vld [vmem:[#allocation17 + $0x1e8] sm:$0xff] }
 0x3d7   :  { %v498_v33 = vadd.f32 1e-05, %v497_v32  ;;  %v563_v32 = vld [vmem:[#allocation17 + $0x178] sm:$0xff] }
 0x3d9   :  { %8031 = vrsqrt.f32 %v498_v33  ;;  %v579_v33 = vld [vmem:[#allocation17 + $0x1f8] sm:$0xff] }
 0x3da   :  { %v7168_v38 = vpack.c.bf16 %v579_v33, %v563_v32 }
 0x3e3   :  { %v8032_v34 = vpop.eup %8031 }
 0x3e4   :  { %v500_v36 = vmul.f32 %v8032_v34, %v488_v23  ;;  %v7154_v23 = vpack.c.bf16 %v574_v17, %v558_v16  ;;  %v7158_v34 = vpack.c.bf16 %v544_v25, %v528_v24  ;;  %v7295_v24 = vld [vmem:[#allocation26 + $0x854] ss:$8 sps:$4 sm:$0xff]  }
 0x3e6   :  { %v507_v40 = vmul.f32 %v6558_v35, %v500_v36  ;;  %v7166_v35 = vpack.c.bf16 %v546_v29, %v530_v28  ;;  %v560_v36 = vld [vmem:[#allocation17 + $0x160] sm:$0xff] }
 0x3e7   :  { %v7162_v42 = vpack.c.bf16 %v576_v39, %v560_v36  ;;  %v7293_v36 = vld [vmem:[#allocation26 + $0x850] ss:$8 sps:$4 sm:$0xff]   ;;  %v7298_v39 = vld [vmem:[#allocation26 + $0x74] ss:$8 sps:$4 sm:$0xff]  }
 0x3e8   :  { %v514_v47 = vadd.f32 %v6559_v37, %v507_v40  ;;  %v7160_v37 = vpack.c.bf16 %v577_v31, %v561_v30  ;;  %v562_v40 = vld [vmem:[#allocation17 + $0x170] sm:$0xff] }
 0x3e9   :  { %v7170_v43 = vpack.c.bf16 %v578_v41, %v562_v40 }
 0x3ea   :  { %v8892_v52 = vmax.f32 %v514_v47, 0.0 }
 0x3ec   :  { %6560 = vmatmul.mubr.msk.f32.vlgmr.msra.gmra.mrb[2].mxu0 %vm664_vm5, %v8892_v52  ;;  %6561 = vmatmul.mubr.msk.f32.vlgmr.msra.gmra.mrb[2].mxu1 %vm664_vm5, %v8892_v52 }
 0x3ed   :  { %7127 = vmatpush1.bf16.msra.mxu0 %v7126_v48  ;;  %7135 = vmatpush1.bf16.msra.mxu1 %v7134_v49  ;;  %v7262_v48 = vld [vmem:[#allocation26 + $0x14] ss:$8 sps:$4 sm:$0xff]   ;;  %v7265_v49 = vld [vmem:[#allocation26 + $0x804] ss:$8 sps:$4 sm:$0xff]  }
 0x3ee   :  { %7129 = vmatprep.subr.bf16.mxu0 %v7128_v53  ;;  %7137 = vmatprep.subr.bf16.mxu1 %v7136_v54  ;;  %v7263_v53 = vld [vmem:[#allocation26 + $0x800] ss:$8 sps:$4 sm:$0xff]   ;;  %v584_v54 = vlaneseq }
 0x3ef   :  { %874 = vmatprep.mubr.f32.mxu0 %v8581_v0  ;;  %945 = vmatprep.mubr.f32.mxu1 %v8581_v0 }
 0x3f0   :  { %v585_v60 = vshrl.u32 %v584_v54, 7 }
 0x3f1   :  { %7131 = vmatpush1.bf16.msra.mxu0 %v7130_v61  ;;  %7139 = vmatpush1.bf16.msra.mxu1 %v7138_v62  ;;  %v7272_v61 = vld [vmem:[#allocation26 + $0x30] ss:$8 sps:$4 sm:$0xff]   ;;  %v7275_v62 = vld [vmem:[#allocation26 + $0x820] ss:$8 sps:$4 sm:$0xff]  }
 0x3f2   :  { %7141 = vmatprep.subr.bf16.mxu0 %v7140_v2  ;;  %7149 = vmatprep.subr.bf16.mxu1 %v7148_v3  ;;  %v7280_v2 = vld [vmem:[#allocation26 + $0x44] ss:$8 sps:$4 sm:$0xff]   ;;  %v7283_v3 = vld [vmem:[#allocation26 + $0x834] ss:$8 sps:$4 sm:$0xff]   ;;  %v8934_v7 = vsub.s32 0, %v585_v60  ;;  %v8936_v8 = vsub.s32 2, %v585_v60 }
 0x3f3   :  { %v8940_v12 = vsub.s32 3, %v585_v60  ;;  %v8950_v25 = vsub.s32 4, %v585_v60  ;;  %v8954_v31 = vsub.s32 5, %v585_v60  ;;  %v8956_v32 = vsub.s32 7, %v585_v60 }
 0x3f4   :  { %6562 = vmatmul.mubr.msk.f32.vlgmr.msra.gmra.mrb[4].mxu0 %vm664_vm5, %v8892_v52  ;;  %6563 = vmatmul.mubr.msk.f32.vlgmr.msra.gmra.mrb[4].mxu1 %vm664_vm5, %v8892_v52  ;;  %v627_v16 = vrot.slane %v8932_v6, %v8936_v8 }
 0x3f5   :  { %7143 = vmatpush1.bf16.msra.mxu0 %v7142_v10  ;;  %7151 = vmatpush1.bf16.msra.mxu1 %v7150_v11  ;;  %v7281_v10 = vld [vmem:[#allocation26 + $0x830] ss:$8 sps:$4 sm:$0xff]   ;;  %v8938_v11 = vsub.s32 1, %v585_v60  ;;  %v631_v18 = vrot.slane %v8932_v6, %v8940_v12 }
 0x3f6   :  { %7145 = vmatprep.subr.bf16.mxu0 %v7144_v14  ;;  %7153 = vmatprep.subr.bf16.mxu1 %v7152_v15  ;;  %v7289_v14 = vld [vmem:[#allocation26 + $0x844] ss:$8 sps:$4 sm:$0xff]   ;;  %v619_v15 = vrot.slane %v8932_v6, %v8934_v7 }
 0x3f7   :  { %1016 = vmatprep.mubr.f32.mxu0 %v8581_v0  ;;  %1087 = vmatprep.mubr.f32.mxu1 %v8581_v0  ;;  %v623_v17 = vrot.slane %v8932_v6, %v8938_v11 }
 0x3f9   :  { %7147 = vmatpush1.bf16.msra.mxu0 %v7146_v22  ;;  %7155 = vmatpush1.bf16.msra.mxu1 %v7154_v23  ;;  %v7292_v23 = vld [vmem:[#allocation26 + $0x64] ss:$8 sps:$4 sm:$0xff]  }
 0x3fa   :  { %7157 = vmatprep.subr.bf16.mxu0 %v7156_v26  ;;  %7165 = vmatprep.subr.bf16.mxu1 %v7164_v27  ;;  %v8952_v26 = vsub.s32 6, %v585_v60 }
 0x3fc   :  { %6564 = vmatmul.mubr.msk.f32.vlgmr.msra.gmra.mrb[6].mxu0 %vm664_vm5, %v8892_v52  ;;  %6565 = vmatmul.mubr.msk.f32.vlgmr.msra.gmra.mrb[6].mxu1 %vm664_vm5, %v8892_v52 }
 0x3fd   :  { %7159 = vmatpush1.bf16.msra.mxu0 %v7158_v34  ;;  %7167 = vmatpush1.bf16.msra.mxu1 %v7166_v35  ;;  %v7290_v35 = vld [vmem:[#allocation26 + $0x60] ss:$8 sps:$4 sm:$0xff]  }
 0x3fe   :  { %7161 = vmatprep.subr.bf16.mxu0 %v7160_v37  ;;  %7169 = vmatprep.subr.bf16.mxu1 %v7168_v38 }
 0x3ff   :  { %1158 = vmatprep.mubr.f32.mxu0 %v8581_v0  ;;  %1229 = vmatprep.mubr.f32.mxu1 %v8581_v0 }
 0x401   :  { %7163 = vmatpush1.bf16.msra.mxu0 %v7162_v42  ;;  %7171 = vmatpush1.bf16.msra.mxu1 %v7170_v43  ;;  %v7301_v42 = vld [vmem:[#allocation26 + $0x864] ss:$8 sps:$4 sm:$0xff]   ;;  %v635_v43 = vrot.slane %v8932_v6, %v8950_v25 }
 0x402   :  { %5865 = vmatprep.subr.bf16.mxu1 %v7259_v44  ;;  %6193 = vmatprep.subr.bf16.mxu0 %v7265_v49  ;;  %v643_v44 = vrot.slane %v8932_v6, %v8952_v26  ;;  %v7296_v49 = vld [vmem:[#allocation26 + $0x70] ss:$8 sps:$4 sm:$0xff]  }
 0x404   :  { %6566 = vmatmul.mubr.msk.f32.vlgmr.msra.gmra.mrb[8].mxu0 %vm664_vm5, %v8892_v52  ;;  %6567 = vmatmul.mubr.msk.f32.vlgmr.msra.gmra.mrb[8].mxu1 %vm664_vm5, %v8892_v52  ;;  %v7268_v52 = vld [vmem:[#allocation26 + $0x24] ss:$8 sps:$4 sm:$0xff]  }
 0x405   :  { %5866 = vmatpush1.bf16.msra.mxu1 %v7257_v45  ;;  %6194 = vmatpush1.bf16.msra.mxu0 %v7263_v53  ;;  %v639_v45 = vrot.slane %v8932_v6, %v8954_v31 }
 0x406   :  { %5867 = vmatprep.subr.bf16.mxu1 %v7262_v48  ;;  %6195 = vmatprep.subr.bf16.mxu0 %v7271_v55  ;;  %v647_v48 = vrot.slane %v8932_v6, %v8956_v32  ;;  %v7307_v55 = vld [vmem:[#allocation26 + $0x874] ss:$8 sps:$4 sm:$0xff]  }
 0x409   :  { %5868 = vmatpush1.bf16.msra.mxu1 %v7260_v51  ;;  %6196 = vmatpush1.bf16.msra.mxu0 %v7269_v57  ;;  %v7299_v51 = vld [vmem:[#allocation26 + $0x860] ss:$8 sps:$4 sm:$0xff]  }
 0x40a   :  { %5869 = vmatprep.subr.bf16.mxu1 %v7268_v52  ;;  %6197 = vmatprep.subr.bf16.mxu0 %v7277_v59  ;;  %v7304_v52 = vld [vmem:[#allocation26 + $0x84] ss:$8 sps:$4 sm:$0xff]  }
 0x40d   :  { %5870 = vmatpush1.bf16.msra.mxu1 %v7266_v56  ;;  %6198 = vmatpush1.bf16.msra.mxu0 %v7275_v62  ;;  %v7302_v62 = vld [vmem:[#allocation26 + $0x80] ss:$8 sps:$4 sm:$0xff]  }
 0x40e   :  { %5871 = vmatprep.subr.bf16.mxu1 %v7274_v58  ;;  %6199 = vmatprep.subr.bf16.mxu0 %v7283_v3 }
 0x411   :  { %5872 = vmatpush1.bf16.msra.mxu1 %v7272_v61  ;;  %6200 = vmatpush1.bf16.msra.mxu0 %v7281_v10 }
 0x412   :  { %5873 = vmatprep.subr.bf16.mxu1 %v7280_v2  ;;  %6201 = vmatprep.subr.bf16.mxu0 %v7289_v14  ;;  %v7305_v2 = vld [vmem:[#allocation26 + $0x870] ss:$8 sps:$4 sm:$0xff]   ;;  %v7313_v14 = vld [vmem:[#allocation26 + $0x884] ss:$8 sps:$4 sm:$0xff]  }
 0x415   :  { %5874 = vmatpush1.bf16.msra.mxu1 %v7278_v9  ;;  %6202 = vmatpush1.bf16.msra.mxu0 %v7287_v20  ;;  %v7310_v9 = vld [vmem:[#allocation26 + $0x94] ss:$8 sps:$4 sm:$0xff]  }
 0x416   :  { %5875 = vmatprep.subr.bf16.mxu1 %v7286_v13  ;;  %6203 = vmatprep.subr.bf16.mxu0 %v7295_v24 }
 0x419   :  { %5876 = vmatpush1.bf16.msra.mxu1 %v7284_v19  ;;  %6204 = vmatpush1.bf16.msra.mxu0 %v7293_v36  ;;  %v8966_v19 = vld [vmem:[#allocation19] sm:$0xff]  ;;  %v7322_v36 = vld [vmem:[#allocation26 + $0xb4] ss:$8 sps:$4 sm:$0xff]  }
 0x41a   :  { %5877 = vmatprep.subr.bf16.mxu1 %v7292_v23  ;;  %6205 = vmatprep.subr.bf16.mxu0 %v7301_v42  ;;  %v7320_v42 = vld [vmem:[#allocation26 + $0xb0] ss:$8 sps:$4 sm:$0xff]  }
 0x41d   :  { %5878 = vmatpush1.bf16.msra.mxu1 %v7290_v35  ;;  %6206 = vmatpush1.bf16.msra.mxu0 %v7299_v51  ;;  %v595_v35 = vrot.slane %v8966_v19, %v8936_v8  ;;  %v7331_v51 = vld [vmem:[#allocation26 + $0x8b4] ss:$8 sps:$4 sm:$0xff]  }
 0x41e   :  { %5879 = vmatprep.subr.bf16.mxu1 %v7298_v39  ;;  %6207 = vmatprep.subr.bf16.mxu0 %v7307_v55  ;;  %v599_v39 = vrot.slane %v8966_v19, %v8940_v12 }
 0x421   :  { %5880 = vmatpush1.bf16.msra.mxu1 %v7296_v49  ;;  %6208 = vmatpush1.bf16.msra.mxu0 %v7305_v2  ;;  %v7328_v49 = vld [vmem:[#allocation26 + $0xc4] ss:$8 sps:$4 sm:$0xff]  }
 0x422   :  { %5881 = vmatprep.subr.bf16.mxu1 %v7304_v52  ;;  %6209 = vmatprep.subr.bf16.mxu0 %v7313_v14  ;;  %v7337_v2 = vld [vmem:[#allocation26 + $0x8c4] ss:$8 sps:$4 sm:$0xff]  }
 0x425   :  { %5882 = vmatpush1.bf16.msra.mxu1 %v7302_v62 }
 0x426   :  { %5883 = vmatprep.subr.bf16.mxu1 %v7310_v9  ;;  %v607_v9 = vrot.slane %v8966_v19, %v8954_v31 }
 0x4bf   :  { %v8916_v46 = vpop.f32.mrb[2].mxu0  ;;  %v8918_v47 = vpop.f32.mrb[2].mxu1 }
 0x4c0   :  { %v8920_v50 = vpop.f32.mrb[3].mxu0  ;;  %v8922_v0 = vpop.f32.mrb[3].mxu1 }
 0x4c7   :  { %v8924_v63 = vpop.f32.mrb[4].mxu0  ;;  %v8926_v1 = vpop.f32.mrb[4].mxu1 }
 0x4c8   :  { %v8928_v4 = vpop.f32.mrb[5].mxu0  ;;  %v8930_v5 = vpop.f32.mrb[5].mxu1 }
 0x4cf   :  { %v1018_v21 = vpop.f32.mrb[6].mxu0  ;;  %v1089_v22 = vpop.f32.mrb[6].mxu1 }
 0x4d0   :  { %v1019_v27 = vadd.f32 %v1018_v21, %v619_v15  ;;  %v1090_v28 = vadd.f32 %v1089_v22, %v627_v16  ;;  %v1020_v29 = vpop.f32.mrb[7].mxu0  ;;  %v1091_v30 = vpop.f32.mrb[7].mxu1  ;;  %v7308_v16 = vld [vmem:[#allocation26 + $0x90] ss:$8 sps:$4 sm:$0xff]   ;;  %v7316_v21 = vld [vmem:[#allocation26 + $0xa4] ss:$8 sps:$4 sm:$0xff]  }
 0x4d1   :  { %v1021_v33 = vadd.f32 %v1020_v29, %v623_v17  ;;  %v1092_v34 = vadd.f32 %v1091_v30, %v631_v18  ;;  %v7311_v17 = vld [vmem:[#allocation26 + $0x880] ss:$8 sps:$4 sm:$0xff]   ;;  %v7319_v22 = vld [vmem:[#allocation26 + $0x894] ss:$8 sps:$4 sm:$0xff]   ;;  %v587_v29 = vrot.slane %v8966_v19, %v8934_v7  ;;  %5884 = vmatpush1.bf16.msra.mxu1 %v7308_v16 }
 0x4d2   :  { %v6568_v37 = vmul.f32 -1.442695, %v1019_v27  ;;  %v6570_v38 = vmul.f32 -1.442695, %v1090_v28  ;;  %6210 = vmatpush1.bf16.msra.mxu0 %v7311_v17  ;;  %5885 = vmatprep.subr.bf16.mxu1 %v7316_v21 }
 0x4d3   :  { %v6569_v40 = vmul.f32 -1.442695, %v1021_v33  ;;  %v6571_v41 = vmul.f32 -1.442695, %v1092_v34  ;;  %v7314_v33 = vld [vmem:[#allocation26 + $0xa0] ss:$8 sps:$4 sm:$0xff]   ;;  %6211 = vmatprep.subr.bf16.mxu0 %v7319_v22 }
 0x4d4   :  { %8033 = vpow2.f32 %v6568_v37  ;;  %v7317_v34 = vld [vmem:[#allocation26 + $0x890] ss:$8 sps:$4 sm:$0xff]   ;;  %v7325_v37 = vld [vmem:[#allocation26 + $0x8a4] ss:$8 sps:$4 sm:$0xff]  }
 0x4d5   :  { %8035 = vpow2.f32 %v6570_v38  ;;  %v591_v38 = vrot.slane %v8966_v19, %v8938_v11  ;;  %5886 = vmatpush1.bf16.msra.mxu1 %v7314_v33  ;;  %v7332_v22 = vld [vmem:[#allocation26 + $0xd0] ss:$8 sps:$4 sm:$0xff]  }
 0x4d6   :  { %8037 = vpow2.f32 %v6569_v40  ;;  %6212 = vmatpush1.bf16.msra.mxu0 %v7317_v34  ;;  %5887 = vmatprep.subr.bf16.mxu1 %v7322_v36 }
 0x4d7   :  { %8039 = vpow2.f32 %v6571_v41  ;;  %v1160_v53 = vpop.f32.mrb[8].mxu0  ;;  %v1231_v54 = vpop.f32.mrb[8].mxu1  ;;  %v735_v41 = vadd.f32 %v8916_v46, %v587_v29  ;;  %6213 = vmatprep.subr.bf16.mxu0 %v7325_v37  ;;  %v7343_v29 = vld [vmem:[#allocation26 + $0x8d4] ss:$8 sps:$4 sm:$0xff]  }
 0x4d8   :  { %v1161_v56 = vadd.f32 %v1160_v53, %v635_v43  ;;  %v1232_v57 = vadd.f32 %v1231_v54, %v643_v44  ;;  %v1162_v58 = vpop.f32.mrb[9].mxu0  ;;  %v1233_v59 = vpop.f32.mrb[9].mxu1  ;;  %v7323_v43 = vld [vmem:[#allocation26 + $0x8a0] ss:$8 sps:$4 sm:$0xff]   ;;  %v737_v54 = vadd.f32 %v8920_v50, %v591_v38  ;;  %v611_v50 = vrot.slane %v8966_v19, %v8952_v26 }
 0x4d9   :  { %v1163_v60 = vadd.f32 %v1162_v58, %v639_v45  ;;  %v1234_v61 = vadd.f32 %v1233_v59, %v647_v48  ;;  %v806_v45 = vadd.f32 %v8918_v47, %v595_v35  ;;  %v603_v58 = vrot.slane %v8966_v19, %v8950_v25  ;;  %5888 = vmatpush1.bf16.msra.mxu1 %v7320_v42  ;;  %v7326_v59 = vld [vmem:[#allocation26 + $0xc0] ss:$8 sps:$4 sm:$0xff]   ;;  %v7341_v42 = vld [vmem:[#allocation26 + $0x8d0] ss:$8 sps:$4 sm:$0xff]  }
 0x4da   :  { %v6572_v3 = vmul.f32 -1.442695, %v1161_v56  ;;  %v6574_v6 = vmul.f32 -1.442695, %v1232_v57  ;;  %v808_v56 = vadd.f32 %v8922_v0, %v599_v39  ;;  %v1236_v57 = vmax.f32 %v735_v41, 0.0  ;;  %6214 = vmatpush1.bf16.msra.mxu0 %v7323_v43  ;;  %5889 = vmatprep.subr.bf16.mxu1 %v7328_v49 }
 0x4db   :  { %v6573_v10 = vmul.f32 -1.442695, %v1163_v60  ;;  %v6575_v13 = vmul.f32 -1.442695, %v1234_v61  ;;  %v7329_v60 = vld [vmem:[#allocation26 + $0x8b0] ss:$8 sps:$4 sm:$0xff]   ;;  %6215 = vmatprep.subr.bf16.mxu0 %v7331_v51 }
 0x4dc   :  { %8041 = vpow2.f32 %v6572_v3  ;;  %v1238_v62 = vmax.f32 %v806_v45, 0.0  ;;  %v7334_v0 = vld [vmem:[#allocation26 + $0xd4] ss:$8 sps:$4 sm:$0xff]   ;;  %v1239_v14 = vmax.f32 %v808_v56, 0.0  ;;  %v7338_v41 = vld [vmem:[#allocation26 + $0xe0] ss:$8 sps:$4 sm:$0xff]  }
 0x4dd   :  { %8043 = vpow2.f32 %v6574_v6  ;;  %v1237_v6 = vmax.f32 %v737_v54, 0.0  ;;  %5890 = vmatpush1.bf16.msra.mxu1 %v7326_v59 }
 0x4de   :  { %v8034_v15 = vpop.eup %8033  ;;  %8045 = vpow2.f32 %v6573_v10  ;;  %6216 = vmatpush1.bf16.msra.mxu0 %v7329_v60  ;;  %5891 = vmatprep.subr.bf16.mxu1 %v7334_v0 }
 0x4df   :  { %v8036_v18 = vpop.eup %8035  ;;  %v1268_v20 = vadd.f32 1.0, %v8034_v15  ;;  %8047 = vpow2.f32 %v6575_v13  ;;  %v615_v15 = vrot.slane %v8966_v19, %v8956_v32  ;;  %6217 = vmatprep.subr.bf16.mxu0 %v7337_v2 }
 0x4e0   :  { %v8038_v23 = vpop.eup %8037  ;;  %v1270_v24 = vadd.f32 1.0, %v8036_v18  ;;  %v877_v18 = vadd.f32 %v8924_v63, %v603_v58  ;;  %v7340_v63 = vld [vmem:[#allocation26 + $0xe4] ss:$8 sps:$4 sm:$0xff]  }
 0x4e1   :  { %v8040_v27 = vpop.eup %8039  ;;  %8049 = vrcp.f32 %v1268_v20  ;;  %v1269_v28 = vadd.f32 1.0, %v8038_v23  ;;  %v7335_v23 = vld [vmem:[#allocation26 + $0x8c0] ss:$8 sps:$4 sm:$0xff]   ;;  %v950_v35 = vadd.f32 %v8930_v5, %v615_v15  ;;  %5892 = vmatpush1.bf16.msra.mxu1 %v7332_v22  ;;  %v7349_v5 = vld [vmem:[#allocation26 + $0x8e4] ss:$8 sps:$4 sm:$0xff]  }
 0x4e2   :  { %8051 = vrcp.f32 %v1270_v24  ;;  %v1271_v30 = vadd.f32 1.0, %v8040_v27  ;;  %v948_v24 = vadd.f32 %v8926_v1, %v611_v50  ;;  %v1240_v38 = vmax.f32 %v877_v18, 0.0  ;;  %6218 = vmatpush1.bf16.msra.mxu0 %v7335_v23  ;;  %5893 = vmatprep.subr.bf16.mxu1 %v7340_v63  ;;  %v7347_v50 = vld [vmem:[#allocation26 + $0x8e0] ss:$8 sps:$4 sm:$0xff]  }
 0x4e3   :  { %8053 = vrcp.f32 %v1269_v28  ;;  %6219 = vmatprep.subr.bf16.mxu0 %v7343_v29  ;;  %v1243_v56 = vmax.f32 %v950_v35, 0.0  ;;  %v7352_v35 = vld [vmem:[#allocation26 + $0x104] ss:$8 sps:$4 sm:$0xff]  }
 0x4e4   :  { %8055 = vrcp.f32 %v1271_v30  ;;  %v879_v30 = vadd.f32 %v8928_v4, %v607_v9  ;;  %v1242_v4 = vmax.f32 %v948_v24, 0.0 }
 0x4e5   :  { %5894 = vmatpush1.bf16.msra.mxu1 %v7338_v41 }
 0x4e6   :  { %v8042_v40 = vpop.eup %8041  ;;  %v1241_v51 = vmax.f32 %v879_v30, 0.0  ;;  %6220 = vmatpush1.bf16.msra.mxu0 %v7341_v42 }
 0x4e7   :  { %v8044_v44 = vpop.eup %8043  ;;  %v1272_v48 = vadd.f32 1.0, %v8042_v40  ;;  %6221 = vmatprep.subr.bf16.mxu0 %v7349_v5 }
 0x4e8   :  { %v8046_v53 = vpop.eup %8045  ;;  %v1274_v52 = vadd.f32 1.0, %v8044_v44 }
 0x4e9   :  { %v8048_v55 = vpop.eup %8047  ;;  %8057 = vrcp.f32 %v1272_v48  ;;  %v1273_v46 = vadd.f32 1.0, %v8046_v53  ;;  %v7346_v48 = vld [vmem:[#allocation26 + $0xf4] ss:$8 sps:$4 sm:$0xff]  }
 0x4ea   :  { %8059 = vrcp.f32 %v1274_v52  ;;  %v1275_v47 = vadd.f32 1.0, %v8048_v55  ;;  %5895 = vmatprep.subr.bf16.mxu1 %v7346_v48  ;;  %6222 = vmatpush1.bf16.msra.mxu0 %v7347_v50 }
 0x4eb   :  { %v8050_v61 = vpop.eup %8049  ;;  %8061 = vrcp.f32 %v1273_v46 }
 0x4ec   :  { %v8052_v3 = vpop.eup %8051  ;;  %v8986_v10 = vmul.f32 %v8050_v61, %v1236_v57  ;;  %8063 = vrcp.f32 %v1275_v47 }
 0x4ed   :  { %v8054_v13 = vpop.eup %8053  ;;  %v8990_v16 = vmul.f32 %v8052_v3, %v1238_v62  ;;  %v7344_v62 = vld [vmem:[#allocation26 + $0xf0] ss:$8 sps:$4 sm:$0xff]  }
 0x4ee   :  { %v8056_v17 = vpop.eup %8055  ;;  %v1301_v20 = vsel %vm1300_vm6, %v8986_v10, 0.0  ;;  %v8995_v21 = vmul.f32 %v8054_v13, %v1237_v6  ;;  %5896 = vmatpush1.bf16.msra.mxu1 %v7344_v62 }
 0x4ef   :  { %v1302_v27 = vrot.slane %v1301_v20, 4  ;;  %v1315_v19 = vsel %vm1300_vm6, %v8990_v16, 0.0  ;;  %v9000_v28 = vmul.f32 %v8056_v17, %v1239_v14  ;;  %5906 = vmatprep.subr.bf16.mxu1 %v7352_v35 }
 0x4f0   :  { %v1316_v33 = vrot.slane %v1315_v19, 4  ;;  %v1308_v34 = vsel %vm1300_vm6, %v8995_v21, 0.0 }
 0x4f1   :  { %v1303_v36 = vadd.f32 %v1302_v27, %v1301_v20  ;;  %v1309_v1 = vrot.slane %v1308_v34, 4  ;;  %v1322_v37 = vsel %vm1300_vm6, %v9000_v28, 0.0 }
 0x4f2   :  { %v1317_v39 = vadd.f32 %v1316_v33, %v1315_v19  ;;  %v1323_v40 = vrot.slane %v1322_v37, 4 }
 0x4f3   :  { %v8058_v43 = vpop.eup %8057  ;;  %v1304_v44 = vrot.slane %v1303_v36, 2  ;;  %v1310_v45 = vadd.f32 %v1309_v1, %v1308_v34 }
 0x4f4   :  { %v8060_v49 = vpop.eup %8059  ;;  %v1318_v53 = vrot.slane %v1317_v39, 2  ;;  %v1324_v54 = vadd.f32 %v1323_v40, %v1322_v37  ;;  %v9008_v52 = vmul.f32 %v8058_v43, %v1240_v38 }
 0x4f5   :  { %v8062_v55 = vpop.eup %8061  ;;  %v1305_v46 = vadd.f32 %v1304_v44, %v1303_v36  ;;  %v1311_v57 = vrot.slane %v1310_v45, 2  ;;  %v9010_v58 = vmul.f32 %v8060_v49, %v1242_v4  ;;  %v7355_v36 = vld [vmem:[#allocation26 + $0x8f4] ss:$8 sps:$4 sm:$0xff]   ;;  %v7353_v4 = vld [vmem:[#allocation26 + $0x8f0] ss:$8 sps:$4 sm:$0xff]  }
 0x4f6   :  { %v1319_v47 = vadd.f32 %v1318_v53, %v1317_v39  ;;  %v1325_v59 = vrot.slane %v1324_v54, 2  ;;  %v1329_v60 = vsel %vm1300_vm6, %v9008_v52, 0.0  ;;  %v9014_v61 = vmul.f32 %v8062_v55, %v1241_v51  ;;  %v8064_v0 = vpop.eup %8063  ;;  %6223 = vmatprep.subr.bf16.mxu0 %v7355_v36  ;;  %v7361_v55 = vld [vmem:[#allocation26 + $0x904] ss:$8 sps:$4 sm:$0xff]  }
 0x4f7   :  { %v1306_v2 = vrot.slane %v1305_v46, 1  ;;  %v1312_v3 = vadd.f32 %v1311_v57, %v1310_v45  ;;  %v1330_v6 = vrot.slane %v1329_v60, 4  ;;  %v1343_v9 = vsel %vm1300_vm6, %v9010_v58, 0.0  ;;  %6224 = vmatpush1.bf16.msra.mxu0 %v7353_v4 }
 0x4f8   :  { %v1320_v13 = vrot.slane %v1319_v47, 1  ;;  %v1326_v14 = vadd.f32 %v1325_v59, %v1324_v54  ;;  %v1344_v15 = vrot.slane %v1343_v9, 4  ;;  %v1336_v17 = vsel %vm1300_vm6, %v9014_v61, 0.0  ;;  %6234 = vmatprep.subr.bf16.mxu0 %v7361_v55 }
 0x4f9   :  { %v1307_v18 = vadd.f32 %v1306_v2, %v1305_v46  ;;  %v1313_v20 = vrot.slane %v1312_v3, 1  ;;  %v1331_v22 = vadd.f32 %v1330_v6, %v1329_v60  ;;  %v1337_v23 = vrot.slane %v1336_v17, 4 }
 0x4fa   :  { %v1321_v24 = vadd.f32 %v1320_v13, %v1319_v47  ;;  %v1327_v27 = vrot.slane %v1326_v14, 1  ;;  %v1345_v19 = vadd.f32 %v1344_v15, %v1343_v9  ;;  %v9020_v63 = vmul.f32 %v8064_v0, %v1243_v56 }
 0x4fb   :  { %v1357_v29 = vmul.f32 0.25, %v1307_v18  ;;  %v1314_v30 = vadd.f32 %v1313_v20, %v1312_v3  ;;  %v1332_v33 = vrot.slane %v1331_v22, 2  ;;  %v1338_v34 = vadd.f32 %v1337_v23, %v1336_v17 }
 0x4fc   :  { %v1359_v1 = vmul.f32 0.25, %v1321_v24  ;;  %v1328_v37 = vadd.f32 %v1327_v27, %v1326_v14  ;;  %v1346_v38 = vrot.slane %v1345_v19, 2  ;;  %v1350_v39 = vsel %vm1300_vm6, %v9020_v63, 0.0 }
 0x4fd   :  { %v1358_v40 = vmul.f32 0.25, %v1314_v30  ;;  %v1333_v41 = vadd.f32 %v1332_v33, %v1331_v22  ;;  %v1339_v42 = vrot.slane %v1338_v34, 2  ;;  %v1351_v43 = vrot.slane %v1350_v39, 4 }
 0x4fe   :  { %v1365_v44 = vadd.f32 %v1359_v1, %v1357_v29  ;;  %v1360_v45 = vmul.f32 0.25, %v1328_v37  ;;  %v1347_v48 = vadd.f32 %v1346_v38, %v1345_v19 }
 0x4ff   :  { %v1334_v5 = vrot.slane %v1333_v41, 1  ;;  %v1340_v49 = vadd.f32 %v1339_v42, %v1338_v34  ;;  %v1352_v51 = vadd.f32 %v1351_v43, %v1350_v39 }
 0x500   :  { %v1366_v53 = vadd.f32 %v1360_v45, %v1358_v40  ;;  %v1348_v54 = vrot.slane %v1347_v48, 1 }
 0x501   :  { %v1335_v56 = vadd.f32 %v1334_v5, %v1333_v41  ;;  %v1341_v46 = vrot.slane %v1340_v49, 1  ;;  %v1353_v57 = vrot.slane %v1352_v51, 2 }
 0x502   :  { %v1349_v47 = vadd.f32 %v1348_v54, %v1347_v48 }
 0x503   :  { %v1361_v59 = vmul.f32 0.25, %v1335_v56  ;;  %v1342_v60 = vadd.f32 %v1341_v46, %v1340_v49  ;;  %v1354_v62 = vadd.f32 %v1353_v57, %v1352_v51 }
 0x504   :  { %v1363_v0 = vmul.f32 0.25, %v1349_v47 }
 0x505   :  { %v1367_v50 = vadd.f32 %v1365_v44, %v1361_v59  ;;  %v1362_v2 = vmul.f32 0.25, %v1342_v60  ;;  %v1355_v3 = vrot.slane %v1354_v62, 1 }
 0x507   :  { %v1369_v6 = vadd.f32 %v1367_v50, %v1363_v0  ;;  %v1368_v9 = vadd.f32 %v1366_v53, %v1362_v2  ;;  %v1356_v13 = vadd.f32 %v1355_v3, %v1354_v62 }
 0x509   :  { %v1371_v14 = vmul.f32 0.25, %v1369_v6  ;;  %v1364_v15 = vmul.f32 0.25, %v1356_v13 }
 0x50b   :  { %v1376_v17 = vrot.slane %v1371_v14, %v8934_v7  ;;  %v1370_v18 = vadd.f32 %v1368_v9, %v1364_v15 }
 0x50d   :  { %v9026_v20 = vsub.f32 %v8986_v10, %v1376_v17  ;;  %v9029_v22 = vsub.f32 %v8990_v16, %v1376_v17  ;;  %v9032_v23 = vsub.f32 %v9008_v52, %v1376_v17  ;;  %v9035_v24 = vsub.f32 %v9010_v58, %v1376_v17 }
 0x50e   :  { %v1372_v27 = vmul.f32 0.25, %v1370_v18 }
 0x50f   :  { %v1389_v19 = vmul.f32 %v9026_v20, %v9026_v20  ;;  %v1391_v29 = vmul.f32 %v9029_v22, %v9029_v22  ;;  %v1393_v10 = vmul.f32 %v9032_v23, %v9032_v23  ;;  %v1395_v16 = vmul.f32 %v9035_v24, %v9035_v24 }
 0x510   :  { %v1380_v30 = vrot.slane %v1372_v27, %v8934_v7 }
 0x511   :  { %v1397_v52 = vsel %vm1300_vm6, %v1389_v19, 0.0  ;;  %v1411_v58 = vsel %vm1300_vm6, %v1391_v29, 0.0  ;;  %v1425_v33 = vsel %vm1300_vm6, %v1393_v10, 0.0  ;;  %v1439_v34 = vsel %vm1300_vm6, %v1395_v16, 0.0 }
 0x512   :  { %v1398_v35 = vrot.slane %v1397_v52, 4  ;;  %v1412_v36 = vrot.slane %v1411_v58, 4  ;;  %v1426_v1 = vrot.slane %v1425_v33, 4  ;;  %v1440_v37 = vrot.slane %v1439_v34, 4 }
 0x513   :  { %v9051_v38 = vsub.f32 %v8995_v21, %v1380_v30  ;;  %v9054_v39 = vsub.f32 %v9000_v28, %v1380_v30  ;;  %v9057_v40 = vsub.f32 %v9014_v61, %v1380_v30  ;;  %v9060_v41 = vsub.f32 %v9020_v63, %v1380_v30 }
 0x514   :  { %v1399_v42 = vadd.f32 %v1398_v35, %v1397_v52  ;;  %v1413_v43 = vadd.f32 %v1412_v36, %v1411_v58  ;;  %v1427_v4 = vadd.f32 %v1426_v1, %v1425_v33  ;;  %v1441_v44 = vadd.f32 %v1440_v37, %v1439_v34 }
 0x515   :  { %v1390_v45 = vmul.f32 %v9051_v38, %v9051_v38  ;;  %v1392_v21 = vmul.f32 %v9054_v39, %v9054_v39  ;;  %v1394_v28 = vmul.f32 %v9057_v40, %v9057_v40  ;;  %v1396_v61 = vmul.f32 %v9060_v41, %v9060_v41 }
 0x516   :  { %v1400_v48 = vrot.slane %v1399_v42, 2  ;;  %v1414_v5 = vrot.slane %v1413_v43, 2  ;;  %v1428_v63 = vrot.slane %v1427_v4, 2  ;;  %v1442_v49 = vrot.slane %v1441_v44, 2 }
 0x517   :  { %v1404_v51 = vsel %vm1300_vm6, %v1390_v45, 0.0  ;;  %v1418_v53 = vsel %vm1300_vm6, %v1392_v21, 0.0  ;;  %v1432_v54 = vsel %vm1300_vm6, %v1394_v28, 0.0  ;;  %v1446_v55 = vsel %vm1300_vm6, %v1396_v61, 0.0 }
 0x518   :  { %v1401_v56 = vadd.f32 %v1400_v48, %v1399_v42  ;;  %v1415_v46 = vadd.f32 %v1414_v5, %v1413_v43  ;;  %v1429_v57 = vadd.f32 %v1428_v63, %v1427_v4  ;;  %v1443_v47 = vadd.f32 %v1442_v49, %v1441_v44 }
 0x519   :  { %v1405_v59 = vrot.slane %v1404_v51, 4  ;;  %v1419_v60 = vrot.slane %v1418_v53, 4  ;;  %v1433_v62 = vrot.slane %v1432_v54, 4  ;;  %v1447_v50 = vrot.slane %v1446_v55, 4 }
 0x51a   :  { %v1402_v0 = vrot.slane %v1401_v56, 1  ;;  %v1416_v2 = vrot.slane %v1415_v46, 1  ;;  %v1430_v3 = vrot.slane %v1429_v57, 1  ;;  %v1444_v6 = vrot.slane %v1443_v47, 1 }
 0x51b   :  { %v1406_v9 = vadd.f32 %v1405_v59, %v1404_v51  ;;  %v1420_v13 = vadd.f32 %v1419_v60, %v1418_v53  ;;  %v1434_v14 = vadd.f32 %v1433_v62, %v1432_v54  ;;  %v1448_v15 = vadd.f32 %v1447_v50, %v1446_v55  ;;  %v9074_v62 = vld [vmem:[#allocation20] sm:$0xff]  ;;  %v9076_v50 = vld [vmem:[#allocation22] sm:$0xff] }
 0x51c   :  { %v1403_v17 = vadd.f32 %v1402_v0, %v1401_v56  ;;  %v1417_v18 = vadd.f32 %v1416_v2, %v1415_v46  ;;  %v1431_v27 = vadd.f32 %v1430_v3, %v1429_v57  ;;  %v1445_v30 = vadd.f32 %v1444_v6, %v1443_v47 }
 0x51d   :  { %v1407_v19 = vrot.slane %v1406_v9, 2  ;;  %v1421_v29 = vrot.slane %v1420_v13, 2  ;;  %v1435_v10 = vrot.slane %v1434_v14, 2  ;;  %v1449_v16 = vrot.slane %v1448_v15, 2 }
 0x51e   :  { %v1453_v52 = vmul.f32 0.25, %v1403_v17  ;;  %v1455_v58 = vmul.f32 0.25, %v1417_v18  ;;  %v1457_v1 = vmul.f32 0.25, %v1431_v27  ;;  %v1459_v45 = vmul.f32 0.25, %v1445_v30 }
 0x51f   :  { %v1408_v33 = vadd.f32 %v1407_v19, %v1406_v9  ;;  %v1422_v34 = vadd.f32 %v1421_v29, %v1420_v13  ;;  %v1436_v35 = vadd.f32 %v1435_v10, %v1434_v14  ;;  %v1450_v36 = vadd.f32 %v1449_v16, %v1448_v15  ;;  %v9097_v19 = vld [vmem:[#allocation23] sm:$0xff] }
 0x520   :  { %v1461_v37 = vadd.f32 %v1455_v58, %v1453_v52  ;;  %v1494_v0 = vrot.slane %v9074_v62, %v8934_v7  ;;  %v1502_v2 = vrot.slane %v9074_v62, %v8936_v8  ;;  %v1510_v6 = vrot.slane %v9074_v62, %v8950_v25 }
 0x521   :  { %v1409_v42 = vrot.slane %v1408_v33, 1  ;;  %v1423_v43 = vrot.slane %v1422_v34, 1  ;;  %v1437_v4 = vrot.slane %v1436_v35, 1  ;;  %v1451_v44 = vrot.slane %v1450_v36, 1 }
 0x522   :  { %v1463_v21 = vadd.f32 %v1461_v37, %v1457_v1  ;;  %v1518_v9 = vrot.slane %v9074_v62, %v8952_v26  ;;  %v1552_v13 = vrot.slane %v9076_v50, %v8936_v8  ;;  %v1560_v14 = vrot.slane %v9076_v50, %v8950_v25 }
 0x523   :  { %v1410_v28 = vadd.f32 %v1409_v42, %v1408_v33  ;;  %v1424_v61 = vadd.f32 %v1423_v43, %v1422_v34  ;;  %v1438_v48 = vadd.f32 %v1437_v4, %v1436_v35  ;;  %v1452_v63 = vadd.f32 %v1451_v44, %v1450_v36  ;;  %v9111_v35 = vld [vmem:[#allocation25] sm:$0xff]  ;;  %v9121_v4 = vld [vmem:[#allocation23 + $0x10] sm:$0xff] }
 0x524   :  { %v1465_v5 = vadd.f32 %v1463_v21, %v1459_v45  ;;  %v1568_v17 = vrot.slane %v9076_v50, %v8952_v26  ;;  %v1506_v18 = vrot.slane %v9074_v62, %v8940_v12  ;;  %v1514_v27 = vrot.slane %v9074_v62, %v8954_v31 }
 0x525   :  { %v1454_v49 = vmul.f32 0.25, %v1410_v28  ;;  %v1456_v51 = vmul.f32 0.25, %v1424_v61  ;;  %v1458_v54 = vmul.f32 0.25, %v1438_v48  ;;  %v1460_v46 = vmul.f32 0.25, %v1452_v63 }
 0x526   :  { %v1467_v53 = vmul.f32 0.25, %v1465_v5  ;;  %v1522_v29 = vrot.slane %v9074_v62, %v8956_v32  ;;  %v1572_v10 = vrot.slane %v9076_v50, %v8956_v32  ;;  %v1498_v16 = vrot.slane %v9074_v62, %v8938_v11 }
 0x527   :  { %v1462_v55 = vadd.f32 %v1456_v51, %v1454_v49  ;;  %v1544_v30 = vrot.slane %v9076_v50, %v8934_v7  ;;  %v1548_v36 = vrot.slane %v9076_v50, %v8938_v11  ;;  %v1556_v37 = vrot.slane %v9076_v50, %v8940_v12 }
 0x528   :  { %v1469_v56 = vadd.f32 1e-05, %v1467_v53 }
 0x529   :  { %v1464_v57 = vadd.f32 %v1462_v55, %v1458_v54 }
 0x52a   :  { %8065 = vrsqrt.f32 %v1469_v56 }
 0x52b   :  { %v1466_v47 = vadd.f32 %v1464_v57, %v1460_v46 }
 0x52d   :  { %v1468_v59 = vmul.f32 0.25, %v1466_v47 }
 0x52f   :  { %v1470_v60 = vadd.f32 1e-05, %v1468_v59 }
 0x531   :  { %8067 = vrsqrt.f32 %v1470_v60 }
 0x534   :  { %v8066_v3 = vpop.eup %8065 }
 0x535   :  { %v1476_v15 = vrot.slane %v8066_v3, %v8934_v7 }
 0x537   :  { %v1481_v52 = vmul.f32 %v1476_v15, %v9026_v20  ;;  %v1483_v58 = vmul.f32 %v1476_v15, %v9029_v22  ;;  %v1485_v33 = vmul.f32 %v1476_v15, %v9032_v23  ;;  %v1487_v34 = vmul.f32 %v1476_v15, %v9035_v24  ;;  %v9123_v24 = vld [vmem:[#allocation25 + $0x10] sm:$0xff] }
 0x538   :  { %v1564_v20 = vrot.slane %v9076_v50, %v8954_v31 }
 0x539   :  { %v1531_v42 = vmul.f32 %v1494_v0, %v1481_v52  ;;  %v1533_v22 = vmul.f32 %v1502_v2, %v1483_v58  ;;  %v1535_v43 = vmul.f32 %v1510_v6, %v1485_v33  ;;  %v1537_v23 = vmul.f32 %v1518_v9, %v1487_v34 }
 0x53b   :  { %v8068_v61 = vpop.eup %8067  ;;  %v1583_v48 = vadd.f32 %v1552_v13, %v1533_v22  ;;  %v1585_v5 = vadd.f32 %v1560_v14, %v1535_v43  ;;  %v1587_v63 = vadd.f32 %v1568_v17, %v1537_v23  ;;  %v1581_v49 = vadd.f32 %v1544_v30, %v1531_v42 }
 0x53c   :  { %v1480_v51 = vrot.slane %v8068_v61, %v8934_v7 }
 0x53d   :  { %v9140_v56 = vmax.f32 %v1583_v48, 0.0  ;;  %v9142_v46 = vmax.f32 %v1585_v5, 0.0  ;;  %v9144_v57 = vmax.f32 %v1581_v49, 0.0  ;;  %v9172_v33 = vmax.f32 %v1587_v63, 0.0 }
 0x53e   :  { %v1482_v59 = vmul.f32 %v1480_v51, %v9051_v38  ;;  %v1484_v60 = vmul.f32 %v1480_v51, %v9054_v39  ;;  %v1486_v62 = vmul.f32 %v1480_v51, %v9057_v40  ;;  %v1488_v50 = vmul.f32 %v1480_v51, %v9060_v41 }
 0x53f   :  { %v1677_v0 = vsel %vm1300_vm6, %v9144_v57, 0.0  ;;  %v9155_v2 = vmul.f32 0.33333334, %v9144_v57  ;;  %v9158_v3 = vmul.f32 0.6666667, %v9142_v46 }
 0x540   :  { %v1534_v9 = vmul.f32 %v1506_v18, %v1484_v60  ;;  %v1536_v38 = vmul.f32 %v1514_v27, %v1486_v62  ;;  %v1538_v13 = vmul.f32 %v1522_v29, %v1488_v50  ;;  %v1532_v39 = vmul.f32 %v1498_v16, %v1482_v59 }
 0x541   :  { %9865 = vst [vmem:[#allocation40_spill] sm:$0xff] %v9158_v3  ;;  %v1678_v14 = vrot.slane %v1677_v0, 4  ;;  %v9164_v40 = vadd.f32 %v9158_v3, %v9155_v2  ;;  %v9167_v41 = vmul.f32 0.6666667, %v9144_v57  ;;  %v9170_v15 = vmul.f32 0.33333334, %v9140_v56 }
 0x542   :  { %v1588_v17 = vadd.f32 %v1572_v10, %v1538_v13  ;;  %v1582_v30 = vadd.f32 %v1548_v36, %v1532_v39  ;;  %v1584_v52 = vadd.f32 %v1556_v37, %v1534_v9  ;;  %v1586_v58 = vadd.f32 %v1564_v20, %v1536_v38 }
 0x543   :  { %9866 = vst [vmem:[#allocation41_spill] sm:$0xff] %v9167_v41  ;;  %v1679_v18 = vadd.f32 %v1678_v14, %v1677_v0  ;;  %v1789_v27 = vsel %vm1300_vm6, %v9164_v40, 0.0  ;;  %v9178_v29 = vadd.f32 %v9170_v15, %v9167_v41  ;;  %v9191_v22 = vmul.f32 0.22222222, %v9144_v57 }
 0x544   :  { %v9180_v16 = vmax.f32 %v1588_v17, 0.0  ;;  %v9182_v34 = vmax.f32 %v1582_v30, 0.0  ;;  %v9184_v42 = vmax.f32 %v1584_v52, 0.0  ;;  %v9186_v10 = vmax.f32 %v1586_v58, 0.0 }
 0x545   :  { %v1680_v36 = vrot.slane %v1679_v18, 2  ;;  %v1790_v37 = vrot.slane %v1789_v27, 4  ;;  %v1691_v20 = vsel %vm1300_vm6, %v9178_v29, 0.0  ;;  %9867 = vst [vmem:[#allocation42_spill] sm:$0xff] %v9191_v22 }
 0x546   :  { %v1684_v43 = vsel %vm1300_vm6, %v9182_v34, 0.0  ;;  %v9196_v23 = vmul.f32 0.6666667, %v9182_v34  ;;  %v9199_v61 = vmul.f32 0.33333334, %v9184_v42  ;;  %v1692_v48 = vrot.slane %v1691_v20, 4 }
 0x547   :  { %v1685_v5 = vrot.slane %v1684_v43, 4  ;;  %v1681_v63 = vadd.f32 %v1680_v36, %v1679_v18  ;;  %v1604_v49 = vmul.f32 0.33333334, %v9182_v34  ;;  %v9203_v51 = vmul.f32 0.6666667, %v9186_v10 }
 0x548   :  { %v9207_v59 = vadd.f32 %v9199_v61, %v9196_v23  ;;  %v1791_v60 = vadd.f32 %v1790_v37, %v1789_v27  ;;  %v9210_v62 = vmul.f32 0.22222222, %v9182_v34  ;;  %v9213_v50 = vmul.f32 0.22222222, %v9180_v16 }
 0x549   :  { %9868 = vst [vmem:[#allocation43_spill] sm:$0xff] %v9203_v51  ;;  %v1686_v0 = vadd.f32 %v1685_v5, %v1684_v43  ;;  %v1682_v9 = vrot.slane %v1681_v63, 1  ;;  %v9216_v38 = vadd.f32 %v9203_v51, %v1604_v49  ;;  %v1650_v13 = vmul.f32 0.11111111, %v9184_v42 }
 0x54a   :  { %9869 = vst [vmem:[#allocation44_spill] sm:$0xff] %v9210_v62  ;;  %9870 = vst [vmem:[#allocation45_spill] sm:$0xff] %v9213_v50  ;;  %v1698_v39 = vsel %vm1300_vm6, %v9207_v59, 0.0  ;;  %v1792_v14 = vrot.slane %v1791_v60, 2  ;;  %v1654_v17 = vmul.f32 0.44444445, %v9186_v10  ;;  %v1693_v30 = vadd.f32 %v1692_v48, %v1691_v20 }
 0x54b   :  { %v1687_v52 = vrot.slane %v1686_v0, 2  ;;  %v1683_v58 = vadd.f32 %v1682_v9, %v1681_v63  ;;  %v1699_v18 = vrot.slane %v1698_v39, 4  ;;  %v1796_v27 = vsel %vm1300_vm6, %v9216_v38, 0.0 }
 0x54c   :  { %v1797_v36 = vrot.slane %v1796_v27, 4  ;;  %v1793_v37 = vadd.f32 %v1792_v14, %v1791_v60  ;;  %v1652_v43 = vadd.f32 %v1650_v13, %v9210_v62  ;;  %v1694_v5 = vrot.slane %v1693_v30, 2 }
 0x54d   :  { %v1688_v55 = vadd.f32 %v1687_v52, %v1686_v0  ;;  %v1901_v53 = vmul.f32 0.25, %v1683_v58  ;;  %v1700_v6 = vadd.f32 %v1699_v18, %v1698_v39  ;;  %v9226_v54 = vmul.f32 0.6666667, %v9184_v42 }
 0x54e   :  { %v1798_v28 = vadd.f32 %v1797_v36, %v1796_v27  ;;  %v1794_v45 = vrot.slane %v1793_v37, 1  ;;  %v1656_v20 = vadd.f32 %v1654_v17, %v1652_v43  ;;  %v1695_v48 = vadd.f32 %v1694_v5, %v1693_v30 }
 0x54f   :  { %9871 = vst [vmem:[#allocation46_spill] sm:$0xff] %v9226_v54  ;;  %v1689_v63 = vrot.slane %v1688_v55, 1  ;;  %v9229_v9 = vsub.f32 %v9144_v57, %v1901_v53  ;;  %v1701_v47 = vrot.slane %v1700_v6, 2  ;;  %v9232_v60 = vadd.f32 %v9226_v54, %v1604_v49 }
 0x550   :  { %v1799_v13 = vrot.slane %v1798_v28, 2  ;;  %v1795_v14 = vadd.f32 %v1794_v45, %v1793_v37  ;;  %v9235_v0 = vadd.f32 %v1656_v20, %v9213_v50  ;;  %v1696_v39 = vrot.slane %v1695_v48, 1 }
 0x551   :  { %v1690_v52 = vadd.f32 %v1689_v63, %v1688_v55  ;;  %v1965_v58 = vmul.f32 %v9229_v9, %v9229_v9  ;;  %v1702_v17 = vadd.f32 %v1701_v47, %v1700_v6  ;;  %v1712_v30 = vsel %vm1300_vm6, %v9232_v60, 0.0 }
 0x552   :  { %v1800_v53 = vadd.f32 %v1799_v13, %v1798_v28  ;;  %v1917_v18 = vmul.f32 0.25, %v1795_v14  ;;  %v1810_v49 = vsel %vm1300_vm6, %v9235_v0, 0.0  ;;  %v1697_v27 = vadd.f32 %v1696_v39, %v1695_v48 }
 0x553   :  { %v1902_v36 = vmul.f32 0.25, %v1690_v52  ;;  %v1997_v45 = vsel %vm1300_vm6, %v1965_v58, 0.0  ;;  %v1703_v37 = vrot.slane %v1702_v17, 1  ;;  %v1811_v43 = vrot.slane %v1810_v49, 4 }
 0x554   :  { %v1998_v5 = vrot.slane %v1997_v45, 4  ;;  %v1801_v55 = vrot.slane %v1800_v53, 1  ;;  %v9245_v20 = vsub.f32 %v9164_v40, %v1917_v18  ;;  %v1903_v47 = vmul.f32 0.25, %v1697_v27 }
 0x555   :  { %v9248_v6 = vsub.f32 %v9182_v34, %v1902_v36  ;;  %v1704_v28 = vadd.f32 %v1703_v37, %v1702_v17  ;;  %v1812_v63 = vadd.f32 %v1811_v43, %v1810_v49  ;;  %v1713_v13 = vrot.slane %v1712_v30, 4 }
 0x556   :  { %v1999_v14 = vadd.f32 %v1998_v5, %v1997_v45  ;;  %v1802_v44 = vadd.f32 %v1801_v55, %v1800_v53  ;;  %v1981_v48 = vmul.f32 %v9245_v20, %v9245_v20  ;;  %v9253_v39 = vsub.f32 %v9178_v29, %v1903_v47 }
 0x557   :  { %v1966_v52 = vmul.f32 %v9248_v6, %v9248_v6  ;;  %v1904_v40 = vmul.f32 0.25, %v1704_v28  ;;  %v1813_v58 = vrot.slane %v1812_v63, 2  ;;  %v1714_v18 = vadd.f32 %v1713_v13, %v1712_v30 }
 0x558   :  { %v2000_v27 = vrot.slane %v1999_v14, 2  ;;  %v1918_v36 = vmul.f32 0.25, %v1802_v44  ;;  %v2109_v17 = vsel %vm1300_vm6, %v1981_v48, 0.0  ;;  %v1967_v49 = vmul.f32 %v9253_v39, %v9253_v39 }
 0x559   :  { %v2004_v53 = vsel %vm1300_vm6, %v1966_v52, 0.0  ;;  %v9262_v45 = vsub.f32 %v9207_v59, %v1904_v40  ;;  %v2110_v29 = vrot.slane %v2109_v17, 4  ;;  %v1814_v37 = vadd.f32 %v1813_v58, %v1812_v63 }
 0x55a   :  { %v2005_v43 = vrot.slane %v2004_v53, 4  ;;  %v2001_v5 = vadd.f32 %v2000_v27, %v1999_v14  ;;  %v9265_v55 = vsub.f32 %v9216_v38, %v1918_v36  ;;  %v2011_v30 = vsel %vm1300_vm6, %v1967_v49, 0.0 }
 0x55b   :  { %v1968_v44 = vmul.f32 %v9262_v45, %v9262_v45  ;;  %v2111_v47 = vadd.f32 %v2110_v29, %v2109_v17  ;;  %v1815_v28 = vrot.slane %v1814_v37, 1  ;;  %v2012_v13 = vrot.slane %v2011_v30, 4 }
 0x55c   :  { %v2006_v48 = vadd.f32 %v2005_v43, %v2004_v53  ;;  %v2002_v52 = vrot.slane %v2001_v5, 1  ;;  %v1982_v59 = vmul.f32 %v9265_v55, %v9265_v55  ;;  %v1715_v40 = vrot.slane %v1714_v18, 2 }
 0x55d   :  { %v2018_v63 = vsel %vm1300_vm6, %v1968_v44, 0.0  ;;  %v2112_v14 = vrot.slane %v2111_v47, 2  ;;  %v1816_v58 = vadd.f32 %v1815_v28, %v1814_v37  ;;  %v2013_v38 = vadd.f32 %v2012_v13, %v2011_v30 }
 0x55e   :  { %v2007_v27 = vrot.slane %v2006_v48, 2  ;;  %v2003_v36 = vadd.f32 %v2002_v52, %v2001_v5  ;;  %v2019_v49 = vrot.slane %v2018_v63, 4  ;;  %v2116_v21 = vsel %vm1300_vm6, %v1982_v59, 0.0 }
 0x55f   :  { %v2117_v1 = vrot.slane %v2116_v21, 4  ;;  %v2113_v17 = vadd.f32 %v2112_v14, %v2111_v47  ;;  %v1920_v29 = vmul.f32 0.25, %v1816_v58  ;;  %v2014_v54 = vrot.slane %v2013_v38, 2 }
 0x560   :  { %v2008_v53 = vadd.f32 %v2007_v27, %v2006_v48  ;;  %v2221_v43 = vmul.f32 0.25, %v2003_v36  ;;  %v2020_v3 = vadd.f32 %v2019_v49, %v2018_v63  ;;  %v1716_v50 = vadd.f32 %v1715_v40, %v1714_v18 }
 0x561   :  { %v2118_v62 = vadd.f32 %v2117_v1, %v2116_v21  ;;  %v2114_v51 = vrot.slane %v2113_v17, 1  ;;  %v9275_v44 = vsub.f32 %v9235_v0, %v1920_v29  ;;  %v2015_v37 = vadd.f32 %v2014_v54, %v2013_v38 }
 0x562   :  { %v2009_v30 = vrot.slane %v2008_v53, 1  ;;  %v2253_v28 = vadd.f32 1e-05, %v2221_v43  ;;  %v2021_v5 = vrot.slane %v2020_v3, 2  ;;  %v1717_v13 = vrot.slane %v1716_v50, 1 }
 0x563   :  { %v2119_v52 = vrot.slane %v2118_v62, 2  ;;  %v2115_v59 = vadd.f32 %v2114_v51, %v2113_v17  ;;  %v1984_v47 = vmul.f32 %v9275_v44, %v9275_v44  ;;  %v2016_v14 = vrot.slane %v2015_v37, 1 }
 0x564   :  { %v2010_v48 = vadd.f32 %v2009_v30, %v2008_v53  ;;  %8069 = vrsqrt.f32 %v2253_v28  ;;  %v2022_v63 = vadd.f32 %v2021_v5, %v2020_v3  ;;  %v1718_v18 = vadd.f32 %v1717_v13, %v1716_v50 }
 0x565   :  { %v2120_v1 = vadd.f32 %v2119_v52, %v2118_v62  ;;  %v2237_v21 = vmul.f32 0.25, %v2115_v59  ;;  %v2130_v0 = vsel %vm1300_vm6, %v1984_v47, 0.0  ;;  %v2017_v40 = vadd.f32 %v2016_v14, %v2015_v37 }
 0x566   :  { %v2222_v54 = vmul.f32 0.25, %v2010_v48  ;;  %v2023_v58 = vrot.slane %v2022_v63, 1  ;;  %v2131_v38 = vrot.slane %v2130_v0, 4  ;;  %v1906_v27 = vmul.f32 0.25, %v1718_v18 }
 0x567   :  { %v2121_v36 = vrot.slane %v2120_v1, 1  ;;  %v2269_v49 = vadd.f32 1e-05, %v2237_v21  ;;  %v2223_v51 = vmul.f32 0.25, %v2017_v40  ;;  %v1649_v17 = vmul.f32 0.11111111, %v9140_v56 }
 0x568   :  { %v2254_v29 = vadd.f32 1e-05, %v2222_v54  ;;  %v2024_v43 = vadd.f32 %v2023_v58, %v2022_v63  ;;  %v2132_v53 = vadd.f32 %v2131_v38, %v2130_v0  ;;  %v9282_v3 = vsub.f32 %v9232_v60, %v1906_v27 }
 0x569   :  { %v2122_v62 = vadd.f32 %v2121_v36, %v2120_v1  ;;  %8071 = vrsqrt.f32 %v2269_v49  ;;  %v2255_v50 = vadd.f32 1e-05, %v2223_v51  ;;  %v1651_v37 = vadd.f32 %v1649_v17, %v9191_v22 }
 0x56a   :  { %8073 = vrsqrt.f32 %v2254_v29  ;;  %v2224_v30 = vmul.f32 0.25, %v2024_v43  ;;  %v2133_v28 = vrot.slane %v2132_v53, 2  ;;  %v1970_v5 = vmul.f32 %v9282_v3, %v9282_v3 }
 0x56b   :  { %v2238_v13 = vmul.f32 0.25, %v2122_v62  ;;  %8075 = vrsqrt.f32 %v2255_v50  ;;  %v9288_v52 = vmul.f32 0.22222222, %v9172_v33  ;;  %v1653_v59 = vmul.f32 0.44444445, %v9142_v46 }
 0x56c   :  { %v2256_v60 = vadd.f32 1e-05, %v2224_v30  ;;  %v2134_v47 = vadd.f32 %v2133_v28, %v2132_v53  ;;  %v2032_v14 = vsel %vm1300_vm6, %v1970_v5, 0.0  ;;  %v9293_v48 = vmul.f32 0.22222222, %v9184_v42 }
 0x56d   :  { %9872 = vst [vmem:[#allocation47_spill] sm:$0xff] %v9288_v52  ;;  %v2270_v63 = vadd.f32 1e-05, %v2238_v13  ;;  %v2033_v18 = vrot.slane %v2032_v14, 4  ;;  %v1655_v1 = vadd.f32 %v1653_v59, %v1651_v37  ;;  %v1660_v21 = vmul.f32 0.11111111, %v9182_v34 }
 0x56e   :  { %v8070_v0 = vpop.eup %8069  ;;  %8077 = vrsqrt.f32 %v2256_v60  ;;  %v2135_v40 = vrot.slane %v2134_v47, 1  ;;  %v2368_v58 = vrot.slane %v9097_v19, %v8936_v8  ;;  %v9305_v51 = vmul.f32 0.22222222, %v9186_v10 }
 0x56f   :  { %v2317_v38 = vmul.f32 %v8070_v0, %v9229_v9  ;;  %8079 = vrsqrt.f32 %v2270_v63  ;;  %v2034_v27 = vadd.f32 %v2033_v18, %v2032_v14  ;;  %v9302_v36 = vadd.f32 %v1655_v1, %v9288_v52 }
 0x570   :  { %v2136_v49 = vadd.f32 %v2135_v40, %v2134_v47  ;;  %v1662_v17 = vadd.f32 %v1660_v21, %v9293_v48  ;;  %v1666_v29 = vmul.f32 0.44444445, %v9180_v16  ;;  %v9312_v62 = vmul.f32 0.6666667, %v9140_v56 }
 0x571   :  { %v2035_v43 = vrot.slane %v2034_v27, 2  ;;  %v1803_v53 = vsel %vm1300_vm6, %v9302_v36, 0.0  ;;  %v1726_v9 = vsel %vm1300_vm6, %v9184_v42, 0.0  ;;  %v9874_v50 = vrot.slane %v9097_v19, %v8934_v7 }
 0x572   :  { %9873 = vst [vmem:[#allocation48_spill] sm:$0xff] %v9312_v62  ;;  %v2240_v30 = vmul.f32 0.25, %v2136_v49  ;;  %v1804_v28 = vrot.slane %v1803_v53, 4  ;;  %v1664_v5 = vadd.f32 %v1662_v17, %v9305_v51  ;;  %v2568_v59 = vrot.slane %v9111_v35, %v8936_v8 }
 0x573   :  { %v2517_v37 = vmul.f32 %v9874_v50, %v2317_v38  ;;  %v8072_v13 = vpop.eup %8071  ;;  %v2036_v60 = vadd.f32 %v2035_v43, %v2034_v27  ;;  %v9324_v47 = vadd.f32 %v9312_v62, %v9155_v2  ;;  %v9328_v14 = vsel %vm1300_vm6, %v9140_v56, 0.0 }
 0x574   :  { %v8074_v63 = vpop.eup %8073  ;;  %v2333_v18 = vmul.f32 %v8072_v13, %v9245_v20  ;;  %v2272_v1 = vadd.f32 1e-05, %v2240_v30  ;;  %v1805_v21 = vadd.f32 %v1804_v28, %v1803_v53  ;;  %v9331_v0 = vadd.f32 %v1666_v29, %v1664_v5 }
 0x575   :  { %v8076_v40 = vpop.eup %8075  ;;  %v2318_v38 = vmul.f32 %v8074_v63, %v9248_v6  ;;  %v2037_v49 = vrot.slane %v2036_v60, 1  ;;  %v1705_v27 = vsel %vm1300_vm6, %v9324_v47, 0.0  ;;  %v1727_v2 = vrot.slane %v1726_v9, 4 }
 0x576   :  { %v9875_v17 = vrot.slane %v9111_v35, %v8934_v7  ;;  %8081 = vrsqrt.f32 %v2272_v1  ;;  %v2319_v50 = vmul.f32 %v8076_v40, %v9253_v39  ;;  %v1806_v20 = vrot.slane %v1805_v21, 2 }
 0x577   :  { %v9876_v29 = vrot.slane %v9097_v19, %v8938_v11  ;;  %v2038_v30 = vadd.f32 %v2037_v49, %v2036_v60  ;;  %v1824_v6 = vsel %vm1300_vm6, %v9331_v0, 0.0  ;;  %v1706_v28 = vrot.slane %v1705_v27, 4 }
 0x578   :  { %v2717_v43 = vadd.f32 %v9875_v17, %v2517_v37  ;;  %v8078_v5 = vpop.eup %8077  ;;  %v9877_v13 = vrot.slane %v9121_v4, %v8934_v7  ;;  %v2519_v54 = vmul.f32 %v2368_v58, %v2319_v50  ;;  %v1807_v37 = vadd.f32 %v1806_v20, %v1805_v21 }
 0x579   :  { %v2518_v53 = vmul.f32 %v9876_v29, %v2318_v38  ;;  %v1825_v1 = vrot.slane %v1824_v6, 4  ;;  %v8080_v17 = vpop.eup %8079  ;;  %v9878_v39 = vrot.slane %v9111_v35, %v8938_v11  ;;  %v2320_v38 = vmul.f32 %v8078_v5, %v9262_v45 }
 0x57a   :  { %v2533_v63 = vmul.f32 %v9877_v13, %v2333_v18  ;;  %v2226_v60 = vmul.f32 0.25, %v2038_v30  ;;  %v1707_v49 = vadd.f32 %v1706_v28, %v1705_v27  ;;  %v2749_v29 = vpack.c.bf16 %v2717_v43, %v2717_v43  ;;  %v7350_v18 = vld [vmem:[#allocation26 + $0x100] ss:$8 sps:$4 sm:$0xff]   ;;  %v7358_v13 = vld [vmem:[#allocation26 + $0x114] ss:$8 sps:$4 sm:$0xff]  }
 0x57b   :  { %v2718_v40 = vadd.f32 %v9878_v39, %v2518_v53  ;;  %v2334_v62 = vmul.f32 %v8080_v17, %v9265_v55  ;;  %v9353_v52 = vadd.f32 %v2568_v59, %v2519_v54  ;;  %v1808_v22 = vrot.slane %v1807_v37, 1 }
 0x57c   :  { %v9879_v58 = vrot.slane %v9097_v19, %v8940_v12  ;;  %v2258_v50 = vadd.f32 1e-05, %v2226_v60  ;;  %v1826_v20 = vadd.f32 %v1825_v1, %v1824_v6  ;;  %v9880_v45 = vrot.slane %v9121_v4, %v8938_v11  ;;  %v7364_v60 = vld [vmem:[#allocation26 + $0x124] ss:$8 sps:$4 sm:$0xff]  }
 0x57d   :  { %v2750_v41 = vpack.c.bf16 %v2718_v40, %v2718_v40  ;;  %v9881_v27 = vrot.slane %v9123_v24, %v8934_v7  ;;  %v1809_v54 = vadd.f32 %v1808_v22, %v1807_v37  ;;  %v1708_v59 = vrot.slane %v1707_v49, 2  ;;  %v7356_v22 = vld [vmem:[#allocation26 + $0x110] ss:$8 sps:$4 sm:$0xff]  }
 0x57e   :  { %v2520_v21 = vmul.f32 %v9879_v58, %v2320_v38  ;;  %v2534_v53 = vmul.f32 %v9880_v45, %v2334_v62  ;;  %v9882_v43 = vrot.slane %v9111_v35, %v8940_v12  ;;  %8083 = vrsqrt.f32 %v2258_v50 }
 0x57f   :  { %v2733_v55 = vadd.f32 %v9881_v27, %v2533_v63  ;;  %5897 = vmatprep.mubr.bf16.mxu1 %v2750_v41  ;;  %v1827_v28 = vrot.slane %v1826_v20, 2  ;;  %v1728_v5 = vadd.f32 %v1727_v2, %v1726_v9  ;;  %v9883_v6 = vrot.slane %v9123_v24, %v8938_v11  ;;  %v7359_v2 = vld [vmem:[#allocation26 + $0x900] ss:$8 sps:$4 sm:$0xff]  }
 0x580   :  { %v2720_v30 = vadd.f32 %v9882_v43, %v2520_v21  ;;  %5898 = vmatmul.mubr.bf16.vlgmr.msra.gmra.mrb[12].mxu1 %v2749_v29  ;;  %v1919_v62 = vmul.f32 0.25, %v1809_v54  ;;  %v1709_v17 = vadd.f32 %v1708_v59, %v1707_v49  ;;  %v1720_v39 = vrot.slane %v9328_v14, 4  ;;  %v8082_v38 = vpop.eup %8081  ;;  %v7367_v21 = vld [vmem:[#allocation26 + $0x914] ss:$8 sps:$4 sm:$0xff]  }
 0x581   :  { %v2734_v1 = vadd.f32 %v9883_v6, %v2534_v53  ;;  %5907 = vmatpush1.bf16.msra.mxu1 %v7350_v18  ;;  %v2636_v41 = vrot.slane %v9123_v24, %v8940_v12  ;;  %v1828_v37 = vadd.f32 %v1827_v28, %v1826_v20  ;;  %v1729_v40 = vrot.slane %v1728_v5, 2  ;;  %v7362_v53 = vld [vmem:[#allocation26 + $0x120] ss:$8 sps:$4 sm:$0xff]   ;;  %v7370_v59 = vld [vmem:[#allocation26 + $0x134] ss:$8 sps:$4 sm:$0xff]  }
 0x582   :  { %v2752_v63 = vpack.c.bf16 %v2720_v30, %v2720_v30  ;;  %5908 = vmatprep.subr.bf16.mxu1 %v7358_v13  ;;  %v9374_v29 = vsub.f32 %v9302_v36, %v1919_v62  ;;  %v1710_v58 = vrot.slane %v1709_v17, 1  ;;  %v1721_v49 = vadd.f32 %v1720_v39, %v9328_v14  ;;  %v7373_v28 = vld [vmem:[#allocation26 + $0x924] ss:$8 sps:$4 sm:$0xff]  }
 0x583   :  { %v2766_v9 = vpack.c.bf16 %v2734_v1, %v2734_v1  ;;  %v2765_v18 = vpack.c.bf16 %v2733_v55, %v2733_v55  ;;  %v2336_v50 = vmul.f32 %v8082_v38, %v9275_v44  ;;  %v1829_v45 = vrot.slane %v1828_v37, 1  ;;  %v7365_v44 = vld [vmem:[#allocation26 + $0x910] ss:$8 sps:$4 sm:$0xff]   ;;  %v7376_v38 = vld [vmem:[#allocation26 + $0x144] ss:$8 sps:$4 sm:$0xff]  }
 0x584   :  { %5938 = vmatprep.mubr.bf16.mxu1 %v2752_v63  ;;  %v1730_v24 = vadd.f32 %v1729_v40, %v1728_v5  ;;  %v1983_v20 = vmul.f32 %v9374_v29, %v9374_v29  ;;  %v1711_v13 = vadd.f32 %v1710_v58, %v1709_v17  ;;  %v9884_v36 = vrot.slane %v9121_v4, %v8940_v12  ;;  %v7368_v63 = vld [vmem:[#allocation26 + $0x130] ss:$8 sps:$4 sm:$0xff]   ;;  %v7371_v40 = vld [vmem:[#allocation26 + $0x920] ss:$8 sps:$4 sm:$0xff]   ;;  %v7379_v58 = vld [vmem:[#allocation26 + $0x934] ss:$8 sps:$4 sm:$0xff]  }
 0x585   :  { %6225 = vmatprep.mubr.bf16.mxu0 %v2766_v9  ;;  %5909 = vmatpush1.bf16.msra.mxu1 %v7356_v22  ;;  %v1830_v14 = vadd.f32 %v1829_v45, %v1828_v37  ;;  %v1722_v55 = vrot.slane %v1721_v49, 2  ;;  %v2380_v62 = vrot.slane %v9097_v19, %v8954_v31 }
 0x586   :  { %6226 = vmatmul.mubr.bf16.vlgmr.msra.gmra.mrb[12].mxu0 %v2765_v18  ;;  %v2536_v27 = vmul.f32 %v9884_v36, %v2336_v50  ;;  %v1731_v54 = vrot.slane %v1730_v24, 1  ;;  %5910 = vmatprep.subr.bf16.mxu1 %v7364_v60  ;;  %v1905_v43 = vmul.f32 0.25, %v1711_v13  ;;  %v2123_v5 = vsel %vm1300_vm6, %v1983_v20, 0.0  ;;  %v7374_v50 = vld [vmem:[#allocation26 + $0x140] ss:$8 sps:$4 sm:$0xff]  }
 0x587   :  { %6235 = vmatpush1.bf16.msra.mxu0 %v7359_v2  ;;  %v1922_v6 = vmul.f32 0.25, %v1830_v14  ;;  %v1723_v17 = vadd.f32 %v1722_v55, %v1721_v49  ;;  %v2580_v2 = vrot.slane %v9111_v35, %v8954_v31  ;;  %v7377_v13 = vld [vmem:[#allocation26 + $0x930] ss:$8 sps:$4 sm:$0xff]  }
 0x588   :  { %6236 = vmatprep.subr.bf16.mxu0 %v7367_v21  ;;  %v2736_v30 = vadd.f32 %v2636_v41, %v2536_v27  ;;  %v1732_v1 = vadd.f32 %v1731_v54, %v1730_v24  ;;  %v9387_v4 = vsub.f32 %v9324_v47, %v1905_v43  ;;  %v8084_v39 = vpop.eup %8083  ;;  %v2124_v47 = vrot.slane %v2123_v5, 4  ;;  %v7385_v54 = vld [vmem:[#allocation26 + $0x944] ss:$8 sps:$4 sm:$0xff]  }
 0x589   :  { %5911 = vmatpush1.bf16.msra.mxu1 %v7362_v53  ;;  %v9390_v37 = vsub.f32 %v9331_v0, %v1922_v6  ;;  %v2322_v9 = vmul.f32 %v8084_v39, %v9282_v3  ;;  %v1724_v3 = vrot.slane %v1723_v17, 1  ;;  %v7382_v53 = vld [vmem:[#allocation26 + $0x154] ss:$8 sps:$4 sm:$0xff]   ;;  %v1659_v6 = vmul.f32 0.11111111, %v9144_v57 }
 0x58a   :  { %v2768_v22 = vpack.c.bf16 %v2736_v30, %v2736_v30  ;;  %v1908_v41 = vmul.f32 0.25, %v1732_v1  ;;  %5912 = vmatprep.subr.bf16.mxu1 %v7370_v59  ;;  %v1969_v60 = vmul.f32 %v9387_v4, %v9387_v4  ;;  %v2125_v27 = vadd.f32 %v2124_v47, %v2123_v5  ;;  %v7380_v1 = vld [vmem:[#allocation26 + $0x150] ss:$8 sps:$4 sm:$0xff]   ;;  %v7383_v5 = vld [vmem:[#allocation26 + $0x940] ss:$8 sps:$4 sm:$0xff]  }
 0x58b   :  { %6237 = vmatpush1.bf16.msra.mxu0 %v7365_v44  ;;  %v1986_v0 = vmul.f32 %v9390_v37, %v9390_v37  ;;  %v2522_v18 = vmul.f32 %v2380_v62, %v2322_v9  ;;  %v1725_v59 = vadd.f32 %v1724_v3, %v1723_v17 }
 0x58c   :  { %6266 = vmatprep.mubr.bf16.mxu0 %v2768_v22  ;;  %6238 = vmatprep.subr.bf16.mxu0 %v7373_v28  ;;  %v9400_v49 = vsub.f32 %v9184_v42, %v1908_v41  ;;  %v2025_v21 = vsel %vm1300_vm6, %v1969_v60, 0.0  ;;  %v9410_v28 = vmul.f32 0.22222222, %v9140_v56  ;;  %v7388_v22 = vld [vmem:[#allocation26 + $0x164] ss:$8 sps:$4 sm:$0xff]  }
 0x58d   :  { %5913 = vmatpush1.bf16.msra.mxu1 %v7368_v63  ;;  %v2144_v45 = vsel %vm1300_vm6, %v1986_v0, 0.0  ;;  %v2026_v24 = vrot.slane %v2025_v21, 4  ;;  %v9406_v36 = vadd.f32 %v2580_v2, %v2522_v18  ;;  %v1907_v39 = vmul.f32 0.25, %v1725_v59  ;;  %v7386_v60 = vld [vmem:[#allocation26 + $0x160] ss:$8 sps:$4 sm:$0xff]  }
 0x58e   :  { %v1972_v20 = vmul.f32 %v9400_v49, %v9400_v49  ;;  %5914 = vmatprep.subr.bf16.mxu1 %v7376_v38  ;;  %v2145_v14 = vrot.slane %v2144_v45, 4  ;;  %v2126_v63 = vrot.slane %v2125_v27, 2  ;;  %v1661_v47 = vadd.f32 %v1659_v6, %v9410_v28  ;;  %v7389_v18 = vld [vmem:[#allocation26 + $0x950] ss:$8 sps:$4 sm:$0xff]   ;;  %v7395_v59 = vld [vmem:[#allocation26 + $0x960] ss:$8 sps:$4 sm:$0xff]  }
 0x58f   :  { %6239 = vmatpush1.bf16.msra.mxu0 %v7371_v40  ;;  %v2027_v55 = vadd.f32 %v2026_v24, %v2025_v21  ;;  %v7391_v40 = vld [vmem:[#allocation26 + $0x954] ss:$8 sps:$4 sm:$0xff]   ;;  %v9414_v9 = vsub.f32 %v9140_v56, %v1907_v39  ;;  %v7397_v24 = vld [vmem:[#allocation26 + $0x964] ss:$8 sps:$4 sm:$0xff]  }
 0x590   :  { %6240 = vmatprep.subr.bf16.mxu0 %v7379_v58  ;;  %v2046_v44 = vsel %vm1300_vm6, %v1972_v20, 0.0  ;;  %v2146_v43 = vadd.f32 %v2145_v14, %v2144_v45  ;;  %v7394_v21 = vld [vmem:[#allocation26 + $0x174] ss:$8 sps:$4 sm:$0xff]   ;;  %v2127_v3 = vadd.f32 %v2126_v63, %v2125_v27  ;;  %v9420_v45 = vmul.f32 0.22222222, %v9142_v46 }
 0x591   :  { %v2047_v30 = vrot.slane %v2046_v44, 4  ;;  %5915 = vmatpush1.bf16.msra.mxu1 %v7374_v50  ;;  %v2028_v62 = vrot.slane %v2027_v55, 2  ;;  %v1971_v0 = vmul.f32 %v9414_v9, %v9414_v9  ;;  %v7392_v14 = vld [vmem:[#allocation26 + $0x170] ss:$8 sps:$4 sm:$0xff]   ;;  %v9425_v27 = vmul.f32 0.6666667, %v9180_v16 }
 0x592   :  { %5916 = vmatprep.subr.bf16.mxu1 %v7382_v53  ;;  %v2147_v17 = vrot.slane %v2146_v43, 2  ;;  %v7400_v6 = vld [vmem:[#allocation26 + $0x184] ss:$8 sps:$4 sm:$0xff]  }
 0x593   :  { %6241 = vmatpush1.bf16.msra.mxu0 %v7377_v13  ;;  %v2048_v41 = vadd.f32 %v2047_v30, %v2046_v44  ;;  %v2029_v38 = vadd.f32 %v2028_v62, %v2027_v55  ;;  %v2039_v53 = vsel %vm1300_vm6, %v1971_v0, 0.0  ;;  %v1663_v55 = vadd.f32 %v1661_v47, %v9420_v45  ;;  %v7401_v47 = vld [vmem:[#allocation26 + $0x970] ss:$8 sps:$4 sm:$0xff]  }
 0x594   :  { %6242 = vmatprep.subr.bf16.mxu0 %v7385_v54  ;;  %v2148_v20 = vadd.f32 %v2147_v17, %v2146_v43  ;;  %v2040_v44 = vrot.slane %v2039_v53, 4  ;;  %v1665_v43 = vmul.f32 0.44444445, %v9172_v33 }
 0x595   :  { %v2049_v2 = vrot.slane %v2048_v41, 2  ;;  %5917 = vmatpush1.bf16.msra.mxu1 %v7380_v1  ;;  %v2030_v58 = vrot.slane %v2029_v38, 1  ;;  %v2128_v1 = vrot.slane %v2127_v3, 1 }
 0x596   :  { %5918 = vmatprep.subr.bf16.mxu1 %v7388_v22  ;;  %v2041_v39 = vadd.f32 %v2040_v44, %v2039_v53  ;;  %v2149_v22 = vrot.slane %v2148_v20, 1  ;;  %v7404_v53 = vld [vmem:[#allocation26 + $0x190] ss:$8 sps:$4 sm:$0xff]   ;;  %v7415_v44 = vld [vmem:[#allocation26 + $0x994] ss:$8 sps:$4 sm:$0xff]  }
 0x597   :  { %6243 = vmatpush1.bf16.msra.mxu0 %v7383_v5  ;;  %v2050_v50 = vadd.f32 %v2049_v2, %v2048_v41  ;;  %v2031_v13 = vadd.f32 %v2030_v58, %v2029_v38  ;;  %v7403_v5 = vld [vmem:[#allocation26 + $0x974] ss:$8 sps:$4 sm:$0xff]   ;;  %v7398_v38 = vld [vmem:[#allocation26 + $0x180] ss:$8 sps:$4 sm:$0xff]   ;;  %v9432_v2 = vadd.f32 %v9425_v27, %v9199_v61  ;;  %v2129_v58 = vadd.f32 %v2128_v1, %v2127_v3 }
 0x598   :  { %6244 = vmatprep.subr.bf16.mxu0 %v7391_v40  ;;  %v9428_v40 = vadd.f32 %v1665_v43, %v1663_v55  ;;  %v2042_v17 = vrot.slane %v2041_v39, 2  ;;  %v7410_v1 = vld [vmem:[#allocation26 + $0x1a0] ss:$8 sps:$4 sm:$0xff]   ;;  %v7418_v43 = vld [vmem:[#allocation26 + $0x1b4] ss:$8 sps:$4 sm:$0xff]  }
 0x599   :  { %v2051_v54 = vrot.slane %v2050_v50, 1  ;;  %5919 = vmatpush1.bf16.msra.mxu1 %v7386_v60  ;;  %v2225_v30 = vmul.f32 0.25, %v2031_v13  ;;  %v7406_v60 = vld [vmem:[#allocation26 + $0x194] ss:$8 sps:$4 sm:$0xff]   ;;  %v1838_v61 = vsel %vm1300_vm6, %v9432_v2, 0.0  ;;  %v2239_v3 = vmul.f32 0.25, %v2129_v58 }
 0x59a   :  { %5920 = vmatprep.subr.bf16.mxu1 %v7394_v21  ;;  %v7409_v21 = vld [vmem:[#allocation26 + $0x984] ss:$8 sps:$4 sm:$0xff]  }
 0x59b   :  { %6245 = vmatpush1.bf16.msra.mxu0 %v7389_v18  ;;  %v2052_v62 = vadd.f32 %v2051_v54, %v2050_v50  ;;  %v2257_v63 = vadd.f32 1e-05, %v2225_v30  ;;  %v2043_v18 = vadd.f32 %v2042_v17, %v2041_v39  ;;  %v2150_v50 = vadd.f32 %v2149_v22, %v2148_v20  ;;  %v7412_v54 = vld [vmem:[#allocation26 + $0x1a4] ss:$8 sps:$4 sm:$0xff]  }
 0x59c   :  { %6246 = vmatprep.subr.bf16.mxu0 %v7397_v24  ;;  %v1817_v24 = vsel %vm1300_vm6, %v9428_v40, 0.0  ;;  %v1839_v30 = vrot.slane %v1838_v61, 4  ;;  %v2271_v39 = vadd.f32 1e-05, %v2239_v3  ;;  %v7422_v3 = vld [vmem:[#allocation26 + $0x1c0] ss:$8 sps:$4 sm:$0xff]  }
 0x59d   :  { %v2228_v41 = vmul.f32 0.25, %v2052_v62  ;;  %5921 = vmatpush1.bf16.msra.mxu1 %v7392_v14  ;;  %8085 = vrsqrt.f32 %v2257_v63  ;;  %v2044_v13 = vrot.slane %v2043_v18, 1  ;;  %v7407_v14 = vld [vmem:[#allocation26 + $0x980] ss:$8 sps:$4 sm:$0xff]   ;;  %v1818_v20 = vrot.slane %v1817_v24, 4 }
 0x59e   :  { %5922 = vmatprep.subr.bf16.mxu1 %v7400_v6  ;;  %v7413_v62 = vld [vmem:[#allocation26 + $0x990] ss:$8 sps:$4 sm:$0xff]   ;;  %v7421_v63 = vld [vmem:[#allocation26 + $0x9a4] ss:$8 sps:$4 sm:$0xff]   ;;  %v1840_v58 = vadd.f32 %v1839_v30, %v1838_v61  ;;  %v2588_v61 = vrot.slane %v9111_v35, %v8956_v32 }
 0x59f   :  { %6247 = vmatpush1.bf16.msra.mxu0 %v7395_v59  ;;  %v2260_v0 = vadd.f32 1e-05, %v2228_v41  ;;  %v2045_v55 = vadd.f32 %v2044_v13, %v2043_v18  ;;  %v2242_v59 = vmul.f32 0.25, %v2150_v50  ;;  %v1819_v17 = vadd.f32 %v1818_v20, %v1817_v24  ;;  %v7419_v50 = vld [vmem:[#allocation26 + $0x9a0] ss:$8 sps:$4 sm:$0xff]  }
 0x5a0   :  { %6248 = vmatprep.subr.bf16.mxu0 %v7403_v5  ;;  %v2376_v5 = vrot.slane %v9097_v19, %v8950_v25  ;;  %v2388_v18 = vrot.slane %v9097_v19, %v8956_v32  ;;  %v7424_v13 = vld [vmem:[#allocation26 + $0x1c4] ss:$8 sps:$4 sm:$0xff]   ;;  %v1841_v19 = vrot.slane %v1840_v58, 2 }
 0x5a1   :  { %8087 = vrsqrt.f32 %v2260_v0  ;;  %5923 = vmatpush1.bf16.msra.mxu1 %v7398_v38  ;;  %v2227_v6 = vmul.f32 0.25, %v2045_v55  ;;  %v2274_v41 = vadd.f32 1e-05, %v2242_v59  ;;  %v7416_v0 = vld [vmem:[#allocation26 + $0x1b0] ss:$8 sps:$4 sm:$0xff]  }
 0x5a2   :  { %5924 = vmatprep.subr.bf16.mxu1 %v7406_v60  ;;  %v2576_v60 = vrot.slane %v9111_v35, %v8950_v25  ;;  %v7430_v59 = vld [vmem:[#allocation26 + $0x1d4] ss:$8 sps:$4 sm:$0xff]   ;;  %v7433_v20 = vld [vmem:[#allocation26 + $0x9c4] ss:$8 sps:$4 sm:$0xff]   ;;  %v7431_v35 = vld [vmem:[#allocation26 + $0x9c0] ss:$8 sps:$4 sm:$0xff]  }
 0x5a3   :  { %6249 = vmatpush1.bf16.msra.mxu0 %v7401_v47  ;;  %v2259_v38 = vadd.f32 1e-05, %v2227_v6 }
 0x5a4   :  { %6250 = vmatprep.subr.bf16.mxu0 %v7409_v21 }
 0x5a5   :  { %5925 = vmatpush1.bf16.msra.mxu1 %v7404_v53  ;;  %8089 = vrsqrt.f32 %v2259_v38  ;;  %v7427_v53 = vld [vmem:[#allocation26 + $0x9b4] ss:$8 sps:$4 sm:$0xff]  }
 0x5a6   :  { %5926 = vmatprep.subr.bf16.mxu1 %v7412_v54  ;;  %8091 = vrsqrt.f32 %v2271_v39 }
 0x5a7   :  { %6251 = vmatpush1.bf16.msra.mxu0 %v7407_v14  ;;  %v8086_v22 = vpop.eup %8085  ;;  %8093 = vrsqrt.f32 %v2274_v41  ;;  %v1820_v14 = vrot.slane %v1819_v17, 2 }
 0x5a8   :  { %6252 = vmatprep.subr.bf16.mxu0 %v7415_v44  ;;  %v2321_v47 = vmul.f32 %v8086_v22, %v9387_v4  ;;  %v7425_v44 = vld [vmem:[#allocation26 + $0x9b0] ss:$8 sps:$4 sm:$0xff]   ;;  %v7439_v22 = vld [vmem:[#allocation26 + $0x9d4] ss:$8 sps:$4 sm:$0xff]  }
 0x5a9   :  { %5927 = vmatpush1.bf16.msra.mxu1 %v7410_v1  ;;  %v1821_v6 = vadd.f32 %v1820_v14, %v1819_v17  ;;  %v7428_v1 = vld [vmem:[#allocation26 + $0x1d0] ss:$8 sps:$4 sm:$0xff]  }
 0x5aa   :  { %5928 = vmatprep.subr.bf16.mxu1 %v7418_v43  ;;  %v2521_v24 = vmul.f32 %v2376_v5, %v2321_v47  ;;  %v8137_v43 = vld [vmem:[#allocation23] sm:$0xff] }
 0x5ab   :  { %v8088_v21 = vpop.eup %8087  ;;  %6253 = vmatpush1.bf16.msra.mxu0 %v7413_v62  ;;  %v7436_v62 = vld [vmem:[#allocation26 + $0x1e4] ss:$8 sps:$4 sm:$0xff]   ;;  %v2384_v39 = vrot.slane %v8137_v43, %v8952_v26  ;;  %v7446_v43 = vld [vmem:[#allocation26 + $0x200] ss:$8 sps:$4 sm:$0xff]  }
 0x5ac   :  { %6254 = vmatprep.subr.bf16.mxu0 %v7421_v63  ;;  %v2324_v4 = vmul.f32 %v8088_v21, %v9400_v49  ;;  %v9448_v54 = vadd.f32 %v2576_v60, %v2521_v24  ;;  %v1842_v49 = vadd.f32 %v1841_v19, %v1840_v58  ;;  %v1822_v63 = vrot.slane %v1821_v6, 1  ;;  %v8138_v60 = vld [vmem:[#allocation25] sm:$0xff]  ;;  %v7442_v21 = vld [vmem:[#allocation26 + $0x1f4] ss:$8 sps:$4 sm:$0xff]  }
 0x5ad   :  { %5929 = vmatpush1.bf16.msra.mxu1 %v7416_v0  ;;  %v2584_v17 = vrot.slane %v8138_v60, %v8952_v26  ;;  %v7434_v0 = vld [vmem:[#allocation26 + $0x1e0] ss:$8 sps:$4 sm:$0xff]  }
 0x5ae   :  { %v2524_v55 = vmul.f32 %v2388_v18, %v2324_v4  ;;  %5930 = vmatprep.subr.bf16.mxu1 %v7424_v13  ;;  %v1843_v38 = vrot.slane %v1842_v49, 1  ;;  %v7437_v18 = vld [vmem:[#allocation26 + $0x9d0] ss:$8 sps:$4 sm:$0xff]   ;;  %v7445_v13 = vld [vmem:[#allocation26 + $0x9e4] ss:$8 sps:$4 sm:$0xff]   ;;  %v1823_v4 = vadd.f32 %v1822_v63, %v1821_v6  ;;  %v2754_v63 = vpack.c.bf16 %v9406_v36, %v9406_v36 }
 0x5af   :  { %6255 = vmatpush1.bf16.msra.mxu0 %v7419_v50  ;;  %v8090_v5 = vpop.eup %8089  ;;  %v7463_v36 = vld [vmem:[#allocation26 + $0xa14] ss:$8 sps:$4 sm:$0xff]  }
 0x5b0   :  { %6256 = vmatprep.subr.bf16.mxu0 %v7427_v53  ;;  %v9450_v30 = vadd.f32 %v2588_v61, %v2524_v55  ;;  %v8092_v41 = vpop.eup %8091  ;;  %v2323_v47 = vmul.f32 %v8090_v5, %v9414_v9  ;;  %v9456_v53 = vld [vmem:[#allocation23 + $0x10] sm:$0xff]  ;;  %v1844_v19 = vadd.f32 %v1843_v38, %v1842_v49  ;;  %v1921_v6 = vmul.f32 0.25, %v1823_v4  ;;  %v7457_v38 = vld [vmem:[#allocation26 + $0xa04] ss:$8 sps:$4 sm:$0xff]  }
 0x5b1   :  { %5931 = vmatpush1.bf16.msra.mxu1 %v7422_v3  ;;  %v8094_v58 = vpop.eup %8093  ;;  %v2335_v24 = vmul.f32 %v8092_v41, %v9374_v29  ;;  %v2432_v9 = vrot.slane %v9456_v53, %v8936_v8  ;;  %v2444_v14 = vrot.slane %v9456_v53, %v8954_v31  ;;  %v7440_v55 = vld [vmem:[#allocation26 + $0x1f0] ss:$8 sps:$4 sm:$0xff]   ;;  %v7448_v29 = vld [vmem:[#allocation26 + $0x204] ss:$8 sps:$4 sm:$0xff]   ;;  %v7466_v4 = vld [vmem:[#allocation26 + $0x234] ss:$8 sps:$4 sm:$0xff]  }
 0x5b2   :  { %5932 = vmatprep.subr.bf16.mxu1 %v7430_v59  ;;  %v2523_v50 = vmul.f32 %v2384_v39, %v2323_v47  ;;  %v2338_v61 = vmul.f32 %v8094_v58, %v9390_v37  ;;  %v7451_v59 = vld [vmem:[#allocation26 + $0x9f4] ss:$8 sps:$4 sm:$0xff]   ;;  %v2751_v39 = vpack.c.bf16 %v9353_v52, %v9353_v52  ;;  %v7449_v5 = vld [vmem:[#allocation26 + $0x9f0] ss:$8 sps:$4 sm:$0xff]   ;;  %v9476_v47 = vsub.f32 %v9428_v40, %v1921_v6  ;;  %v7455_v58 = vld [vmem:[#allocation26 + $0xa00] ss:$8 sps:$4 sm:$0xff]  }
 0x5b3   :  { %6257 = vmatpush1.bf16.msra.mxu0 %v7425_v44  ;;  %v7443_v44 = vld [vmem:[#allocation26 + $0x9e0] ss:$8 sps:$4 sm:$0xff]   ;;  %v7452_v52 = vld [vmem:[#allocation26 + $0x210] ss:$8 sps:$4 sm:$0xff]   ;;  %v1613_v40 = vmul.f32 0.44444445, %v9144_v57 }
 0x5b4   :  { %6258 = vmatprep.subr.bf16.mxu0 %v7433_v20  ;;  %v9463_v3 = vadd.f32 %v2584_v17, %v2523_v50  ;;  %v2535_v20 = vmul.f32 %v2432_v9, %v2335_v24  ;;  %v7461_v9 = vld [vmem:[#allocation26 + $0xa10] ss:$8 sps:$4 sm:$0xff]  }
 0x5b5   :  { %5933 = vmatpush1.bf16.msra.mxu1 %v7428_v1  ;;  %v9465_v1 = vld [vmem:[#allocation25 + $0x10] sm:$0xff]  ;;  %v1617_v24 = vadd.f32 %v9410_v28, %v1613_v40  ;;  %v7472_v28 = vld [vmem:[#allocation26 + $0x244] ss:$8 sps:$4 sm:$0xff]   ;;  %v9500_v40 = vmul.f32 0.6666667, %v9172_v33 }
 0x5b6   :  { %5934 = vmatprep.subr.bf16.mxu1 %v7436_v62  ;;  %v2632_v37 = vrot.slane %v9465_v1, %v8936_v8  ;;  %v2644_v49 = vrot.slane %v9465_v1, %v8954_v31  ;;  %v1924_v62 = vmul.f32 0.25, %v1844_v19  ;;  %v7473_v6 = vld [vmem:[#allocation26 + $0xa30] ss:$8 sps:$4 sm:$0xff]  }
 0x5b7   :  { %6259 = vmatpush1.bf16.msra.mxu0 %v7431_v35  ;;  %v2538_v35 = vmul.f32 %v2444_v14, %v2338_v61  ;;  %v7469_v61 = vld [vmem:[#allocation26 + $0xa24] ss:$8 sps:$4 sm:$0xff]   ;;  %v9489_v57 = vadd.f32 %v9420_v45, %v1617_v24 }
 0x5b8   :  { %6260 = vmatprep.subr.bf16.mxu0 %v7439_v22  ;;  %v7454_v22 = vld [vmem:[#allocation26 + $0x214] ss:$8 sps:$4 sm:$0xff]   ;;  %v2735_v41 = vadd.f32 %v2632_v37, %v2535_v20  ;;  %v9479_v17 = vsub.f32 %v9432_v2, %v1924_v62  ;;  %v7470_v37 = vld [vmem:[#allocation26 + $0x240] ss:$8 sps:$4 sm:$0xff]  }
 0x5b9   :  { %5935 = vmatpush1.bf16.msra.mxu1 %v7434_v0  ;;  %v2738_v60 = vadd.f32 %v2644_v49, %v2538_v35  ;;  %v7478_v35 = vld [vmem:[#allocation26 + $0x254] ss:$8 sps:$4 sm:$0xff]   ;;  %v7481_v49 = vld [vmem:[#allocation26 + $0xa44] ss:$8 sps:$4 sm:$0xff]  }
 0x5ba   :  { %5936 = vmatprep.subr.bf16.mxu1 %v7442_v21  ;;  %v2767_v0 = vpack.c.bf16 %v2735_v41, %v2735_v41  ;;  %v1985_v21 = vmul.f32 %v9476_v47, %v9476_v47  ;;  %v1988_v2 = vmul.f32 %v9479_v17, %v9479_v17 }
 0x5bb   :  { %6261 = vmatpush1.bf16.msra.mxu0 %v7437_v18  ;;  %v7460_v18 = vld [vmem:[#allocation26 + $0x224] ss:$8 sps:$4 sm:$0xff]   ;;  %v2770_v50 = vpack.c.bf16 %v2738_v60, %v2738_v60  ;;  %v7482_v60 = vld [vmem:[#allocation26 + $0x260] ss:$8 sps:$4 sm:$0xff]  }
 0x5bc   :  { %6262 = vmatprep.subr.bf16.mxu0 %v7445_v13  ;;  %v7458_v13 = vld [vmem:[#allocation26 + $0x220] ss:$8 sps:$4 sm:$0xff]   ;;  %v2137_v14 = vsel %vm1300_vm6, %v1985_v21, 0.0  ;;  %v2158_v19 = vsel %vm1300_vm6, %v1988_v2, 0.0 }
 0x5bd   :  { %5937 = vmatpush1.bf16.msra.mxu1 %v7440_v55  ;;  %v7464_v55 = vld [vmem:[#allocation26 + $0x230] ss:$8 sps:$4 sm:$0xff]   ;;  %v2159_v20 = vrot.slane %v2158_v19, 4  ;;  %v7491_v2 = vld [vmem:[#allocation26 + $0xa60] ss:$8 sps:$4 sm:$0xff]  }
 0x5be   :  { %5947 = vmatprep.subr.bf16.mxu1 %v7448_v29  ;;  %v2138_v29 = vrot.slane %v2137_v14, 4 }
 0x5bf   :  { %6263 = vmatpush1.bf16.msra.mxu0 %v7443_v44  ;;  %v7467_v44 = vld [vmem:[#allocation26 + $0xa20] ss:$8 sps:$4 sm:$0xff]   ;;  %v2160_v62 = vadd.f32 %v2159_v20, %v2158_v19  ;;  %v7497_v19 = vld [vmem:[#allocation26 + $0xa70] ss:$8 sps:$4 sm:$0xff]  }
 0x5c0   :  { %6264 = vmatprep.subr.bf16.mxu0 %v7451_v59  ;;  %5939 = vmatmul.mubr.bf16.vlgmr.msra.gmra.mrb[12].mxu1 %v2751_v39  ;;  %v7475_v59 = vld [vmem:[#allocation26 + $0xa34] ss:$8 sps:$4 sm:$0xff]   ;;  %v2139_v45 = vadd.f32 %v2138_v29, %v2137_v14  ;;  %v7479_v39 = vld [vmem:[#allocation26 + $0xa40] ss:$8 sps:$4 sm:$0xff]  }
 0x5c1   :  { %5948 = vmatpush1.bf16.msra.mxu1 %v7446_v43  ;;  %5979 = vmatprep.mubr.bf16.mxu1 %v2754_v63  ;;  %v7476_v43 = vld [vmem:[#allocation26 + $0x250] ss:$8 sps:$4 sm:$0xff]   ;;  %v7487_v63 = vld [vmem:[#allocation26 + $0xa54] ss:$8 sps:$4 sm:$0xff]   ;;  %v2161_v41 = vrot.slane %v2160_v62, 2 }
 0x5c2   :  { %5949 = vmatprep.subr.bf16.mxu1 %v7454_v22  ;;  %v2140_v22 = vrot.slane %v2139_v45, 2  ;;  %v7494_v14 = vld [vmem:[#allocation26 + $0x280] ss:$8 sps:$4 sm:$0xff]  }
 0x5c3   :  { %6265 = vmatpush1.bf16.msra.mxu0 %v7449_v5  ;;  %v7484_v5 = vld [vmem:[#allocation26 + $0x264] ss:$8 sps:$4 sm:$0xff]  }
 0x5c4   :  { %6275 = vmatprep.subr.bf16.mxu0 %v7457_v38  ;;  %v9493_v38 = vmul.f32 0.33333334, %v9186_v10 }
 0x5c5   :  { %5950 = vmatpush1.bf16.msra.mxu1 %v7452_v52  ;;  %v7485_v52 = vld [vmem:[#allocation26 + $0xa50] ss:$8 sps:$4 sm:$0xff]  }
 0x5c6   :  { %6267 = vmatmul.mubr.bf16.vlgmr.msra.gmra.mrb[12].mxu0 %v2767_v0  ;;  %5951 = vmatprep.subr.bf16.mxu1 %v7460_v18  ;;  %v2141_v0 = vadd.f32 %v2140_v22, %v2139_v45  ;;  %v7493_v18 = vld [vmem:[#allocation26 + $0xa64] ss:$8 sps:$4 sm:$0xff]   ;;  %v9497_v21 = vadd.f32 %v9493_v38, %v9196_v23  ;;  %v9506_v23 = vadd.f32 %v9500_v40, %v9170_v15  ;;  %v1852_v15 = vsel %vm1300_vm6, %v9186_v10, 0.0  ;;  %v7506_v22 = vld [vmem:[#allocation26 + $0x2a0] ss:$8 sps:$4 sm:$0xff]  }
 0x5c7   :  { %6276 = vmatpush1.bf16.msra.mxu0 %v7455_v58  ;;  %6307 = vmatprep.mubr.bf16.mxu0 %v2770_v50  ;;  %v7490_v58 = vld [vmem:[#allocation26 + $0x274] ss:$8 sps:$4 sm:$0xff]   ;;  %v7488_v50 = vld [vmem:[#allocation26 + $0x270] ss:$8 sps:$4 sm:$0xff]  }
 0x5c8   :  { %6277 = vmatprep.subr.bf16.mxu0 %v7463_v36  ;;  %v2162_v36 = vadd.f32 %v2161_v41, %v2160_v62  ;;  %v2142_v24 = vrot.slane %v2141_v0, 1  ;;  %v1831_v20 = vsel %vm1300_vm6, %v9506_v23, 0.0  ;;  %v7514_v41 = vld [vmem:[#allocation26 + $0x2b4] ss:$8 sps:$4 sm:$0xff]  }
 0x5c9   :  { %5952 = vmatpush1.bf16.msra.mxu1 %v7458_v13  ;;  %v7496_v13 = vld [vmem:[#allocation26 + $0x284] ss:$8 sps:$4 sm:$0xff]  }
 0x5ca   :  { %5953 = vmatprep.subr.bf16.mxu1 %v7466_v4  ;;  %v2163_v4 = vrot.slane %v2162_v36, 1 }
 0x5cb   :  { %6278 = vmatpush1.bf16.msra.mxu0 %v7461_v9  ;;  %v7499_v9 = vld [vmem:[#allocation26 + $0xa74] ss:$8 sps:$4 sm:$0xff]  }
 0x5cc   :  { %6279 = vmatprep.subr.bf16.mxu0 %v7469_v61  ;;  %v1740_v61 = vsel %vm1300_vm6, %v9497_v21, 0.0  ;;  %v2164_v29 = vadd.f32 %v2163_v4, %v2162_v36 }
 0x5cd   :  { %5954 = vmatpush1.bf16.msra.mxu1 %v7464_v55  ;;  %v7502_v55 = vld [vmem:[#allocation26 + $0x294] ss:$8 sps:$4 sm:$0xff]  }
 0x5ce   :  { %5955 = vmatprep.subr.bf16.mxu1 %v7472_v28  ;;  %v7505_v28 = vld [vmem:[#allocation26 + $0xa84] ss:$8 sps:$4 sm:$0xff]   ;;  %v2244_v62 = vmul.f32 0.25, %v2164_v29 }
 0x5cf   :  { %6280 = vmatpush1.bf16.msra.mxu0 %v7467_v44  ;;  %v2143_v44 = vadd.f32 %v2142_v24, %v2141_v0  ;;  %v7523_v24 = vld [vmem:[#allocation26 + $0xab4] ss:$8 sps:$4 sm:$0xff]  }
 0x5d0   :  { %6281 = vmatprep.subr.bf16.mxu0 %v7475_v59  ;;  %v1741_v59 = vrot.slane %v1740_v61, 4 }
 0x5d1   :  { %5956 = vmatpush1.bf16.msra.mxu1 %v7470_v37  ;;  %v7500_v37 = vld [vmem:[#allocation26 + $0x290] ss:$8 sps:$4 sm:$0xff]   ;;  %v2241_v45 = vmul.f32 0.25, %v2143_v44  ;;  %v7529_v44 = vld [vmem:[#allocation26 + $0xac4] ss:$8 sps:$4 sm:$0xff]  }
 0x5d2   :  { %5957 = vmatprep.subr.bf16.mxu1 %v7478_v35  ;;  %v7508_v35 = vld [vmem:[#allocation26 + $0x2a4] ss:$8 sps:$4 sm:$0xff]  }
 0x5d3   :  { %6282 = vmatpush1.bf16.msra.mxu0 %v7473_v6  ;;  %v7503_v6 = vld [vmem:[#allocation26 + $0xa80] ss:$8 sps:$4 sm:$0xff]  }
 0x5d4   :  { %6283 = vmatprep.subr.bf16.mxu0 %v7481_v49  ;;  %v7511_v49 = vld [vmem:[#allocation26 + $0xa94] ss:$8 sps:$4 sm:$0xff]  }
 0x5d5   :  { %5958 = vmatpush1.bf16.msra.mxu1 %v7476_v43  ;;  %v1742_v43 = vadd.f32 %v1741_v59, %v1740_v61 }
 0x5d6   :  { %5959 = vmatprep.subr.bf16.mxu1 %v7484_v5  ;;  %v1853_v5 = vrot.slane %v1852_v15, 4 }
 0x5d7   :  { %6284 = vmatpush1.bf16.msra.mxu0 %v7479_v39  ;;  %v1832_v39 = vrot.slane %v1831_v20, 4  ;;  %v1743_v0 = vrot.slane %v1742_v43, 2 }
 0x5d8   :  { %6285 = vmatprep.subr.bf16.mxu0 %v7487_v63  ;;  %v7509_v63 = vld [vmem:[#allocation26 + $0xa90] ss:$8 sps:$4 sm:$0xff]   ;;  %v1854_v36 = vadd.f32 %v1853_v5, %v1852_v15  ;;  %v7532_v15 = vld [vmem:[#allocation26 + $0x2e4] ss:$8 sps:$4 sm:$0xff]  }
 0x5d9   :  { %5960 = vmatpush1.bf16.msra.mxu1 %v7482_v60  ;;  %v2273_v60 = vadd.f32 1e-05, %v2241_v45  ;;  %v7533_v5 = vld [vmem:[#allocation26 + $0xad0] ss:$8 sps:$4 sm:$0xff]  }
 0x5da   :  { %5961 = vmatprep.subr.bf16.mxu1 %v7490_v58  ;;  %v2276_v58 = vadd.f32 1e-05, %v2244_v62  ;;  %v1855_v61 = vrot.slane %v1854_v36, 2 }
 0x5db   :  { %6286 = vmatpush1.bf16.msra.mxu0 %v7485_v52  ;;  %v7517_v52 = vld [vmem:[#allocation26 + $0xaa4] ss:$8 sps:$4 sm:$0xff]   ;;  %8095 = vrsqrt.f32 %v2273_v60  ;;  %v2440_v60 = vrot.slane %v9456_v53, %v8950_v25 }
 0x5dc   :  { %6287 = vmatprep.subr.bf16.mxu0 %v7493_v18  ;;  %v1833_v18 = vadd.f32 %v1832_v39, %v1831_v20  ;;  %8097 = vrsqrt.f32 %v2276_v58  ;;  %v1856_v59 = vadd.f32 %v1855_v61, %v1854_v36  ;;  %v7524_v20 = vld [vmem:[#allocation26 + $0x2d0] ss:$8 sps:$4 sm:$0xff]   ;;  %v7530_v39 = vld [vmem:[#allocation26 + $0x2e0] ss:$8 sps:$4 sm:$0xff]  }
 0x5dd   :  { %5962 = vmatpush1.bf16.msra.mxu1 %v7488_v50  ;;  %v7512_v50 = vld [vmem:[#allocation26 + $0x2b0] ss:$8 sps:$4 sm:$0xff]  }
 0x5de   :  { %5963 = vmatprep.subr.bf16.mxu1 %v7496_v13  ;;  %v7520_v13 = vld [vmem:[#allocation26 + $0x2c4] ss:$8 sps:$4 sm:$0xff]   ;;  %v1834_v4 = vrot.slane %v1833_v18, 2  ;;  %v1857_v62 = vrot.slane %v1856_v59, 1 }
 0x5df   :  { %6288 = vmatpush1.bf16.msra.mxu0 %v7491_v2  ;;  %v7515_v2 = vld [vmem:[#allocation26 + $0xaa0] ss:$8 sps:$4 sm:$0xff]  }
 0x5e0   :  { %6289 = vmatprep.subr.bf16.mxu0 %v7499_v9  ;;  %v1744_v9 = vadd.f32 %v1743_v0, %v1742_v43  ;;  %v1835_v29 = vadd.f32 %v1834_v4, %v1833_v18  ;;  %v2452_v18 = vrot.slane %v9456_v53, %v8956_v32  ;;  %v1858_v36 = vadd.f32 %v1857_v62, %v1856_v59  ;;  %v7559_v62 = vld [vmem:[#allocation26 + $0xb14] ss:$8 sps:$4 sm:$0xff]  }
 0x5e1   :  { %5964 = vmatpush1.bf16.msra.mxu1 %v7494_v14  ;;  %v7518_v14 = vld [vmem:[#allocation26 + $0x2c0] ss:$8 sps:$4 sm:$0xff]  }
 0x5e2   :  { %5965 = vmatprep.subr.bf16.mxu1 %v7502_v55  ;;  %v7526_v55 = vld [vmem:[#allocation26 + $0x2d4] ss:$8 sps:$4 sm:$0xff]   ;;  %v1836_v45 = vrot.slane %v1835_v29, 1 }
 0x5e3   :  { %6290 = vmatpush1.bf16.msra.mxu0 %v7497_v19  ;;  %v7521_v19 = vld [vmem:[#allocation26 + $0xab0] ss:$8 sps:$4 sm:$0xff]  }
 0x5e4   :  { %6291 = vmatprep.subr.bf16.mxu0 %v7505_v28  ;;  %v1745_v28 = vrot.slane %v1744_v9, 1  ;;  %v1837_v58 = vadd.f32 %v1836_v45, %v1835_v29  ;;  %v7550_v29 = vld [vmem:[#allocation26 + $0x314] ss:$8 sps:$4 sm:$0xff]   ;;  %v7551_v45 = vld [vmem:[#allocation26 + $0xb00] ss:$8 sps:$4 sm:$0xff]  }
 0x5e5   :  { %5966 = vmatpush1.bf16.msra.mxu1 %v7500_v37  ;;  %v7527_v37 = vld [vmem:[#allocation26 + $0xac0] ss:$8 sps:$4 sm:$0xff]  }
 0x5e6   :  { %5967 = vmatprep.subr.bf16.mxu1 %v7508_v35  ;;  %v1746_v35 = vadd.f32 %v1745_v28, %v1744_v9  ;;  %v2640_v9 = vrot.slane %v9465_v1, %v8950_v25  ;;  %v7545_v28 = vld [vmem:[#allocation26 + $0xaf0] ss:$8 sps:$4 sm:$0xff]  }
 0x5e7   :  { %6292 = vmatpush1.bf16.msra.mxu0 %v7503_v6  ;;  %v7535_v6 = vld [vmem:[#allocation26 + $0xad4] ss:$8 sps:$4 sm:$0xff]  }
 0x5e8   :  { %6293 = vmatprep.subr.bf16.mxu0 %v7511_v49  ;;  %v8096_v49 = vpop.eup %8095 }
 0x5e9   :  { %5968 = vmatpush1.bf16.msra.mxu1 %v7506_v22  ;;  %v8098_v43 = vpop.eup %8097  ;;  %v7538_v22 = vld [vmem:[#allocation26 + $0x2f4] ss:$8 sps:$4 sm:$0xff]  }
 0x5ea   :  { %5969 = vmatprep.subr.bf16.mxu1 %v7514_v41  ;;  %v2337_v41 = vmul.f32 %v8096_v49, %v9476_v47  ;;  %v2340_v0 = vmul.f32 %v8098_v43, %v9479_v17  ;;  %v1923_v17 = vmul.f32 0.25, %v1837_v58  ;;  %v7556_v49 = vld [vmem:[#allocation26 + $0x324] ss:$8 sps:$4 sm:$0xff]  }
 0x5eb   :  { %6294 = vmatpush1.bf16.msra.mxu0 %v7509_v63  ;;  %v7541_v63 = vld [vmem:[#allocation26 + $0xae4] ss:$8 sps:$4 sm:$0xff]  }
 0x5ec   :  { %6295 = vmatprep.subr.bf16.mxu0 %v7517_v52  ;;  %v1910_v52 = vmul.f32 0.25, %v1746_v35  ;;  %v2537_v47 = vmul.f32 %v2440_v60, %v2337_v41  ;;  %v2540_v61 = vmul.f32 %v2452_v18, %v2340_v0  ;;  %v7562_v41 = vld [vmem:[#allocation26 + $0x334] ss:$8 sps:$4 sm:$0xff]   ;;  %v7560_v18 = vld [vmem:[#allocation26 + $0x330] ss:$8 sps:$4 sm:$0xff]  }
 0x5ed   :  { %5970 = vmatpush1.bf16.msra.mxu1 %v7512_v50  ;;  %v7536_v50 = vld [vmem:[#allocation26 + $0x2f0] ss:$8 sps:$4 sm:$0xff]  }
 0x5ee   :  { %5971 = vmatprep.subr.bf16.mxu1 %v7520_v13  ;;  %v7544_v13 = vld [vmem:[#allocation26 + $0x304] ss:$8 sps:$4 sm:$0xff]   ;;  %v9521_v4 = vsub.f32 %v9497_v21, %v1910_v52  ;;  %v2756_v21 = vpack.c.bf16 %v9450_v30, %v9450_v30  ;;  %v2737_v59 = vadd.f32 %v2640_v9, %v2537_v47  ;;  %v1614_v9 = vmul.f32 0.44444445, %v9182_v34 }
 0x5ef   :  { %6296 = vmatpush1.bf16.msra.mxu0 %v7515_v2  ;;  %v7539_v2 = vld [vmem:[#allocation26 + $0xae0] ss:$8 sps:$4 sm:$0xff]   ;;  %v7565_v52 = vld [vmem:[#allocation26 + $0xb24] ss:$8 sps:$4 sm:$0xff]  }
 0x5f0   :  { %6297 = vmatprep.subr.bf16.mxu0 %v7523_v24  ;;  %v7547_v24 = vld [vmem:[#allocation26 + $0xaf4] ss:$8 sps:$4 sm:$0xff]   ;;  %v2769_v30 = vpack.c.bf16 %v2737_v59, %v2737_v59  ;;  %v7575_v59 = vld [vmem:[#allocation26 + $0xb40] ss:$8 sps:$4 sm:$0xff]  }
 0x5f1   :  { %5972 = vmatpush1.bf16.msra.mxu1 %v7518_v14  ;;  %v2652_v14 = vrot.slane %v9465_v1, %v8956_v32 }
 0x5f2   :  { %5973 = vmatprep.subr.bf16.mxu1 %v7526_v55  ;;  %v7542_v55 = vld [vmem:[#allocation26 + $0x300] ss:$8 sps:$4 sm:$0xff]  }
 0x5f3   :  { %6298 = vmatpush1.bf16.msra.mxu0 %v7521_v19  ;;  %v1926_v19 = vmul.f32 0.25, %v1858_v36  ;;  %v7563_v36 = vld [vmem:[#allocation26 + $0xb20] ss:$8 sps:$4 sm:$0xff]  }
 0x5f4   :  { %6299 = vmatprep.subr.bf16.mxu0 %v7529_v44  ;;  %v2753_v44 = vpack.c.bf16 %v9448_v54, %v9448_v54  ;;  %v7548_v54 = vld [vmem:[#allocation26 + $0x310] ss:$8 sps:$4 sm:$0xff]  }
 0x5f5   :  { %5974 = vmatpush1.bf16.msra.mxu1 %v7524_v20  ;;  %v7553_v20 = vld [vmem:[#allocation26 + $0xb04] ss:$8 sps:$4 sm:$0xff]   ;;  %v9535_v35 = vsub.f32 %v9186_v10, %v1926_v19 }
 0x5f6   :  { %5975 = vmatprep.subr.bf16.mxu1 %v7532_v15  ;;  %v9532_v15 = vsub.f32 %v9506_v23, %v1923_v17  ;;  %v7566_v17 = vld [vmem:[#allocation26 + $0x340] ss:$8 sps:$4 sm:$0xff]  }
 0x5f7   :  { %6300 = vmatpush1.bf16.msra.mxu0 %v7527_v37  ;;  %v1974_v37 = vmul.f32 %v9521_v4, %v9521_v4 }
 0x5f8   :  { %6301 = vmatprep.subr.bf16.mxu0 %v7535_v6  ;;  %v2740_v6 = vadd.f32 %v2652_v14, %v2540_v61  ;;  %v1987_v23 = vmul.f32 %v9532_v15, %v9532_v15  ;;  %v7569_v61 = vld [vmem:[#allocation26 + $0xb30] ss:$8 sps:$4 sm:$0xff]   ;;  %v7574_v14 = vld [vmem:[#allocation26 + $0x354] ss:$8 sps:$4 sm:$0xff]  }
 0x5f9   :  { %5976 = vmatpush1.bf16.msra.mxu1 %v7530_v39  ;;  %v2060_v43 = vsel %vm1300_vm6, %v1974_v37, 0.0 }
 0x5fa   :  { %5977 = vmatprep.subr.bf16.mxu1 %v7538_v22  ;;  %v2772_v39 = vpack.c.bf16 %v2740_v6, %v2740_v6  ;;  %v7554_v22 = vld [vmem:[#allocation26 + $0x320] ss:$8 sps:$4 sm:$0xff]   ;;  %v2061_v60 = vrot.slane %v2060_v43, 4  ;;  %v2151_v58 = vsel %vm1300_vm6, %v1987_v23, 0.0  ;;  %v7583_v6 = vld [vmem:[#allocation26 + $0xb54] ss:$8 sps:$4 sm:$0xff]  }
 0x5fb   :  { %6302 = vmatpush1.bf16.msra.mxu0 %v7533_v5  ;;  %v1990_v5 = vmul.f32 %v9535_v35, %v9535_v35 }
 0x5fc   :  { %6303 = vmatprep.subr.bf16.mxu0 %v7541_v63  ;;  %v7557_v63 = vld [vmem:[#allocation26 + $0xb10] ss:$8 sps:$4 sm:$0xff]  }
 0x5fd   :  { %5978 = vmatpush1.bf16.msra.mxu1 %v7536_v50  ;;  %v2172_v0 = vsel %vm1300_vm6, %v1990_v5, 0.0  ;;  %v7568_v50 = vld [vmem:[#allocation26 + $0x344] ss:$8 sps:$4 sm:$0xff]  }
 0x5fe   :  { %5988 = vmatprep.subr.bf16.mxu1 %v7544_v13  ;;  %v2152_v13 = vrot.slane %v2151_v58, 4  ;;  %v2173_v47 = vrot.slane %v2172_v0, 4  ;;  %v7589_v5 = vld [vmem:[#allocation26 + $0xb64] ss:$8 sps:$4 sm:$0xff]  }
 0x5ff   :  { %6304 = vmatpush1.bf16.msra.mxu0 %v7539_v2  ;;  %v2062_v2 = vadd.f32 %v2061_v60, %v2060_v43 }
 0x600   :  { %6305 = vmatprep.subr.bf16.mxu0 %v7547_v24  ;;  %5980 = vmatmul.mubr.bf16.vlgmr.msra.gmra.mrb[12].mxu1 %v2753_v44  ;;  %v7571_v24 = vld [vmem:[#allocation26 + $0xb34] ss:$8 sps:$4 sm:$0xff]   ;;  %v7577_v44 = vld [vmem:[#allocation26 + $0xb44] ss:$8 sps:$4 sm:$0xff]  }
 0x601   :  { %5989 = vmatpush1.bf16.msra.mxu1 %v7542_v55  ;;  %6020 = vmatprep.mubr.bf16.mxu1 %v2756_v21  ;;  %v2063_v19 = vrot.slane %v2062_v2, 2  ;;  %v2153_v55 = vadd.f32 %v2152_v13, %v2151_v58  ;;  %v7572_v21 = vld [vmem:[#allocation26 + $0x350] ss:$8 sps:$4 sm:$0xff]   ;;  %v7587_v58 = vld [vmem:[#allocation26 + $0xb60] ss:$8 sps:$4 sm:$0xff]  }
 0x602   :  { %5990 = vmatprep.subr.bf16.mxu1 %v7550_v29  ;;  %v1618_v29 = vadd.f32 %v9293_v48, %v1614_v9  ;;  %v7586_v48 = vld [vmem:[#allocation26 + $0x374] ss:$8 sps:$4 sm:$0xff]   ;;  %v9886_v9 = vld [vmem:[#allocation43_spill] sm:$0xff] }
 0x603   :  { %6306 = vmatpush1.bf16.msra.mxu0 %v7545_v28  ;;  %v2174_v28 = vadd.f32 %v2173_v47, %v2172_v0  ;;  %v2064_v34 = vadd.f32 %v2063_v19, %v2062_v2  ;;  %v2154_v37 = vrot.slane %v2153_v55, 2  ;;  %v7592_v0 = vld [vmem:[#allocation26 + $0x384] ss:$8 sps:$4 sm:$0xff]   ;;  %v7590_v47 = vld [vmem:[#allocation26 + $0x380] ss:$8 sps:$4 sm:$0xff]  }
 0x604   :  { %6316 = vmatprep.subr.bf16.mxu0 %v7553_v20  ;;  %v7580_v20 = vld [vmem:[#allocation26 + $0x364] ss:$8 sps:$4 sm:$0xff]  }
 0x605   :  { %5991 = vmatpush1.bf16.msra.mxu1 %v7548_v54  ;;  %v2175_v54 = vrot.slane %v2174_v28, 2  ;;  %v2065_v43 = vrot.slane %v2064_v34, 1  ;;  %v2155_v23 = vadd.f32 %v2154_v37, %v2153_v55 }
 0x606   :  { %6308 = vmatmul.mubr.bf16.vlgmr.msra.gmra.mrb[12].mxu0 %v2769_v30  ;;  %5992 = vmatprep.subr.bf16.mxu1 %v7556_v49  ;;  %v1622_v30 = vadd.f32 %v9305_v51, %v1618_v29  ;;  %v7578_v49 = vld [vmem:[#allocation26 + $0x360] ss:$8 sps:$4 sm:$0xff]   ;;  %v7584_v51 = vld [vmem:[#allocation26 + $0x370] ss:$8 sps:$4 sm:$0xff]  }
 0x607   :  { %6317 = vmatpush1.bf16.msra.mxu0 %v7551_v45  ;;  %6348 = vmatprep.mubr.bf16.mxu0 %v2772_v39  ;;  %v9547_v45 = vmul.f32 0.33333334, %v9142_v46  ;;  %v1624_v39 = vmul.f32 0.11111111, %v9180_v16 }
 0x608   :  { %6318 = vmatprep.subr.bf16.mxu0 %v7559_v62  ;;  %v7581_v62 = vld [vmem:[#allocation26 + $0xb50] ss:$8 sps:$4 sm:$0xff]  }
 0x609   :  { %5993 = vmatpush1.bf16.msra.mxu1 %v7554_v22  ;;  %v2176_v22 = vadd.f32 %v2175_v54, %v2174_v28  ;;  %v9555_v60 = vadd.f32 %v1624_v39, %v1622_v30  ;;  %v7601_v28 = vld [vmem:[#allocation26 + $0xb84] ss:$8 sps:$4 sm:$0xff]  }
 0x60a   :  { %5994 = vmatprep.subr.bf16.mxu1 %v7562_v41 }
 0x60b   :  { %6319 = vmatpush1.bf16.msra.mxu0 %v7557_v63  ;;  %v9885_v63 = vld [vmem:[#allocation41_spill] sm:$0xff]  ;;  %v2177_v2 = vrot.slane %v2176_v22, 1 }
 0x60c   :  { %6320 = vmatprep.subr.bf16.mxu0 %v7565_v52  ;;  %v9553_v41 = vadd.f32 %v9547_v45, %v9885_v63  ;;  %v9558_v52 = vmul.f32 0.33333334, %v9180_v16  ;;  %v7610_v63 = vld [vmem:[#allocation26 + $0x3b4] ss:$8 sps:$4 sm:$0xff]  }
 0x60d   :  { %5995 = vmatpush1.bf16.msra.mxu1 %v7560_v18  ;;  %v2066_v18 = vadd.f32 %v2065_v43, %v2064_v34  ;;  %v2178_v29 = vadd.f32 %v2177_v2, %v2176_v22  ;;  %v7599_v34 = vld [vmem:[#allocation26 + $0xb80] ss:$8 sps:$4 sm:$0xff]   ;;  %v7605_v22 = vld [vmem:[#allocation26 + $0xb90] ss:$8 sps:$4 sm:$0xff]  }
 0x60e   :  { %5996 = vmatprep.subr.bf16.mxu1 %v7568_v50  ;;  %v7595_v50 = vld [vmem:[#allocation26 + $0xb74] ss:$8 sps:$4 sm:$0xff]   ;;  %v1733_v13 = vsel %vm1300_vm6, %v9553_v41, 0.0 }
 0x60f   :  { %6321 = vmatpush1.bf16.msra.mxu0 %v7563_v36  ;;  %v2156_v36 = vrot.slane %v2155_v23, 1  ;;  %v2230_v19 = vmul.f32 0.25, %v2066_v18  ;;  %v2246_v43 = vmul.f32 0.25, %v2178_v29  ;;  %v7613_v18 = vld [vmem:[#allocation26 + $0xba4] ss:$8 sps:$4 sm:$0xff]  }
 0x610   :  { %6322 = vmatprep.subr.bf16.mxu0 %v7571_v24  ;;  %v1754_v24 = vsel %vm1300_vm6, %v9555_v60, 0.0  ;;  %v7622_v29 = vld [vmem:[#allocation26 + $0x3d4] ss:$8 sps:$4 sm:$0xff]  }
 0x611   :  { %5997 = vmatpush1.bf16.msra.mxu1 %v7566_v17  ;;  %v9566_v17 = vadd.f32 %v9886_v9, %v9558_v52  ;;  %v2157_v55 = vadd.f32 %v2156_v36, %v2155_v23  ;;  %v2262_v54 = vadd.f32 1e-05, %v2230_v19  ;;  %v2278_v36 = vadd.f32 1e-05, %v2246_v43 }
 0x612   :  { %5998 = vmatprep.subr.bf16.mxu1 %v7574_v14  ;;  %v7598_v14 = vld [vmem:[#allocation26 + $0x394] ss:$8 sps:$4 sm:$0xff]  }
 0x613   :  { %6323 = vmatpush1.bf16.msra.mxu0 %v7569_v61  ;;  %v7593_v61 = vld [vmem:[#allocation26 + $0xb70] ss:$8 sps:$4 sm:$0xff]   ;;  %v1866_v37 = vsel %vm1300_vm6, %v9566_v17, 0.0  ;;  %v2243_v30 = vmul.f32 0.25, %v2157_v55  ;;  %8099 = vrsqrt.f32 %v2262_v54 }
 0x614   :  { %6324 = vmatprep.subr.bf16.mxu0 %v7577_v44  ;;  %v1734_v44 = vrot.slane %v1733_v13, 4  ;;  %v1867_v39 = vrot.slane %v1866_v37, 4 }
 0x615   :  { %5999 = vmatpush1.bf16.msra.mxu1 %v7572_v21  ;;  %v1755_v21 = vrot.slane %v1754_v24, 4 }
 0x616   :  { %6000 = vmatprep.subr.bf16.mxu1 %v7580_v20  ;;  %v7596_v20 = vld [vmem:[#allocation26 + $0x390] ss:$8 sps:$4 sm:$0xff]   ;;  %v1868_v2 = vadd.f32 %v1867_v39, %v1866_v37 }
 0x617   :  { %6325 = vmatpush1.bf16.msra.mxu0 %v7575_v59  ;;  %v1845_v59 = vsel %vm1300_vm6, %v9142_v46, 0.0  ;;  %v1756_v23 = vadd.f32 %v1755_v21, %v1754_v24  ;;  %v7611_v24 = vld [vmem:[#allocation26 + $0xba0] ss:$8 sps:$4 sm:$0xff]  }
 0x618   :  { %6326 = vmatprep.subr.bf16.mxu0 %v7583_v6  ;;  %v7604_v6 = vld [vmem:[#allocation26 + $0x3a4] ss:$8 sps:$4 sm:$0xff]   ;;  %v1869_v55 = vrot.slane %v1868_v2, 2 }
 0x619   :  { %6001 = vmatpush1.bf16.msra.mxu1 %v7578_v49  ;;  %v1735_v49 = vadd.f32 %v1734_v44, %v1733_v13  ;;  %v7608_v13 = vld [vmem:[#allocation26 + $0x3b0] ss:$8 sps:$4 sm:$0xff]   ;;  %v7614_v44 = vld [vmem:[#allocation26 + $0x3c0] ss:$8 sps:$4 sm:$0xff]  }
 0x61a   :  { %6002 = vmatprep.subr.bf16.mxu1 %v7586_v48  ;;  %v7607_v48 = vld [vmem:[#allocation26 + $0xb94] ss:$8 sps:$4 sm:$0xff]   ;;  %v1870_v54 = vadd.f32 %v1869_v55, %v1868_v2 }
 0x61b   :  { %6327 = vmatpush1.bf16.msra.mxu0 %v7581_v62  ;;  %v1846_v62 = vrot.slane %v1845_v59, 4  ;;  %v7634_v2 = vld [vmem:[#allocation26 + $0x3f4] ss:$8 sps:$4 sm:$0xff]  }
 0x61c   :  { %6328 = vmatprep.subr.bf16.mxu0 %v7589_v5  ;;  %v7602_v5 = vld [vmem:[#allocation26 + $0x3a0] ss:$8 sps:$4 sm:$0xff]  }
 0x61d   :  { %6003 = vmatpush1.bf16.msra.mxu1 %v7584_v51  ;;  %v2275_v51 = vadd.f32 1e-05, %v2243_v30  ;;  %v8100_v37 = vpop.eup %8099  ;;  %v7620_v30 = vld [vmem:[#allocation26 + $0x3d0] ss:$8 sps:$4 sm:$0xff]  }
 0x61e   :  { %6004 = vmatprep.subr.bf16.mxu1 %v7592_v0  ;;  %v1847_v0 = vadd.f32 %v1846_v62, %v1845_v59  ;;  %v7628_v62 = vld [vmem:[#allocation26 + $0x3e4] ss:$8 sps:$4 sm:$0xff]   ;;  %v2326_v39 = vmul.f32 %v8100_v37, %v9521_v4 }
 0x61f   :  { %6329 = vmatpush1.bf16.msra.mxu0 %v7587_v58  ;;  %v1736_v58 = vrot.slane %v1735_v49, 2  ;;  %8101 = vrsqrt.f32 %v2275_v51 }
 0x620   :  { %6330 = vmatprep.subr.bf16.mxu0 %v7595_v50  ;;  %v1757_v50 = vrot.slane %v1756_v23, 2  ;;  %8103 = vrsqrt.f32 %v2278_v36  ;;  %v9579_v36 = vld [vmem:[#allocation23 + $0x18] sm:$0xff] }
 0x621   :  { %6005 = vmatpush1.bf16.msra.mxu1 %v7590_v47  ;;  %v7616_v47 = vld [vmem:[#allocation26 + $0x3c4] ss:$8 sps:$4 sm:$0xff]   ;;  %v1737_v9 = vadd.f32 %v1736_v58, %v1735_v49  ;;  %v7623_v49 = vld [vmem:[#allocation26 + $0xbc0] ss:$8 sps:$4 sm:$0xff]   ;;  %v1871_v58 = vrot.slane %v1870_v54, 1 }
 0x622   :  { %6006 = vmatprep.subr.bf16.mxu1 %v7598_v14  ;;  %v7619_v14 = vld [vmem:[#allocation26 + $0xbb4] ss:$8 sps:$4 sm:$0xff]   ;;  %v1758_v19 = vadd.f32 %v1757_v50, %v1756_v23  ;;  %v7629_v50 = vld [vmem:[#allocation26 + $0xbd0] ss:$8 sps:$4 sm:$0xff]  }
 0x623   :  { %6331 = vmatpush1.bf16.msra.mxu0 %v7593_v61  ;;  %v1848_v61 = vrot.slane %v1847_v0, 2  ;;  %v1738_v21 = vrot.slane %v1737_v9, 1  ;;  %v7631_v23 = vld [vmem:[#allocation26 + $0xbd4] ss:$8 sps:$4 sm:$0xff]  }
 0x624   :  { %6332 = vmatprep.subr.bf16.mxu0 %v7601_v28  ;;  %v7617_v28 = vld [vmem:[#allocation26 + $0xbb0] ss:$8 sps:$4 sm:$0xff]  }
 0x625   :  { %6007 = vmatpush1.bf16.msra.mxu1 %v7596_v20  ;;  %v1849_v59 = vadd.f32 %v1848_v61, %v1847_v0  ;;  %v7625_v20 = vld [vmem:[#allocation26 + $0xbc4] ss:$8 sps:$4 sm:$0xff]  }
 0x626   :  { %6008 = vmatprep.subr.bf16.mxu1 %v7604_v6  ;;  %v9572_v6 = vld [vmem:[#allocation23 + $0x8] sm:$0xff] }
 0x627   :  { %6333 = vmatpush1.bf16.msra.mxu0 %v7599_v34  ;;  %v1759_v34 = vrot.slane %v1758_v19, 1  ;;  %v1850_v43 = vrot.slane %v1849_v59, 1 }
 0x628   :  { %6334 = vmatprep.subr.bf16.mxu0 %v7607_v48  ;;  %v1739_v48 = vadd.f32 %v1738_v21, %v1737_v9  ;;  %v9589_v21 = vld [vmem:[#allocation25 + $0x18] sm:$0xff] }
 0x629   :  { %6009 = vmatpush1.bf16.msra.mxu1 %v7602_v5  ;;  %v2396_v5 = vrot.slane %v9572_v6, %v8938_v11  ;;  %v8102_v51 = vpop.eup %8101 }
 0x62a   :  { %6010 = vmatprep.subr.bf16.mxu1 %v7610_v63  ;;  %v1760_v63 = vadd.f32 %v1759_v34, %v1758_v19  ;;  %v8104_v0 = vpop.eup %8103  ;;  %v2339_v61 = vmul.f32 %v8102_v51, %v9532_v15  ;;  %v7649_v51 = vld [vmem:[#allocation26 + $0xc04] ss:$8 sps:$4 sm:$0xff]  }
 0x62b   :  { %6335 = vmatpush1.bf16.msra.mxu0 %v7605_v22  ;;  %v9577_v22 = vld [vmem:[#allocation25 + $0x8] sm:$0xff]  ;;  %v2526_v9 = vmul.f32 %v2396_v5, %v2326_v39  ;;  %v2342_v55 = vmul.f32 %v8104_v0, %v9535_v35  ;;  %v7646_v39 = vld [vmem:[#allocation26 + $0x414] ss:$8 sps:$4 sm:$0xff]  }
 0x62c   :  { %6336 = vmatprep.subr.bf16.mxu0 %v7613_v18  ;;  %v7626_v18 = vld [vmem:[#allocation26 + $0x3e0] ss:$8 sps:$4 sm:$0xff]   ;;  %v2596_v4 = vrot.slane %v9577_v22, %v8938_v11  ;;  %v1912_v19 = vmul.f32 0.25, %v1760_v63 }
 0x62d   :  { %6011 = vmatpush1.bf16.msra.mxu1 %v7608_v13  ;;  %v1909_v13 = vmul.f32 0.25, %v1739_v48 }
 0x62e   :  { %6012 = vmatprep.subr.bf16.mxu1 %v7616_v47  ;;  %v7637_v47 = vld [vmem:[#allocation26 + $0xbe4] ss:$8 sps:$4 sm:$0xff]   ;;  %v2726_v37 = vadd.f32 %v2596_v4, %v2526_v9 }
 0x62f   :  { %6337 = vmatpush1.bf16.msra.mxu0 %v7611_v24  ;;  %v1851_v24 = vadd.f32 %v1850_v43, %v1849_v59  ;;  %v7635_v59 = vld [vmem:[#allocation26 + $0xbe0] ss:$8 sps:$4 sm:$0xff]   ;;  %v9592_v15 = vsub.f32 %v9553_v41, %v1909_v13  ;;  %v2755_v41 = vpack.c.bf16 %v9463_v3, %v9463_v3 }
 0x630   :  { %6338 = vmatprep.subr.bf16.mxu0 %v7619_v14  ;;  %v2448_v14 = vrot.slane %v9456_v53, %v8952_v26  ;;  %v7643_v53 = vld [vmem:[#allocation26 + $0xbf4] ss:$8 sps:$4 sm:$0xff]   ;;  %v7638_v43 = vld [vmem:[#allocation26 + $0x400] ss:$8 sps:$4 sm:$0xff]   ;;  %v2758_v5 = vpack.c.bf16 %v2726_v37, %v2726_v37 }
 0x631   :  { %6013 = vmatpush1.bf16.msra.mxu1 %v7614_v44  ;;  %v2460_v44 = vrot.slane %v9579_v36, %v8938_v11  ;;  %v1925_v34 = vmul.f32 0.25, %v1851_v24  ;;  %v7652_v24 = vld [vmem:[#allocation26 + $0x424] ss:$8 sps:$4 sm:$0xff]  }
 0x632   :  { %6014 = vmatprep.subr.bf16.mxu1 %v7622_v29  ;;  %v7632_v29 = vld [vmem:[#allocation26 + $0x3f0] ss:$8 sps:$4 sm:$0xff]   ;;  %v2539_v35 = vmul.f32 %v2448_v14, %v2339_v61  ;;  %v7650_v14 = vld [vmem:[#allocation26 + $0x420] ss:$8 sps:$4 sm:$0xff]  }
 0x633   :  { %6339 = vmatpush1.bf16.msra.mxu0 %v7617_v28  ;;  %v1872_v28 = vadd.f32 %v1871_v58, %v1870_v54  ;;  %v9597_v54 = vsub.f32 %v9555_v60, %v1912_v19  ;;  %v9606_v60 = vsub.f32 %v9142_v46, %v1925_v34  ;;  %v7656_v34 = vld [vmem:[#allocation26 + $0x430] ss:$8 sps:$4 sm:$0xff]  }
 0x634   :  { %6340 = vmatprep.subr.bf16.mxu0 %v7625_v20  ;;  %v7640_v20 = vld [vmem:[#allocation26 + $0x404] ss:$8 sps:$4 sm:$0xff]  }
 0x635   :  { %6015 = vmatpush1.bf16.msra.mxu1 %v7620_v30  ;;  %v2648_v30 = vrot.slane %v9465_v1, %v8952_v26  ;;  %v1928_v48 = vmul.f32 0.25, %v1872_v28  ;;  %v1973_v1 = vmul.f32 %v9592_v15, %v9592_v15  ;;  %v1976_v58 = vmul.f32 %v9597_v54, %v9597_v54 }
 0x636   :  { %6016 = vmatprep.subr.bf16.mxu1 %v7628_v62  ;;  %v2660_v62 = vrot.slane %v9589_v21, %v8938_v11  ;;  %v1989_v4 = vmul.f32 %v9606_v60, %v9606_v60 }
 0x637   :  { %6341 = vmatpush1.bf16.msra.mxu0 %v7623_v49  ;;  %v2542_v49 = vmul.f32 %v2460_v44, %v2342_v55  ;;  %v2739_v63 = vadd.f32 %v2648_v30, %v2539_v35  ;;  %v9611_v3 = vsub.f32 %v9566_v17, %v1928_v48  ;;  %v2074_v9 = vsel %vm1300_vm6, %v1976_v58, 0.0  ;;  %v7653_v55 = vld [vmem:[#allocation26 + $0xc10] ss:$8 sps:$4 sm:$0xff]   ;;  %v7658_v44 = vld [vmem:[#allocation26 + $0x434] ss:$8 sps:$4 sm:$0xff]  }
 0x638   :  { %6342 = vmatprep.subr.bf16.mxu0 %v7631_v23  ;;  %v7641_v23 = vld [vmem:[#allocation26 + $0xbf0] ss:$8 sps:$4 sm:$0xff]   ;;  %v2075_v28 = vrot.slane %v2074_v9, 4  ;;  %v7659_v35 = vld [vmem:[#allocation26 + $0xc20] ss:$8 sps:$4 sm:$0xff]  }
 0x639   :  { %6017 = vmatpush1.bf16.msra.mxu1 %v7626_v18  ;;  %v2742_v0 = vadd.f32 %v2660_v62, %v2542_v49  ;;  %v7644_v18 = vld [vmem:[#allocation26 + $0x410] ss:$8 sps:$4 sm:$0xff]   ;;  %v2771_v13 = vpack.c.bf16 %v2739_v63, %v2739_v63  ;;  %v1992_v17 = vmul.f32 %v9611_v3, %v9611_v3  ;;  %v7664_v30 = vld [vmem:[#allocation26 + $0x444] ss:$8 sps:$4 sm:$0xff]   ;;  %v1630_v62 = vmul.f32 0.44444445, %v9184_v42 }
 0x63a   :  { %6018 = vmatprep.subr.bf16.mxu1 %v7634_v2  ;;  %v2053_v2 = vsel %vm1300_vm6, %v1973_v1, 0.0  ;;  %v2076_v49 = vadd.f32 %v2075_v28, %v2074_v9  ;;  %v7667_v48 = vld [vmem:[#allocation26 + $0xc34] ss:$8 sps:$4 sm:$0xff]   ;;  %v7665_v1 = vld [vmem:[#allocation26 + $0xc30] ss:$8 sps:$4 sm:$0xff]  }
 0x63b   :  { %6343 = vmatpush1.bf16.msra.mxu0 %v7629_v50  ;;  %v7647_v50 = vld [vmem:[#allocation26 + $0xc00] ss:$8 sps:$4 sm:$0xff]   ;;  %v2774_v61 = vpack.c.bf16 %v2742_v0, %v2742_v0  ;;  %v2054_v19 = vrot.slane %v2053_v2, 4  ;;  %v7673_v0 = vld [vmem:[#allocation26 + $0xc44] ss:$8 sps:$4 sm:$0xff]  }
 0x63c   :  { %6344 = vmatprep.subr.bf16.mxu0 %v7637_v47  ;;  %v7655_v47 = vld [vmem:[#allocation26 + $0xc14] ss:$8 sps:$4 sm:$0xff]   ;;  %v2077_v63 = vrot.slane %v2076_v49, 2  ;;  %v7668_v42 = vld [vmem:[#allocation26 + $0x450] ss:$8 sps:$4 sm:$0xff]  }
 0x63d   :  { %6019 = vmatpush1.bf16.msra.mxu1 %v7632_v29  ;;  %v2165_v29 = vsel %vm1300_vm6, %v1989_v4, 0.0  ;;  %v7677_v28 = vld [vmem:[#allocation26 + $0xc50] ss:$8 sps:$4 sm:$0xff]  }
 0x63e   :  { %6029 = vmatprep.subr.bf16.mxu1 %v7640_v20  ;;  %v2186_v20 = vsel %vm1300_vm6, %v1992_v17, 0.0  ;;  %v2166_v37 = vrot.slane %v2165_v29, 4 }
 0x63f   :  { %6345 = vmatpush1.bf16.msra.mxu0 %v7635_v59  ;;  %v7661_v59 = vld [vmem:[#allocation26 + $0xc24] ss:$8 sps:$4 sm:$0xff]  }
 0x640   :  { %6346 = vmatprep.subr.bf16.mxu0 %v7643_v53  ;;  %6021 = vmatmul.mubr.bf16.vlgmr.msra.gmra.mrb[12].mxu1 %v2755_v41  ;;  %v2055_v53 = vadd.f32 %v2054_v19, %v2053_v2  ;;  %v7662_v41 = vld [vmem:[#allocation26 + $0x440] ss:$8 sps:$4 sm:$0xff]  }
 0x641   :  { %6030 = vmatpush1.bf16.msra.mxu1 %v7638_v43  ;;  %6061 = vmatprep.mubr.bf16.mxu1 %v2758_v5  ;;  %v2187_v43 = vrot.slane %v2186_v20, 4  ;;  %v7670_v5 = vld [vmem:[#allocation26 + $0x454] ss:$8 sps:$4 sm:$0xff]   ;;  %v7674_v19 = vld [vmem:[#allocation26 + $0x460] ss:$8 sps:$4 sm:$0xff]  }
 0x642   :  { %6031 = vmatprep.subr.bf16.mxu1 %v7646_v39  ;;  %v2167_v39 = vadd.f32 %v2166_v37, %v2165_v29  ;;  %v7682_v29 = vld [vmem:[#allocation26 + $0x474] ss:$8 sps:$4 sm:$0xff]  }
 0x643   :  { %6347 = vmatpush1.bf16.msra.mxu0 %v7641_v23  ;;  %v2056_v23 = vrot.slane %v2055_v53, 2 }
 0x644   :  { %6357 = vmatprep.subr.bf16.mxu0 %v7649_v51  ;;  %v9887_v51 = vld [vmem:[#allocation44_spill] sm:$0xff]  ;;  %v2168_v4 = vrot.slane %v2167_v39, 2 }
 0x645   :  { %6032 = vmatpush1.bf16.msra.mxu1 %v7644_v18  ;;  %v1632_v58 = vadd.f32 %v1630_v62, %v9887_v51  ;;  %v2188_v18 = vadd.f32 %v2187_v43, %v2186_v20  ;;  %v2057_v2 = vadd.f32 %v2056_v23, %v2055_v53  ;;  %v9888_v20 = vld [vmem:[#allocation45_spill] sm:$0xff]  ;;  %v7685_v53 = vld [vmem:[#allocation26 + $0xc64] ss:$8 sps:$4 sm:$0xff]  }
 0x646   :  { %6349 = vmatmul.mubr.bf16.vlgmr.msra.gmra.mrb[12].mxu0 %v2771_v13  ;;  %6033 = vmatprep.subr.bf16.mxu1 %v7652_v24  ;;  %v7671_v13 = vld [vmem:[#allocation26 + $0xc40] ss:$8 sps:$4 sm:$0xff]   ;;  %v7676_v24 = vld [vmem:[#allocation26 + $0x464] ss:$8 sps:$4 sm:$0xff]  }
 0x647   :  { %6358 = vmatpush1.bf16.msra.mxu0 %v7647_v50  ;;  %6389 = vmatprep.mubr.bf16.mxu0 %v2774_v61  ;;  %v1634_v50 = vmul.f32 0.11111111, %v9186_v10  ;;  %v7679_v61 = vld [vmem:[#allocation26 + $0xc54] ss:$8 sps:$4 sm:$0xff]   ;;  %v2189_v17 = vrot.slane %v2188_v18, 2 }
 0x648   :  { %6359 = vmatprep.subr.bf16.mxu0 %v7655_v47  ;;  %v2078_v47 = vadd.f32 %v2077_v63, %v2076_v49  ;;  %v7688_v43 = vld [vmem:[#allocation26 + $0x484] ss:$8 sps:$4 sm:$0xff]  }
 0x649   :  { %6034 = vmatpush1.bf16.msra.mxu1 %v7650_v14  ;;  %v1636_v9 = vadd.f32 %v1634_v50, %v1632_v58  ;;  %v1623_v14 = vmul.f32 0.11111111, %v9172_v33  ;;  %v2190_v37 = vadd.f32 %v2189_v17, %v2188_v18  ;;  %v9889_v63 = vld [vmem:[#allocation40_spill] sm:$0xff] }
 0x64a   :  { %6035 = vmatprep.subr.bf16.mxu1 %v7658_v44  ;;  %v2169_v44 = vadd.f32 %v2168_v4, %v2167_v39  ;;  %v7691_v39 = vld [vmem:[#allocation26 + $0xc74] ss:$8 sps:$4 sm:$0xff]   ;;  %v7686_v58 = vld [vmem:[#allocation26 + $0x480] ss:$8 sps:$4 sm:$0xff]   ;;  %v7692_v17 = vld [vmem:[#allocation26 + $0x490] ss:$8 sps:$4 sm:$0xff]  }
 0x64b   :  { %6360 = vmatpush1.bf16.msra.mxu0 %v7653_v55  ;;  %v2058_v55 = vrot.slane %v2057_v2, 1  ;;  %v9626_v10 = vadd.f32 %v1623_v14, %v9489_v57  ;;  %v7694_v4 = vld [vmem:[#allocation26 + $0x494] ss:$8 sps:$4 sm:$0xff]  }
 0x64c   :  { %6361 = vmatprep.subr.bf16.mxu0 %v7661_v59  ;;  %v2079_v59 = vrot.slane %v2078_v47, 1  ;;  %v2170_v62 = vrot.slane %v2169_v44, 1 }
 0x64d   :  { %6036 = vmatpush1.bf16.msra.mxu1 %v7656_v34  ;;  %v9629_v34 = vadd.f32 %v9888_v20, %v1636_v9  ;;  %v2059_v49 = vadd.f32 %v2058_v55, %v2057_v2  ;;  %v1747_v57 = vsel %vm1300_vm6, %v9626_v10, 0.0  ;;  %v7689_v2 = vld [vmem:[#allocation26 + $0xc70] ss:$8 sps:$4 sm:$0xff]  }
 0x64e   :  { %6037 = vmatprep.subr.bf16.mxu1 %v7664_v30  ;;  %v7680_v30 = vld [vmem:[#allocation26 + $0x470] ss:$8 sps:$4 sm:$0xff]   ;;  %v2171_v18 = vadd.f32 %v2170_v62, %v2169_v44  ;;  %v7700_v44 = vld [vmem:[#allocation26 + $0x4a4] ss:$8 sps:$4 sm:$0xff]  }
 0x64f   :  { %6362 = vmatpush1.bf16.msra.mxu0 %v7659_v35  ;;  %v9632_v35 = vmul.f32 0.33333334, %v9172_v33  ;;  %v1768_v23 = vsel %vm1300_vm6, %v9629_v34, 0.0  ;;  %v7701_v62 = vld [vmem:[#allocation26 + $0xc90] ss:$8 sps:$4 sm:$0xff]  }
 0x650   :  { %6363 = vmatprep.subr.bf16.mxu0 %v7667_v48  ;;  %v7683_v48 = vld [vmem:[#allocation26 + $0xc60] ss:$8 sps:$4 sm:$0xff]   ;;  %v1769_v50 = vrot.slane %v1768_v23, 4 }
 0x651   :  { %6038 = vmatpush1.bf16.msra.mxu1 %v7662_v41  ;;  %v2080_v41 = vadd.f32 %v2079_v59, %v2078_v47  ;;  %v9640_v51 = vadd.f32 %v9889_v63, %v9632_v35  ;;  %v7707_v63 = vld [vmem:[#allocation26 + $0xca0] ss:$8 sps:$4 sm:$0xff]  }
 0x652   :  { %6039 = vmatprep.subr.bf16.mxu1 %v7670_v5  ;;  %v1748_v5 = vrot.slane %v1747_v57, 4  ;;  %v1770_v55 = vadd.f32 %v1769_v50, %v1768_v23 }
 0x653   :  { %6364 = vmatpush1.bf16.msra.mxu0 %v7665_v1  ;;  %v2191_v1 = vrot.slane %v2190_v37, 1 }
 0x654   :  { %6365 = vmatprep.subr.bf16.mxu0 %v7673_v0  ;;  %v2229_v0 = vmul.f32 0.25, %v2059_v49  ;;  %v1749_v9 = vadd.f32 %v1748_v5, %v1747_v57  ;;  %v1771_v49 = vrot.slane %v1770_v55, 2  ;;  %v7706_v57 = vld [vmem:[#allocation26 + $0x4b4] ss:$8 sps:$4 sm:$0xff]  }
 0x655   :  { %6040 = vmatpush1.bf16.msra.mxu1 %v7668_v42  ;;  %v9644_v42 = vadd.f32 %v9425_v27, %v9493_v38  ;;  %v2192_v47 = vadd.f32 %v2191_v1, %v2190_v37  ;;  %v7695_v38 = vld [vmem:[#allocation26 + $0xc80] ss:$8 sps:$4 sm:$0xff]   ;;  %v7704_v1 = vld [vmem:[#allocation26 + $0x4b0] ss:$8 sps:$4 sm:$0xff]  }
 0x656   :  { %6041 = vmatprep.subr.bf16.mxu1 %v7676_v24  ;;  %v7697_v24 = vld [vmem:[#allocation26 + $0xc84] ss:$8 sps:$4 sm:$0xff]   ;;  %v2261_v14 = vadd.f32 1e-05, %v2229_v0  ;;  %v7698_v37 = vld [vmem:[#allocation26 + $0x4a0] ss:$8 sps:$4 sm:$0xff]   ;;  %v1772_v0 = vadd.f32 %v1771_v49, %v1770_v55 }
 0x657   :  { %6366 = vmatpush1.bf16.msra.mxu0 %v7671_v13  ;;  %v2232_v13 = vmul.f32 0.25, %v2080_v41  ;;  %v1880_v27 = vsel %vm1300_vm6, %v9644_v42, 0.0  ;;  %v2248_v59 = vmul.f32 0.25, %v2192_v47  ;;  %v7718_v47 = vld [vmem:[#allocation26 + $0x4d4] ss:$8 sps:$4 sm:$0xff]  }
 0x658   :  { %6367 = vmatprep.subr.bf16.mxu0 %v7679_v61  ;;  %v1859_v61 = vsel %vm1300_vm6, %v9640_v51, 0.0  ;;  %8105 = vrsqrt.f32 %v2261_v14  ;;  %v7716_v55 = vld [vmem:[#allocation26 + $0x4d0] ss:$8 sps:$4 sm:$0xff]  }
 0x659   :  { %6042 = vmatpush1.bf16.msra.mxu1 %v7674_v19  ;;  %v2245_v19 = vmul.f32 0.25, %v2171_v18  ;;  %v1860_v20 = vrot.slane %v1859_v61, 4  ;;  %v2280_v41 = vadd.f32 1e-05, %v2248_v59  ;;  %v7715_v18 = vld [vmem:[#allocation26 + $0xcb4] ss:$8 sps:$4 sm:$0xff]   ;;  %v2392_v59 = vrot.slane %v9572_v6, %v8934_v7 }
 0x65a   :  { %6043 = vmatprep.subr.bf16.mxu1 %v7682_v29  ;;  %v7703_v29 = vld [vmem:[#allocation26 + $0xc94] ss:$8 sps:$4 sm:$0xff]  }
 0x65b   :  { %6368 = vmatpush1.bf16.msra.mxu0 %v7677_v28  ;;  %v2264_v28 = vadd.f32 1e-05, %v2232_v13  ;;  %v1861_v23 = vadd.f32 %v1860_v20, %v1859_v61  ;;  %v1773_v61 = vrot.slane %v1772_v0, 1 }
 0x65c   :  { %6369 = vmatprep.subr.bf16.mxu0 %v7685_v53  ;;  %v1881_v53 = vrot.slane %v1880_v27, 4 }
 0x65d   :  { %6044 = vmatpush1.bf16.msra.mxu1 %v7680_v30  ;;  %v1750_v30 = vrot.slane %v1749_v9, 2  ;;  %8107 = vrsqrt.f32 %v2264_v28  ;;  %v1862_v50 = vrot.slane %v1861_v23, 2  ;;  %v7724_v28 = vld [vmem:[#allocation26 + $0x4e4] ss:$8 sps:$4 sm:$0xff]   ;;  %v1774_v20 = vadd.f32 %v1773_v61, %v1772_v0  ;;  %v7731_v61 = vld [vmem:[#allocation26 + $0xce0] ss:$8 sps:$4 sm:$0xff]  }
 0x65e   :  { %6045 = vmatprep.subr.bf16.mxu1 %v7688_v43  ;;  %v7709_v43 = vld [vmem:[#allocation26 + $0xca4] ss:$8 sps:$4 sm:$0xff]  }
 0x65f   :  { %6370 = vmatpush1.bf16.msra.mxu0 %v7683_v48  ;;  %v2277_v48 = vadd.f32 1e-05, %v2245_v19  ;;  %v1751_v5 = vadd.f32 %v1750_v30, %v1749_v9  ;;  %v1863_v14 = vadd.f32 %v1862_v50, %v1861_v23  ;;  %v2404_v30 = vrot.slane %v9572_v6, %v8940_v12  ;;  %v7730_v23 = vld [vmem:[#allocation26 + $0x4f4] ss:$8 sps:$4 sm:$0xff]  }
 0x660   :  { %6371 = vmatprep.subr.bf16.mxu0 %v7691_v39  ;;  %v1882_v39 = vadd.f32 %v1881_v53, %v1880_v27  ;;  %v7727_v53 = vld [vmem:[#allocation26 + $0xcd4] ss:$8 sps:$4 sm:$0xff]  }
 0x661   :  { %6046 = vmatpush1.bf16.msra.mxu1 %v7686_v58  ;;  %v7712_v58 = vld [vmem:[#allocation26 + $0x4c4] ss:$8 sps:$4 sm:$0xff]   ;;  %8109 = vrsqrt.f32 %v2277_v48  ;;  %v1752_v13 = vrot.slane %v1751_v5, 1  ;;  %v1864_v49 = vrot.slane %v1863_v14, 1 }
 0x662   :  { %6047 = vmatprep.subr.bf16.mxu1 %v7694_v4  ;;  %8111 = vrsqrt.f32 %v2280_v41  ;;  %v7710_v4 = vld [vmem:[#allocation26 + $0x4c0] ss:$8 sps:$4 sm:$0xff]   ;;  %v8106_v9 = vpop.eup %8105 }
 0x663   :  { %6372 = vmatpush1.bf16.msra.mxu0 %v7689_v2  ;;  %v1883_v2 = vrot.slane %v1882_v39, 2  ;;  %v1865_v50 = vadd.f32 %v1864_v49, %v1863_v14  ;;  %v7739_v14 = vld [vmem:[#allocation26 + $0xcf4] ss:$8 sps:$4 sm:$0xff]   ;;  %v7745_v49 = vld [vmem:[#allocation26 + $0xd04] ss:$8 sps:$4 sm:$0xff]  }
 0x664   :  { %6373 = vmatprep.subr.bf16.mxu0 %v7697_v24  ;;  %v7713_v24 = vld [vmem:[#allocation26 + $0xcb0] ss:$8 sps:$4 sm:$0xff]  }
 0x665   :  { %6048 = vmatpush1.bf16.msra.mxu1 %v7692_v17  ;;  %v7721_v17 = vld [vmem:[#allocation26 + $0xcc4] ss:$8 sps:$4 sm:$0xff]   ;;  %v1884_v27 = vadd.f32 %v1883_v2, %v1882_v39 }
 0x666   :  { %6049 = vmatprep.subr.bf16.mxu1 %v7700_v44  ;;  %v7719_v44 = vld [vmem:[#allocation26 + $0xcc0] ss:$8 sps:$4 sm:$0xff]  }
 0x667   :  { %6374 = vmatpush1.bf16.msra.mxu0 %v7695_v38  ;;  %v8108_v19 = vpop.eup %8107  ;;  %v1753_v38 = vadd.f32 %v1752_v13, %v1751_v5  ;;  %v1914_v5 = vmul.f32 0.25, %v1774_v20  ;;  %v7742_v20 = vld [vmem:[#allocation26 + $0x514] ss:$8 sps:$4 sm:$0xff]  }
 0x668   :  { %6375 = vmatprep.subr.bf16.mxu0 %v7703_v29  ;;  %v2325_v29 = vmul.f32 %v8106_v9, %v9592_v15  ;;  %v7725_v15 = vld [vmem:[#allocation26 + $0xcd0] ss:$8 sps:$4 sm:$0xff]  }
 0x669   :  { %6050 = vmatpush1.bf16.msra.mxu1 %v7698_v37  ;;  %v2328_v37 = vmul.f32 %v8108_v19, %v9597_v54  ;;  %v1911_v41 = vmul.f32 0.25, %v1753_v38  ;;  %v2604_v54 = vrot.slane %v9577_v22, %v8940_v12 }
 0x66a   :  { %6051 = vmatprep.subr.bf16.mxu1 %v7706_v57  ;;  %v1885_v57 = vrot.slane %v1884_v27, 1  ;;  %v2525_v39 = vmul.f32 %v2392_v59, %v2325_v29  ;;  %v7737_v59 = vld [vmem:[#allocation26 + $0xcf0] ss:$8 sps:$4 sm:$0xff]  }
 0x66b   :  { %6376 = vmatpush1.bf16.msra.mxu0 %v7701_v62  ;;  %v8110_v62 = vpop.eup %8109 }
 0x66c   :  { %6377 = vmatprep.subr.bf16.mxu0 %v7709_v43  ;;  %v8112_v48 = vpop.eup %8111  ;;  %v7722_v43 = vld [vmem:[#allocation26 + $0x4e0] ss:$8 sps:$4 sm:$0xff]   ;;  %v2341_v0 = vmul.f32 %v8110_v62, %v9606_v60  ;;  %v1886_v13 = vadd.f32 %v1885_v57, %v1884_v27  ;;  %v7736_v60 = vld [vmem:[#allocation26 + $0x504] ss:$8 sps:$4 sm:$0xff]   ;;  %v2656_v27 = vrot.slane %v9589_v21, %v8934_v7 }
 0x66d   :  { %6052 = vmatpush1.bf16.msra.mxu1 %v7704_v1  ;;  %v2592_v1 = vrot.slane %v9577_v22, %v8934_v7  ;;  %v2344_v2 = vmul.f32 %v8112_v48, %v9611_v3  ;;  %v7740_v48 = vld [vmem:[#allocation26 + $0x510] ss:$8 sps:$4 sm:$0xff]  }
 0x66e   :  { %6053 = vmatprep.subr.bf16.mxu1 %v7712_v58  ;;  %v2528_v58 = vmul.f32 %v2404_v30, %v2328_v37 }
 0x66f   :  { %6378 = vmatpush1.bf16.msra.mxu0 %v7707_v63  ;;  %v7733_v63 = vld [vmem:[#allocation26 + $0xce4] ss:$8 sps:$4 sm:$0xff]   ;;  %v2725_v9 = vadd.f32 %v2592_v1, %v2525_v39 }
 0x670   :  { %6379 = vmatprep.subr.bf16.mxu0 %v7715_v18  ;;  %v2456_v18 = vrot.slane %v9579_v36, %v8934_v7  ;;  %v2728_v3 = vadd.f32 %v2604_v54, %v2528_v58  ;;  %v7748_v39 = vld [vmem:[#allocation26 + $0x524] ss:$8 sps:$4 sm:$0xff]  }
 0x671   :  { %6054 = vmatpush1.bf16.msra.mxu1 %v7710_v4  ;;  %v2468_v4 = vrot.slane %v9579_v36, %v8940_v12 }
 0x672   :  { %6055 = vmatprep.subr.bf16.mxu1 %v7718_v47  ;;  %v9667_v47 = vsub.f32 %v9626_v10, %v1911_v41  ;;  %v2541_v19 = vmul.f32 %v2456_v18, %v2341_v0  ;;  %v2668_v10 = vrot.slane %v9589_v21, %v8940_v12  ;;  %v2760_v37 = vpack.c.bf16 %v2728_v3, %v2728_v3  ;;  %v7743_v41 = vld [vmem:[#allocation26 + $0xd00] ss:$8 sps:$4 sm:$0xff]   ;;  %v7749_v0 = vld [vmem:[#allocation26 + $0xd10] ss:$8 sps:$4 sm:$0xff]   ;;  %v7754_v18 = vld [vmem:[#allocation26 + $0x534] ss:$8 sps:$4 sm:$0xff]  }
 0x673   :  { %6380 = vmatpush1.bf16.msra.mxu0 %v7713_v24  ;;  %v7728_v24 = vld [vmem:[#allocation26 + $0x4f0] ss:$8 sps:$4 sm:$0xff]   ;;  %v2544_v38 = vmul.f32 %v2468_v4, %v2344_v2 }
 0x674   :  { %6381 = vmatprep.subr.bf16.mxu0 %v7721_v17  ;;  %v9670_v17 = vsub.f32 %v9629_v34, %v1914_v5  ;;  %v1975_v29 = vmul.f32 %v9667_v47, %v9667_v47  ;;  %v2757_v34 = vpack.c.bf16 %v2725_v9, %v2725_v9  ;;  %v2741_v30 = vadd.f32 %v2656_v27, %v2541_v19  ;;  %v7763_v19 = vld [vmem:[#allocation26 + $0xd34] ss:$8 sps:$4 sm:$0xff]  }
 0x675   :  { %6056 = vmatpush1.bf16.msra.mxu1 %v7716_v55  ;;  %v1927_v55 = vmul.f32 0.25, %v1865_v50  ;;  %v2744_v62 = vadd.f32 %v2668_v10, %v2544_v38  ;;  %v7757_v50 = vld [vmem:[#allocation26 + $0xd24] ss:$8 sps:$4 sm:$0xff]   ;;  %v1629_v9 = vmul.f32 0.44444445, %v9140_v56 }
 0x676   :  { %6057 = vmatprep.subr.bf16.mxu1 %v7724_v28  ;;  %v7734_v28 = vld [vmem:[#allocation26 + $0x500] ss:$8 sps:$4 sm:$0xff]   ;;  %v7769_v56 = vld [vmem:[#allocation26 + $0xd44] ss:$8 sps:$4 sm:$0xff]  }
 0x677   :  { %6382 = vmatpush1.bf16.msra.mxu0 %v7719_v44  ;;  %v1930_v44 = vmul.f32 0.25, %v1886_v13  ;;  %v9681_v12 = vsub.f32 %v9640_v51, %v1927_v55  ;;  %v7751_v51 = vld [vmem:[#allocation26 + $0xd14] ss:$8 sps:$4 sm:$0xff]   ;;  %v2776_v54 = vpack.c.bf16 %v2744_v62, %v2744_v62  ;;  %v7758_v38 = vld [vmem:[#allocation26 + $0x540] ss:$8 sps:$4 sm:$0xff]  }
 0x678   :  { %6383 = vmatprep.subr.bf16.mxu0 %v7727_v53  ;;  %v1978_v53 = vmul.f32 %v9670_v17, %v9670_v17 }
 0x679   :  { %6058 = vmatpush1.bf16.msra.mxu1 %v7722_v43  ;;  %v9684_v57 = vsub.f32 %v9644_v42, %v1930_v44  ;;  %v2067_v43 = vsel %vm1300_vm6, %v1975_v29, 0.0  ;;  %v1991_v1 = vmul.f32 %v9681_v12, %v9681_v12  ;;  %v9890_v44 = vld [vmem:[#allocation42_spill] sm:$0xff] }
 0x67a   :  { %6059 = vmatprep.subr.bf16.mxu1 %v7730_v23  ;;  %v2773_v23 = vpack.c.bf16 %v2741_v30, %v2741_v30  ;;  %v2068_v42 = vrot.slane %v2067_v43, 4  ;;  %v7761_v29 = vld [vmem:[#allocation26 + $0xd30] ss:$8 sps:$4 sm:$0xff]  }
 0x67b   :  { %6384 = vmatpush1.bf16.msra.mxu0 %v7725_v15  ;;  %v2088_v15 = vsel %vm1300_vm6, %v1978_v53, 0.0  ;;  %v1994_v5 = vmul.f32 %v9684_v57, %v9684_v57  ;;  %v2179_v2 = vsel %vm1300_vm6, %v1991_v1, 0.0  ;;  %v1633_v53 = vmul.f32 0.11111111, %v9142_v46  ;;  %v7764_v30 = vld [vmem:[#allocation26 + $0x550] ss:$8 sps:$4 sm:$0xff]  }
 0x67c   :  { %6385 = vmatprep.subr.bf16.mxu0 %v7733_v63  ;;  %v7746_v63 = vld [vmem:[#allocation26 + $0x520] ss:$8 sps:$4 sm:$0xff]   ;;  %v2089_v58 = vrot.slane %v2088_v15, 4  ;;  %v2069_v4 = vadd.f32 %v2068_v42, %v2067_v43  ;;  %v2180_v3 = vrot.slane %v2179_v2, 4  ;;  %v7772_v43 = vld [vmem:[#allocation26 + $0x564] ss:$8 sps:$4 sm:$0xff]  }
 0x67d   :  { %6060 = vmatpush1.bf16.msra.mxu1 %v7728_v24  ;;  %v2200_v13 = vsel %vm1300_vm6, %v1994_v5, 0.0  ;;  %v7752_v24 = vld [vmem:[#allocation26 + $0x530] ss:$8 sps:$4 sm:$0xff]   ;;  %v7778_v5 = vld [vmem:[#allocation26 + $0x574] ss:$8 sps:$4 sm:$0xff]  }
 0x67e   :  { %6070 = vmatprep.subr.bf16.mxu1 %v7736_v60  ;;  %v7755_v60 = vld [vmem:[#allocation26 + $0xd20] ss:$8 sps:$4 sm:$0xff]   ;;  %v2201_v27 = vrot.slane %v2200_v13, 4  ;;  %v2070_v55 = vrot.slane %v2069_v4, 2  ;;  %v7773_v46 = vld [vmem:[#allocation26 + $0xd50] ss:$8 sps:$4 sm:$0xff]  }
 0x67f   :  { %6386 = vmatpush1.bf16.msra.mxu0 %v7731_v61  ;;  %v2090_v61 = vadd.f32 %v2089_v58, %v2088_v15  ;;  %v7775_v15 = vld [vmem:[#allocation26 + $0xd54] ss:$8 sps:$4 sm:$0xff]  }
 0x680   :  { %6387 = vmatprep.subr.bf16.mxu0 %v7739_v14  ;;  %6062 = vmatmul.mubr.bf16.vlgmr.msra.gmra.mrb[12].mxu1 %v2757_v34  ;;  %v7760_v14 = vld [vmem:[#allocation26 + $0x544] ss:$8 sps:$4 sm:$0xff]   ;;  %v7766_v34 = vld [vmem:[#allocation26 + $0x554] ss:$8 sps:$4 sm:$0xff]  }
 0x681   :  { %6071 = vmatpush1.bf16.msra.mxu1 %v7734_v28  ;;  %6102 = vmatprep.mubr.bf16.mxu1 %v2760_v37  ;;  %v2091_v10 = vrot.slane %v2090_v61, 2  ;;  %v1631_v28 = vadd.f32 %v1629_v9, %v9890_v44  ;;  %v2071_v37 = vadd.f32 %v2070_v55, %v2069_v4  ;;  %v9892_v58 = vld [vmem:[#allocation46_spill] sm:$0xff]  ;;  %v7784_v9 = vld [vmem:[#allocation26 + $0x584] ss:$8 sps:$4 sm:$0xff]  }
 0x682   :  { %6072 = vmatprep.subr.bf16.mxu1 %v7742_v20  ;;  %v2202_v20 = vadd.f32 %v2201_v27, %v2200_v13  ;;  %v7776_v4 = vld [vmem:[#allocation26 + $0x570] ss:$8 sps:$4 sm:$0xff]   ;;  %v9710_v27 = vadd.f32 %v9500_v40, %v9547_v45  ;;  %v7782_v55 = vld [vmem:[#allocation26 + $0x580] ss:$8 sps:$4 sm:$0xff]  }
 0x683   :  { %6388 = vmatpush1.bf16.msra.mxu0 %v7737_v59  ;;  %v2181_v59 = vadd.f32 %v2180_v3, %v2179_v2  ;;  %v1635_v62 = vadd.f32 %v1633_v53, %v1631_v28  ;;  %v7785_v28 = vld [vmem:[#allocation26 + $0xd70] ss:$8 sps:$4 sm:$0xff]  }
 0x684   :  { %6398 = vmatprep.subr.bf16.mxu0 %v7745_v49  ;;  %v2092_v49 = vadd.f32 %v2091_v10, %v2090_v61  ;;  %v7779_v61 = vld [vmem:[#allocation26 + $0xd60] ss:$8 sps:$4 sm:$0xff]   ;;  %v1873_v53 = vsel %vm1300_vm6, %v9710_v27, 0.0  ;;  %v7788_v40 = vld [vmem:[#allocation26 + $0x590] ss:$8 sps:$4 sm:$0xff]  }
 0x685   :  { %6073 = vmatpush1.bf16.msra.mxu1 %v7740_v48  ;;  %v7767_v48 = vld [vmem:[#allocation26 + $0xd40] ss:$8 sps:$4 sm:$0xff]  }
 0x686   :  { %6390 = vmatmul.mubr.bf16.vlgmr.msra.gmra.mrb[12].mxu0 %v2773_v23  ;;  %6074 = vmatprep.subr.bf16.mxu1 %v7748_v39  ;;  %v2203_v23 = vrot.slane %v2202_v20, 2  ;;  %v2072_v39 = vrot.slane %v2071_v37, 1  ;;  %v2093_v1 = vrot.slane %v2092_v49, 1 }
 0x687   :  { %6399 = vmatpush1.bf16.msra.mxu0 %v7743_v41  ;;  %6430 = vmatprep.mubr.bf16.mxu0 %v2776_v54  ;;  %v2182_v41 = vrot.slane %v2181_v59, 2  ;;  %v9891_v54 = vld [vmem:[#allocation47_spill] sm:$0xff] }
 0x688   :  { %6400 = vmatprep.subr.bf16.mxu0 %v7751_v51  ;;  %v7770_v51 = vld [vmem:[#allocation26 + $0x560] ss:$8 sps:$4 sm:$0xff]   ;;  %v9698_v42 = vadd.f32 %v9891_v54, %v1635_v62  ;;  %v2073_v2 = vadd.f32 %v2072_v39, %v2071_v37  ;;  %v2094_v13 = vadd.f32 %v2093_v1, %v2092_v49  ;;  %v1894_v49 = vsel %vm1300_vm6, %v9180_v16, 0.0 }
 0x689   :  { %6075 = vmatpush1.bf16.msra.mxu1 %v7746_v63  ;;  %v2183_v63 = vadd.f32 %v2182_v41, %v2181_v59  ;;  %v7793_v59 = vld [vmem:[#allocation26 + $0xd84] ss:$8 sps:$4 sm:$0xff]   ;;  %v7791_v62 = vld [vmem:[#allocation26 + $0xd80] ss:$8 sps:$4 sm:$0xff]   ;;  %v7799_v41 = vld [vmem:[#allocation26 + $0xd94] ss:$8 sps:$4 sm:$0xff]  }
 0x68a   :  { %6076 = vmatprep.subr.bf16.mxu1 %v7754_v18  ;;  %v7781_v18 = vld [vmem:[#allocation26 + $0xd64] ss:$8 sps:$4 sm:$0xff]   ;;  %v1895_v39 = vrot.slane %v1894_v49, 4 }
 0x68b   :  { %6401 = vmatpush1.bf16.msra.mxu0 %v7749_v0  ;;  %v9702_v0 = vadd.f32 %v9558_v52, %v9892_v58  ;;  %v7787_v52 = vld [vmem:[#allocation26 + $0xd74] ss:$8 sps:$4 sm:$0xff]   ;;  %v7805_v58 = vld [vmem:[#allocation26 + $0xda4] ss:$8 sps:$4 sm:$0xff]  }
 0x68c   :  { %6402 = vmatprep.subr.bf16.mxu0 %v7757_v50  ;;  %v2204_v50 = vadd.f32 %v2203_v23, %v2202_v20  ;;  %v1874_v23 = vrot.slane %v1873_v53, 4 }
 0x68d   :  { %6077 = vmatpush1.bf16.msra.mxu1 %v7752_v24  ;;  %v1761_v24 = vsel %vm1300_vm6, %v9698_v42, 0.0 }
 0x68e   :  { %6078 = vmatprep.subr.bf16.mxu1 %v7760_v14  ;;  %v1782_v14 = vsel %vm1300_vm6, %v9702_v0, 0.0  ;;  %v2205_v3 = vrot.slane %v2204_v50, 1  ;;  %v1762_v10 = vrot.slane %v1761_v24, 4 }
 0x68f   :  { %6403 = vmatpush1.bf16.msra.mxu0 %v7755_v60  ;;  %v2184_v60 = vrot.slane %v2183_v63, 1  ;;  %v1783_v44 = vrot.slane %v1782_v14, 4 }
 0x690   :  { %6404 = vmatprep.subr.bf16.mxu0 %v7763_v19  ;;  %v2231_v19 = vmul.f32 0.25, %v2073_v2  ;;  %v1763_v37 = vadd.f32 %v1762_v10, %v1761_v24  ;;  %v1896_v2 = vadd.f32 %v1895_v39, %v1894_v49  ;;  %v7808_v24 = vld [vmem:[#allocation26 + $0x5c4] ss:$8 sps:$4 sm:$0xff]   ;;  %v7823_v49 = vld [vmem:[#allocation26 + $0xdd4] ss:$8 sps:$4 sm:$0xff]  }
 0x691   :  { %6079 = vmatpush1.bf16.msra.mxu1 %v7758_v38  ;;  %v2234_v38 = vmul.f32 0.25, %v2094_v13  ;;  %v7803_v13 = vld [vmem:[#allocation26 + $0xda0] ss:$8 sps:$4 sm:$0xff]  }
 0x692   :  { %6080 = vmatprep.subr.bf16.mxu1 %v7766_v34  ;;  %v2185_v34 = vadd.f32 %v2184_v60, %v2183_v63  ;;  %v2263_v20 = vadd.f32 1e-05, %v2231_v19  ;;  %v1764_v1 = vrot.slane %v1763_v37, 2  ;;  %v7811_v60 = vld [vmem:[#allocation26 + $0xdb4] ss:$8 sps:$4 sm:$0xff]  }
 0x693   :  { %6405 = vmatpush1.bf16.msra.mxu0 %v7761_v29  ;;  %v7790_v29 = vld [vmem:[#allocation26 + $0x594] ss:$8 sps:$4 sm:$0xff]   ;;  %v2266_v45 = vadd.f32 1e-05, %v2234_v38  ;;  %v7809_v19 = vld [vmem:[#allocation26 + $0xdb0] ss:$8 sps:$4 sm:$0xff]  }
 0x694   :  { %6406 = vmatprep.subr.bf16.mxu0 %v7769_v56  ;;  %v2206_v56 = vadd.f32 %v2205_v3, %v2204_v50  ;;  %8113 = vrsqrt.f32 %v2263_v20  ;;  %v1875_v50 = vadd.f32 %v1874_v23, %v1873_v53  ;;  %v7806_v3 = vld [vmem:[#allocation26 + $0x5c0] ss:$8 sps:$4 sm:$0xff]   ;;  %v2400_v20 = vrot.slane %v9572_v6, %v8936_v8 }
 0x695   :  { %6081 = vmatpush1.bf16.msra.mxu1 %v7764_v30  ;;  %v1784_v30 = vadd.f32 %v1783_v44, %v1782_v14  ;;  %8115 = vrsqrt.f32 %v2266_v45  ;;  %v7815_v53 = vld [vmem:[#allocation26 + $0xdc0] ss:$8 sps:$4 sm:$0xff]  }
 0x696   :  { %6082 = vmatprep.subr.bf16.mxu1 %v7772_v43  ;;  %v2247_v43 = vmul.f32 0.25, %v2185_v34  ;;  %v1876_v14 = vrot.slane %v1875_v50, 2  ;;  %v7818_v39 = vld [vmem:[#allocation26 + $0x5e0] ss:$8 sps:$4 sm:$0xff]  }
 0x697   :  { %6407 = vmatpush1.bf16.msra.mxu0 %v7767_v48  ;;  %v7796_v48 = vld [vmem:[#allocation26 + $0x5a4] ss:$8 sps:$4 sm:$0xff]   ;;  %v1785_v54 = vrot.slane %v1784_v30, 2 }
 0x698   :  { %6408 = vmatprep.subr.bf16.mxu0 %v7775_v15  ;;  %v2250_v15 = vmul.f32 0.25, %v2206_v56  ;;  %v2279_v63 = vadd.f32 1e-05, %v2247_v43  ;;  %v7812_v56 = vld [vmem:[#allocation26 + $0x5d0] ss:$8 sps:$4 sm:$0xff]  }
 0x699   :  { %6083 = vmatpush1.bf16.msra.mxu1 %v7770_v51  ;;  %v7794_v51 = vld [vmem:[#allocation26 + $0x5a0] ss:$8 sps:$4 sm:$0xff]  }
 0x69a   :  { %6084 = vmatprep.subr.bf16.mxu1 %v7778_v5  ;;  %v7802_v5 = vld [vmem:[#allocation26 + $0x5b4] ss:$8 sps:$4 sm:$0xff]   ;;  %8117 = vrsqrt.f32 %v2279_v63 }
 0x69b   :  { %6409 = vmatpush1.bf16.msra.mxu0 %v7773_v46  ;;  %v7797_v46 = vld [vmem:[#allocation26 + $0xd90] ss:$8 sps:$4 sm:$0xff]  }
 0x69c   :  { %6410 = vmatprep.subr.bf16.mxu0 %v7781_v18  ;;  %v2282_v18 = vadd.f32 1e-05, %v2250_v15 }
 0x69d   :  { %6085 = vmatpush1.bf16.msra.mxu1 %v7776_v4  ;;  %v7800_v4 = vld [vmem:[#allocation26 + $0x5b0] ss:$8 sps:$4 sm:$0xff]  }
 0x69e   :  { %6086 = vmatprep.subr.bf16.mxu1 %v7784_v9  ;;  %v1786_v9 = vadd.f32 %v1785_v54, %v1784_v30  ;;  %8119 = vrsqrt.f32 %v2282_v18  ;;  %v8114_v44 = vpop.eup %8113  ;;  %v2464_v18 = vrot.slane %v9579_v36, %v8936_v8 }
 0x69f   :  { %6411 = vmatpush1.bf16.msra.mxu0 %v7779_v61  ;;  %v1765_v61 = vadd.f32 %v1764_v1, %v1763_v37  ;;  %v8116_v34 = vpop.eup %8115  ;;  %v2327_v45 = vmul.f32 %v8114_v44, %v9667_v47  ;;  %v7821_v47 = vld [vmem:[#allocation26 + $0xdd0] ss:$8 sps:$4 sm:$0xff]   ;;  %v7826_v1 = vld [vmem:[#allocation26 + $0x5f4] ss:$8 sps:$4 sm:$0xff]   ;;  %v7830_v44 = vld [vmem:[#allocation26 + $0x600] ss:$8 sps:$4 sm:$0xff]  }
 0x6a0   :  { %6412 = vmatprep.subr.bf16.mxu0 %v7787_v52  ;;  %v1897_v52 = vrot.slane %v1896_v2, 2  ;;  %v1787_v10 = vrot.slane %v1786_v9, 1 }
 0x6a1   :  { %6087 = vmatpush1.bf16.msra.mxu1 %v7782_v55  ;;  %v7814_v55 = vld [vmem:[#allocation26 + $0x5d4] ss:$8 sps:$4 sm:$0xff]   ;;  %v1766_v38 = vrot.slane %v1765_v61, 1  ;;  %v2527_v54 = vmul.f32 %v2400_v20, %v2327_v45 }
 0x6a2   :  { %6088 = vmatprep.subr.bf16.mxu1 %v7790_v29  ;;  %v1877_v29 = vadd.f32 %v1876_v14, %v1875_v50  ;;  %v1788_v30 = vadd.f32 %v1787_v10, %v1786_v9 }
 0x6a3   :  { %6413 = vmatpush1.bf16.msra.mxu0 %v7785_v28  ;;  %v7817_v28 = vld [vmem:[#allocation26 + $0xdc4] ss:$8 sps:$4 sm:$0xff]   ;;  %v1767_v37 = vadd.f32 %v1766_v38, %v1765_v61  ;;  %v7827_v61 = vld [vmem:[#allocation26 + $0xde0] ss:$8 sps:$4 sm:$0xff]   ;;  %v2676_v38 = vrot.slane %v9589_v21, %v8954_v31 }
 0x6a4   :  { %6414 = vmatprep.subr.bf16.mxu0 %v7793_v59  ;;  %v1898_v59 = vadd.f32 %v1897_v52, %v1896_v2  ;;  %v1878_v43 = vrot.slane %v1877_v29, 1 }
 0x6a5   :  { %6089 = vmatpush1.bf16.msra.mxu1 %v7788_v40  ;;  %v7820_v40 = vld [vmem:[#allocation26 + $0x5e4] ss:$8 sps:$4 sm:$0xff]  }
 0x6a6   :  { %6090 = vmatprep.subr.bf16.mxu1 %v7796_v48  ;;  %v2412_v48 = vrot.slane %v9572_v6, %v8954_v31  ;;  %v1899_v15 = vrot.slane %v1898_v59, 1  ;;  %v7829_v6 = vld [vmem:[#allocation26 + $0xde4] ss:$8 sps:$4 sm:$0xff]   ;;  %v1879_v50 = vadd.f32 %v1878_v43, %v1877_v29  ;;  %v7842_v43 = vld [vmem:[#allocation26 + $0x620] ss:$8 sps:$4 sm:$0xff]  }
 0x6a7   :  { %6415 = vmatpush1.bf16.msra.mxu0 %v7791_v62  ;;  %v2330_v62 = vmul.f32 %v8116_v34, %v9670_v17  ;;  %v2612_v17 = vrot.slane %v9577_v22, %v8954_v31 }
 0x6a8   :  { %6416 = vmatprep.subr.bf16.mxu0 %v7799_v41  ;;  %v8118_v41 = vpop.eup %8117 }
 0x6a9   :  { %6091 = vmatpush1.bf16.msra.mxu1 %v7794_v51  ;;  %v8120_v23 = vpop.eup %8119  ;;  %v2600_v51 = vrot.slane %v9577_v22, %v8936_v8  ;;  %v2530_v63 = vmul.f32 %v2412_v48, %v2330_v62  ;;  %v7824_v22 = vld [vmem:[#allocation26 + $0x5f0] ss:$8 sps:$4 sm:$0xff]  }
 0x6aa   :  { %6092 = vmatprep.subr.bf16.mxu1 %v7802_v5  ;;  %v1916_v5 = vmul.f32 0.25, %v1788_v30  ;;  %v2346_v2 = vmul.f32 %v8120_v23, %v9684_v57  ;;  %v7835_v57 = vld [vmem:[#allocation26 + $0xdf4] ss:$8 sps:$4 sm:$0xff]   ;;  %v7845_v23 = vld [vmem:[#allocation26 + $0xe10] ss:$8 sps:$4 sm:$0xff]  }
 0x6ab   :  { %6417 = vmatpush1.bf16.msra.mxu0 %v7797_v46  ;;  %v1913_v46 = vmul.f32 0.25, %v1767_v37  ;;  %v2727_v9 = vadd.f32 %v2600_v51, %v2527_v54  ;;  %v2730_v14 = vadd.f32 %v2612_v17, %v2530_v63  ;;  %v7853_v51 = vld [vmem:[#allocation26 + $0xe24] ss:$8 sps:$4 sm:$0xff]   ;;  %v7848_v54 = vld [vmem:[#allocation26 + $0x630] ss:$8 sps:$4 sm:$0xff]  }
 0x6ac   :  { %6418 = vmatprep.subr.bf16.mxu0 %v7805_v58  ;;  %v2343_v58 = vmul.f32 %v8118_v41, %v9681_v12  ;;  %v9738_v36 = vsub.f32 %v9702_v0, %v1916_v5  ;;  %v7833_v0 = vld [vmem:[#allocation26 + $0xdf0] ss:$8 sps:$4 sm:$0xff]   ;;  %v7851_v5 = vld [vmem:[#allocation26 + $0xe20] ss:$8 sps:$4 sm:$0xff]  }
 0x6ad   :  { %6093 = vmatpush1.bf16.msra.mxu1 %v7800_v4  ;;  %v9730_v4 = vld [vmem:[#allocation23 + $0x18] sm:$0xff]  ;;  %v9735_v12 = vsub.f32 %v9698_v42, %v1913_v46  ;;  %v2759_v42 = vpack.c.bf16 %v2727_v9, %v2727_v9  ;;  %v7865_v9 = vld [vmem:[#allocation26 + $0xe44] ss:$8 sps:$4 sm:$0xff]  }
 0x6ae   :  { %6094 = vmatprep.subr.bf16.mxu1 %v7808_v24  ;;  %v1900_v24 = vadd.f32 %v1899_v15, %v1898_v59  ;;  %v2543_v52 = vmul.f32 %v2464_v18, %v2343_v58  ;;  %v1980_v34 = vmul.f32 %v9738_v36, %v9738_v36  ;;  %v7859_v58 = vld [vmem:[#allocation26 + $0xe34] ss:$8 sps:$4 sm:$0xff]  }
 0x6af   :  { %6419 = vmatpush1.bf16.msra.mxu0 %v7803_v13  ;;  %v2476_v13 = vrot.slane %v9730_v4, %v8954_v31  ;;  %v1977_v29 = vmul.f32 %v9735_v12, %v9735_v12 }
 0x6b0   :  { %6420 = vmatprep.subr.bf16.mxu0 %v7811_v60  ;;  %v7832_v60 = vld [vmem:[#allocation26 + $0x604] ss:$8 sps:$4 sm:$0xff]   ;;  %v1932_v10 = vmul.f32 0.25, %v1900_v24  ;;  %v2102_v37 = vsel %vm1300_vm6, %v1980_v34, 0.0  ;;  %v7857_v24 = vld [vmem:[#allocation26 + $0xe30] ss:$8 sps:$4 sm:$0xff]  }
 0x6b1   :  { %6095 = vmatpush1.bf16.msra.mxu1 %v7806_v3  ;;  %v2664_v3 = vrot.slane %v9589_v21, %v8936_v8  ;;  %v2762_v8 = vpack.c.bf16 %v2730_v14, %v2730_v14  ;;  %v2081_v45 = vsel %vm1300_vm6, %v1977_v29, 0.0  ;;  %v2103_v15 = vrot.slane %v2102_v37, 4  ;;  %v7874_v29 = vld [vmem:[#allocation26 + $0x674] ss:$8 sps:$4 sm:$0xff]  }
 0x6b2   :  { %6096 = vmatprep.subr.bf16.mxu1 %v7814_v55  ;;  %v2546_v55 = vmul.f32 %v2476_v13, %v2346_v2  ;;  %v9752_v20 = vsub.f32 %v9180_v16, %v1932_v10  ;;  %v2082_v41 = vrot.slane %v2081_v45, 4 }
 0x6b3   :  { %6421 = vmatpush1.bf16.msra.mxu0 %v7809_v19  ;;  %v1929_v19 = vmul.f32 0.25, %v1879_v50  ;;  %v2743_v59 = vadd.f32 %v2664_v3, %v2543_v52  ;;  %v2104_v46 = vadd.f32 %v2103_v15, %v2102_v37  ;;  %v7854_v50 = vld [vmem:[#allocation26 + $0x640] ss:$8 sps:$4 sm:$0xff]   ;;  %v7881_v15 = vld [vmem:[#allocation26 + $0xe70] ss:$8 sps:$4 sm:$0xff]  }
 0x6b4   :  { %6422 = vmatprep.subr.bf16.mxu0 %v7817_v28  ;;  %v7838_v28 = vld [vmem:[#allocation26 + $0x614] ss:$8 sps:$4 sm:$0xff]   ;;  %v2746_v21 = vadd.f32 %v2676_v38, %v2546_v55  ;;  %v1996_v16 = vmul.f32 %v9752_v20, %v9752_v20  ;;  %v2083_v17 = vadd.f32 %v2082_v41, %v2081_v45  ;;  %v7863_v3 = vld [vmem:[#allocation26 + $0xe40] ss:$8 sps:$4 sm:$0xff]  }
 0x6b5   :  { %6097 = vmatpush1.bf16.msra.mxu1 %v7812_v56  ;;  %v7841_v56 = vld [vmem:[#allocation26 + $0xe04] ss:$8 sps:$4 sm:$0xff]   ;;  %v9749_v31 = vsub.f32 %v9710_v27, %v1929_v19  ;;  %v2775_v30 = vpack.c.bf16 %v2743_v59, %v2743_v59  ;;  %v7847_v27 = vld [vmem:[#allocation26 + $0xe14] ss:$8 sps:$4 sm:$0xff]   ;;  %v2105_v13 = vrot.slane %v2104_v46, 2 }
 0x6b6   :  { %6098 = vmatprep.subr.bf16.mxu1 %v7820_v40  ;;  %v7839_v40 = vld [vmem:[#allocation26 + $0xe00] ss:$8 sps:$4 sm:$0xff]   ;;  %v2778_v48 = vpack.c.bf16 %v2746_v21, %v2746_v21  ;;  %v2084_v2 = vrot.slane %v2083_v17, 2  ;;  %v7868_v19 = vld [vmem:[#allocation26 + $0x664] ss:$8 sps:$4 sm:$0xff]  }
 0x6b7   :  { %6423 = vmatpush1.bf16.msra.mxu0 %v7815_v53  ;;  %v7836_v53 = vld [vmem:[#allocation26 + $0x610] ss:$8 sps:$4 sm:$0xff]   ;;  %v1993_v62 = vmul.f32 %v9749_v31, %v9749_v31  ;;  %v2106_v52 = vadd.f32 %v2105_v13, %v2104_v46  ;;  %v7871_v38 = vld [vmem:[#allocation26 + $0xe54] ss:$8 sps:$4 sm:$0xff]   ;;  %v7875_v37 = vld [vmem:[#allocation26 + $0xe60] ss:$8 sps:$4 sm:$0xff]  }
 0x6b8   :  { %6424 = vmatprep.subr.bf16.mxu0 %v7823_v49  ;;  %v7844_v49 = vld [vmem:[#allocation26 + $0x624] ss:$8 sps:$4 sm:$0xff]   ;;  %v2085_v14 = vadd.f32 %v2084_v2, %v2083_v17  ;;  %v7890_v13 = vld [vmem:[#allocation26 + $0x6a0] ss:$8 sps:$4 sm:$0xff]  }
 0x6b9   :  { %6099 = vmatpush1.bf16.msra.mxu1 %v7818_v39  ;;  %v7850_v39 = vld [vmem:[#allocation26 + $0x634] ss:$8 sps:$4 sm:$0xff]  }
 0x6ba   :  { %6100 = vmatprep.subr.bf16.mxu1 %v7826_v1  ;;  %v2214_v1 = vsel %vm1300_vm6, %v1996_v16, 0.0 }
 0x6bb   :  { %6425 = vmatpush1.bf16.msra.mxu0 %v7821_v47  ;;  %v2193_v47 = vsel %vm1300_vm6, %v1993_v62, 0.0  ;;  %v2215_v18 = vrot.slane %v2214_v1, 4  ;;  %v7883_v62 = vld [vmem:[#allocation26 + $0xe74] ss:$8 sps:$4 sm:$0xff]  }
 0x6bc   :  { %6426 = vmatprep.subr.bf16.mxu0 %v7829_v6  ;;  %v7856_v6 = vld [vmem:[#allocation26 + $0x644] ss:$8 sps:$4 sm:$0xff]   ;;  %v2194_v63 = vrot.slane %v2193_v47, 4 }
 0x6bd   :  { %6101 = vmatpush1.bf16.msra.mxu1 %v7824_v22  ;;  %v7862_v22 = vld [vmem:[#allocation26 + $0x654] ss:$8 sps:$4 sm:$0xff]  }
 0x6be   :  { %6111 = vmatprep.subr.bf16.mxu1 %v7832_v60  ;;  %v2216_v60 = vadd.f32 %v2215_v18, %v2214_v1  ;;  %v1887_v1 = vsel %vm1300_vm6, %v9172_v33, 0.0  ;;  %v7895_v18 = vld [vmem:[#allocation26 + $0xe94] ss:$8 sps:$4 sm:$0xff]  }
 0x6bf   :  { %6427 = vmatpush1.bf16.msra.mxu0 %v7827_v61  ;;  %v2195_v61 = vadd.f32 %v2194_v63, %v2193_v47  ;;  %v7892_v63 = vld [vmem:[#allocation26 + $0x6a4] ss:$8 sps:$4 sm:$0xff]   ;;  %v1888_v2 = vrot.slane %v1887_v1, 4 }
 0x6c0   :  { %6428 = vmatprep.subr.bf16.mxu0 %v7835_v57  ;;  %6103 = vmatmul.mubr.bf16.vlgmr.msra.gmra.mrb[12].mxu1 %v2759_v42  ;;  %v7860_v57 = vld [vmem:[#allocation26 + $0x650] ss:$8 sps:$4 sm:$0xff]   ;;  %v2217_v10 = vrot.slane %v2216_v60, 2  ;;  %v2086_v42 = vrot.slane %v2085_v14, 1 }
 0x6c1   :  { %6112 = vmatpush1.bf16.msra.mxu1 %v7830_v44  ;;  %6143 = vmatprep.mubr.bf16.mxu1 %v2762_v8  ;;  %v2196_v55 = vrot.slane %v2195_v61, 2  ;;  %v7866_v44 = vld [vmem:[#allocation26 + $0x660] ss:$8 sps:$4 sm:$0xff]  }
 0x6c2   :  { %6113 = vmatprep.subr.bf16.mxu1 %v7838_v28  ;;  %v7869_v28 = vld [vmem:[#allocation26 + $0xe50] ss:$8 sps:$4 sm:$0xff]   ;;  %v2218_v21 = vadd.f32 %v2217_v10, %v2216_v60  ;;  %v7901_v60 = vld [vmem:[#allocation26 + $0xea4] ss:$8 sps:$4 sm:$0xff]  }
 0x6c3   :  { %6429 = vmatpush1.bf16.msra.mxu0 %v7833_v0  ;;  %v2107_v0 = vrot.slane %v2106_v52, 1  ;;  %v2197_v34 = vadd.f32 %v2196_v55, %v2195_v61  ;;  %v9893_v8 = vld [vmem:[#allocation48_spill] sm:$0xff]  ;;  %v7898_v61 = vld [vmem:[#allocation26 + $0x6b4] ss:$8 sps:$4 sm:$0xff]  }
 0x6c4   :  { %6439 = vmatprep.subr.bf16.mxu0 %v7841_v56  ;;  %v9764_v59 = vadd.f32 %v9632_v35, %v9893_v8  ;;  %v7877_v56 = vld [vmem:[#allocation26 + $0xe64] ss:$8 sps:$4 sm:$0xff]   ;;  %v7878_v35 = vld [vmem:[#allocation26 + $0x680] ss:$8 sps:$4 sm:$0xff]  }
 0x6c5   :  { %6114 = vmatpush1.bf16.msra.mxu1 %v7836_v53  ;;  %v7872_v53 = vld [vmem:[#allocation26 + $0x670] ss:$8 sps:$4 sm:$0xff]   ;;  %v2108_v45 = vadd.f32 %v2107_v0, %v2106_v52  ;;  %v7910_v0 = vld [vmem:[#allocation26 + $0x6d4] ss:$8 sps:$4 sm:$0xff]  }
 0x6c6   :  { %6431 = vmatmul.mubr.bf16.vlgmr.msra.gmra.mrb[12].mxu0 %v2775_v30  ;;  %6115 = vmatprep.subr.bf16.mxu1 %v7844_v49  ;;  %v7880_v30 = vld [vmem:[#allocation26 + $0x684] ss:$8 sps:$4 sm:$0xff]   ;;  %v2198_v49 = vrot.slane %v2197_v34, 1  ;;  %v7896_v52 = vld [vmem:[#allocation26 + $0x6b0] ss:$8 sps:$4 sm:$0xff]  }
 0x6c7   :  { %6440 = vmatpush1.bf16.msra.mxu0 %v7839_v40  ;;  %6471 = vmatprep.mubr.bf16.mxu0 %v2778_v48  ;;  %v2087_v40 = vadd.f32 %v2086_v42, %v2085_v14  ;;  %v2219_v48 = vrot.slane %v2218_v21, 1  ;;  %v1889_v14 = vadd.f32 %v1888_v2, %v1887_v1  ;;  %v7905_v42 = vld [vmem:[#allocation26 + $0xeb0] ss:$8 sps:$4 sm:$0xff]   ;;  %v7925_v1 = vld [vmem:[#allocation26 + $0xee4] ss:$8 sps:$4 sm:$0xff]  }
 0x6c8   :  { %6441 = vmatprep.subr.bf16.mxu0 %v7847_v27  ;;  %v1775_v27 = vsel %vm1300_vm6, %v9764_v59, 0.0  ;;  %v7928_v2 = vld [vmem:[#allocation26 + $0x704] ss:$8 sps:$4 sm:$0xff]  }
 0x6c9   :  { %6116 = vmatpush1.bf16.msra.mxu1 %v7842_v43  ;;  %v2233_v16 = vmul.f32 0.25, %v2087_v40  ;;  %v2236_v43 = vmul.f32 0.25, %v2108_v45  ;;  %v1776_v41 = vrot.slane %v1775_v27, 4  ;;  %v2220_v47 = vadd.f32 %v2219_v48, %v2218_v21  ;;  %v7908_v21 = vld [vmem:[#allocation26 + $0x6d0] ss:$8 sps:$4 sm:$0xff]  }
 0x6ca   :  { %6117 = vmatprep.subr.bf16.mxu1 %v7850_v39  ;;  %v2199_v39 = vadd.f32 %v2198_v49, %v2197_v34  ;;  %v1890_v10 = vrot.slane %v1889_v14, 2  ;;  %v7913_v34 = vld [vmem:[#allocation26 + $0xec4] ss:$8 sps:$4 sm:$0xff]  }
 0x6cb   :  { %6442 = vmatpush1.bf16.msra.mxu0 %v7845_v23  ;;  %v7886_v23 = vld [vmem:[#allocation26 + $0x694] ss:$8 sps:$4 sm:$0xff]   ;;  %v2265_v17 = vadd.f32 1e-05, %v2233_v16  ;;  %v2268_v46 = vadd.f32 1e-05, %v2236_v43 }
 0x6cc   :  { %6443 = vmatprep.subr.bf16.mxu0 %v7853_v51  ;;  %v7889_v51 = vld [vmem:[#allocation26 + $0xe84] ss:$8 sps:$4 sm:$0xff]   ;;  %v1891_v8 = vadd.f32 %v1890_v10, %v1889_v14  ;;  %v7926_v14 = vld [vmem:[#allocation26 + $0x700] ss:$8 sps:$4 sm:$0xff]  }
 0x6cd   :  { %6118 = vmatpush1.bf16.msra.mxu1 %v7848_v54  ;;  %v7884_v54 = vld [vmem:[#allocation26 + $0x690] ss:$8 sps:$4 sm:$0xff]   ;;  %8121 = vrsqrt.f32 %v2265_v17  ;;  %v7916_v40 = vld [vmem:[#allocation26 + $0x6e4] ss:$8 sps:$4 sm:$0xff]  }
 0x6ce   :  { %6119 = vmatprep.subr.bf16.mxu1 %v7856_v6  ;;  %v7887_v6 = vld [vmem:[#allocation26 + $0xe80] ss:$8 sps:$4 sm:$0xff]   ;;  %8123 = vrsqrt.f32 %v2268_v46  ;;  %v2472_v46 = vrot.slane %v9730_v4, %v8950_v25  ;;  %v7937_v10 = vld [vmem:[#allocation26 + $0xf04] ss:$8 sps:$4 sm:$0xff]  }
 0x6cf   :  { %6444 = vmatpush1.bf16.msra.mxu0 %v7851_v5  ;;  %v1777_v5 = vadd.f32 %v1776_v41, %v1775_v27  ;;  %v7919_v27 = vld [vmem:[#allocation26 + $0xed4] ss:$8 sps:$4 sm:$0xff]   ;;  %v7914_v41 = vld [vmem:[#allocation26 + $0x6e0] ss:$8 sps:$4 sm:$0xff]  }
 0x6d0   :  { %6445 = vmatprep.subr.bf16.mxu0 %v7859_v58  ;;  %v2249_v58 = vmul.f32 0.25, %v2199_v39  ;;  %v9778_v39 = vld [vmem:[#allocation25 + $0x8] sm:$0xff] }
 0x6d1   :  { %6120 = vmatpush1.bf16.msra.mxu1 %v7854_v50  ;;  %v2252_v50 = vmul.f32 0.25, %v2220_v47 }
 0x6d2   :  { %6121 = vmatprep.subr.bf16.mxu1 %v7862_v22  ;;  %v7893_v22 = vld [vmem:[#allocation26 + $0xe90] ss:$8 sps:$4 sm:$0xff]  }
 0x6d3   :  { %6446 = vmatpush1.bf16.msra.mxu0 %v7857_v24  ;;  %v1778_v24 = vrot.slane %v1777_v5, 2 }
 0x6d4   :  { %6447 = vmatprep.subr.bf16.mxu0 %v7865_v9  ;;  %v2281_v9 = vadd.f32 1e-05, %v2249_v58  ;;  %v7920_v58 = vld [vmem:[#allocation26 + $0x6f0] ss:$8 sps:$4 sm:$0xff]  }
 0x6d5   :  { %6122 = vmatpush1.bf16.msra.mxu1 %v7860_v57  ;;  %v2284_v57 = vadd.f32 1e-05, %v2252_v50  ;;  %v1779_v55 = vadd.f32 %v1778_v24, %v1777_v5 }
 0x6d6   :  { %6123 = vmatprep.subr.bf16.mxu1 %v7868_v19  ;;  %v7904_v19 = vld [vmem:[#allocation26 + $0x6c4] ss:$8 sps:$4 sm:$0xff]   ;;  %8125 = vrsqrt.f32 %v2281_v9 }
 0x6d7   :  { %6448 = vmatpush1.bf16.msra.mxu0 %v7863_v3  ;;  %v7899_v3 = vld [vmem:[#allocation26 + $0xea0] ss:$8 sps:$4 sm:$0xff]   ;;  %8127 = vrsqrt.f32 %v2284_v57 }
 0x6d8   :  { %6449 = vmatprep.subr.bf16.mxu0 %v7871_v38  ;;  %v7907_v38 = vld [vmem:[#allocation26 + $0xeb4] ss:$8 sps:$4 sm:$0xff]  }
 0x6d9   :  { %6124 = vmatpush1.bf16.msra.mxu1 %v7866_v44  ;;  %v7902_v44 = vld [vmem:[#allocation26 + $0x6c0] ss:$8 sps:$4 sm:$0xff]  }
 0x6da   :  { %6125 = vmatprep.subr.bf16.mxu1 %v7874_v29  ;;  %v8122_v29 = vpop.eup %8121 }
 0x6db   :  { %6450 = vmatpush1.bf16.msra.mxu0 %v7869_v28  ;;  %v1780_v28 = vrot.slane %v1779_v55, 1  ;;  %v2329_v45 = vmul.f32 %v8122_v29, %v9735_v12  ;;  %v7917_v12 = vld [vmem:[#allocation26 + $0xed0] ss:$8 sps:$4 sm:$0xff]   ;;  %v7940_v29 = vld [vmem:[#allocation26 + $0x724] ss:$8 sps:$4 sm:$0xff]  }
 0x6dc   :  { %6451 = vmatprep.subr.bf16.mxu0 %v7877_v56  ;;  %v8124_v56 = vpop.eup %8123 }
 0x6dd   :  { %6126 = vmatpush1.bf16.msra.mxu1 %v7872_v53  ;;  %v7911_v53 = vld [vmem:[#allocation26 + $0xec0] ss:$8 sps:$4 sm:$0xff]   ;;  %v1781_v49 = vadd.f32 %v1780_v28, %v1779_v55 }
 0x6de   :  { %6127 = vmatprep.subr.bf16.mxu1 %v7880_v30 }
 0x6df   :  { %6452 = vmatpush1.bf16.msra.mxu0 %v7875_v37  ;;  %v9771_v37 = vld [vmem:[#allocation23 + $0x8] sm:$0xff]  ;;  %v1915_v47 = vmul.f32 0.25, %v1781_v49  ;;  %v7944_v49 = vld [vmem:[#allocation26 + $0x730] ss:$8 sps:$4 sm:$0xff]  }
 0x6e0   :  { %6453 = vmatprep.subr.bf16.mxu0 %v7883_v62  ;;  %v2408_v30 = vrot.slane %v9771_v37, %v8950_v25  ;;  %v2332_v62 = vmul.f32 %v8124_v56, %v9738_v36  ;;  %v2420_v48 = vrot.slane %v9771_v37, %v8956_v32  ;;  %v8126_v16 = vpop.eup %8125  ;;  %v2620_v36 = vrot.slane %v9778_v39, %v8956_v32 }
 0x6e1   :  { %6128 = vmatpush1.bf16.msra.mxu1 %v7878_v35  ;;  %v1892_v35 = vrot.slane %v1891_v8, 1  ;;  %v8128_v43 = vpop.eup %8127  ;;  %v2345_v17 = vmul.f32 %v8126_v16, %v9749_v31  ;;  %v7931_v31 = vld [vmem:[#allocation26 + $0xef4] ss:$8 sps:$4 sm:$0xff]  }
 0x6e2   :  { %6129 = vmatprep.subr.bf16.mxu1 %v7886_v23  ;;  %v2529_v23 = vmul.f32 %v2408_v30, %v2329_v45  ;;  %v7949_v45 = vld [vmem:[#allocation26 + $0xf24] ss:$8 sps:$4 sm:$0xff]   ;;  %v7955_v16 = vld [vmem:[#allocation26 + $0xf34] ss:$8 sps:$4 sm:$0xff]  }
 0x6e3   :  { %6454 = vmatpush1.bf16.msra.mxu0 %v7881_v15  ;;  %v7922_v15 = vld [vmem:[#allocation26 + $0x6f4] ss:$8 sps:$4 sm:$0xff]   ;;  %v1893_v5 = vadd.f32 %v1892_v35, %v1891_v8 }
 0x6e4   :  { %6455 = vmatprep.subr.bf16.mxu0 %v7889_v51  ;;  %v2608_v51 = vrot.slane %v9778_v39, %v8950_v25 }
 0x6e5   :  { %6130 = vmatpush1.bf16.msra.mxu1 %v7884_v54  ;;  %v2532_v54 = vmul.f32 %v2420_v48, %v2332_v62  ;;  %v1931_v9 = vmul.f32 0.25, %v1893_v5  ;;  %v7947_v62 = vld [vmem:[#allocation26 + $0xf20] ss:$8 sps:$4 sm:$0xff]   ;;  %v7952_v48 = vld [vmem:[#allocation26 + $0x744] ss:$8 sps:$4 sm:$0xff]  }
 0x6e6   :  { %6131 = vmatprep.subr.bf16.mxu1 %v7892_v63  ;;  %v2484_v63 = vrot.slane %v9730_v4, %v8956_v32  ;;  %v2729_v50 = vadd.f32 %v2608_v51, %v2529_v23  ;;  %v7961_v51 = vld [vmem:[#allocation26 + $0xf44] ss:$8 sps:$4 sm:$0xff]   ;;  %v7962_v5 = vld [vmem:[#allocation26 + $0x760] ss:$8 sps:$4 sm:$0xff]  }
 0x6e7   :  { %6456 = vmatpush1.bf16.msra.mxu0 %v7887_v6  ;;  %v2348_v6 = vmul.f32 %v8128_v43, %v9752_v20  ;;  %v2732_v24 = vadd.f32 %v2620_v36, %v2532_v54  ;;  %v7950_v43 = vld [vmem:[#allocation26 + $0x740] ss:$8 sps:$4 sm:$0xff]   ;;  %v7956_v36 = vld [vmem:[#allocation26 + $0x750] ss:$8 sps:$4 sm:$0xff]   ;;  %v7964_v54 = vld [vmem:[#allocation26 + $0x764] ss:$8 sps:$4 sm:$0xff]  }
 0x6e8   :  { %6457 = vmatprep.subr.bf16.mxu0 %v7895_v18  ;;  %v7923_v18 = vld [vmem:[#allocation26 + $0xee0] ss:$8 sps:$4 sm:$0xff]  }
 0x6e9   :  { %6132 = vmatpush1.bf16.msra.mxu1 %v7890_v13  ;;  %v9791_v13 = vsub.f32 %v9764_v59, %v1915_v47  ;;  %v7929_v59 = vld [vmem:[#allocation26 + $0xef0] ss:$8 sps:$4 sm:$0xff]   ;;  %v2764_v55 = vpack.c.bf16 %v2732_v24, %v2732_v24  ;;  %v7971_v24 = vld [vmem:[#allocation26 + $0xf60] ss:$8 sps:$4 sm:$0xff]  }
 0x6ea   :  { %6133 = vmatprep.subr.bf16.mxu1 %v7898_v61  ;;  %v9793_v61 = vld [vmem:[#allocation25 + $0x18] sm:$0xff] }
 0x6eb   :  { %6458 = vmatpush1.bf16.msra.mxu0 %v7893_v22  ;;  %v2545_v22 = vmul.f32 %v2472_v46, %v2345_v17  ;;  %v2672_v20 = vrot.slane %v9793_v61, %v8950_v25  ;;  %v2684_v57 = vrot.slane %v9793_v61, %v8956_v32  ;;  %v9802_v25 = vsub.f32 %v9172_v33, %v1931_v9  ;;  %v7932_v32 = vld [vmem:[#allocation26 + $0x710] ss:$8 sps:$4 sm:$0xff]   ;;  %v7938_v33 = vld [vmem:[#allocation26 + $0x720] ss:$8 sps:$4 sm:$0xff]   ;;  %v7967_v46 = vld [vmem:[#allocation26 + $0xf54] ss:$8 sps:$4 sm:$0xff]  }
 0x6ec   :  { %6459 = vmatprep.subr.bf16.mxu0 %v7901_v60  ;;  %v2548_v60 = vmul.f32 %v2484_v63, %v2348_v6  ;;  %v7965_v63 = vld [vmem:[#allocation26 + $0xf50] ss:$8 sps:$4 sm:$0xff]   ;;  %v7979_v9 = vld [vmem:[#allocation26 + $0xf74] ss:$8 sps:$4 sm:$0xff]  }
 0x6ed   :  { %6134 = vmatpush1.bf16.msra.mxu1 %v7896_v52  ;;  %v2761_v52 = vpack.c.bf16 %v2729_v50, %v2729_v50  ;;  %v1995_v8 = vmul.f32 %v9802_v25, %v9802_v25  ;;  %v7973_v50 = vld [vmem:[#allocation26 + $0xf64] ss:$8 sps:$4 sm:$0xff]  }
 0x6ee   :  { %6135 = vmatprep.subr.bf16.mxu1 %v7904_v19  ;;  %v1979_v19 = vmul.f32 %v9791_v13, %v9791_v13 }
 0x6ef   :  { %6460 = vmatpush1.bf16.msra.mxu0 %v7899_v3  ;;  %v7934_v3 = vld [vmem:[#allocation26 + $0x714] ss:$8 sps:$4 sm:$0xff]   ;;  %v2207_v30 = vsel %vm1300_vm6, %v1995_v8, 0.0  ;;  %v7992_v8 = vld [vmem:[#allocation26 + $0x7b0] ss:$8 sps:$4 sm:$0xff]  }
 0x6f0   :  { %6461 = vmatprep.subr.bf16.mxu0 %v7907_v38  ;;  %v2745_v38 = vadd.f32 %v2672_v20, %v2545_v22  ;;  %v2208_v35 = vrot.slane %v2207_v30, 4  ;;  %v7976_v22 = vld [vmem:[#allocation26 + $0x784] ss:$8 sps:$4 sm:$0xff]  }
 0x6f1   :  { %6136 = vmatpush1.bf16.msra.mxu1 %v7902_v44  ;;  %v2748_v44 = vadd.f32 %v2684_v57, %v2548_v60  ;;  %v7974_v60 = vld [vmem:[#allocation26 + $0x780] ss:$8 sps:$4 sm:$0xff]  }
 0x6f2   :  { %6137 = vmatprep.subr.bf16.mxu1 %v7910_v0  ;;  %v2095_v0 = vsel %vm1300_vm6, %v1979_v19, 0.0  ;;  %v2777_v28 = vpack.c.bf16 %v2745_v38, %v2745_v38  ;;  %v2209_v23 = vadd.f32 %v2208_v35, %v2207_v30  ;;  %v7980_v19 = vld [vmem:[#allocation26 + $0x790] ss:$8 sps:$4 sm:$0xff]   ;;  %v7983_v38 = vld [vmem:[#allocation26 + $0xf80] ss:$8 sps:$4 sm:$0xff]  }
 0x6f3   :  { %6462 = vmatpush1.bf16.msra.mxu0 %v7905_v42  ;;  %v7935_v42 = vld [vmem:[#allocation26 + $0xf00] ss:$8 sps:$4 sm:$0xff]   ;;  %v2780_v56 = vpack.c.bf16 %v2748_v44, %v2748_v44 }
 0x6f4   :  { %6463 = vmatprep.subr.bf16.mxu0 %v7913_v34  ;;  %v7943_v34 = vld [vmem:[#allocation26 + $0xf14] ss:$8 sps:$4 sm:$0xff]   ;;  %v2210_v17 = vrot.slane %v2209_v23, 2 }
 0x6f5   :  { %6138 = vmatpush1.bf16.msra.mxu1 %v7908_v21  ;;  %v2096_v21 = vrot.slane %v2095_v0, 4 }
 0x6f6   :  { %6139 = vmatprep.subr.bf16.mxu1 %v7916_v40  ;;  %v7946_v40 = vld [vmem:[#allocation26 + $0x734] ss:$8 sps:$4 sm:$0xff]  }
 0x6f7   :  { %6464 = vmatpush1.bf16.msra.mxu0 %v7911_v53  ;;  %v7941_v53 = vld [vmem:[#allocation26 + $0xf10] ss:$8 sps:$4 sm:$0xff]  }
 0x6f8   :  { %6465 = vmatprep.subr.bf16.mxu0 %v7919_v27  ;;  %v2097_v27 = vadd.f32 %v2096_v21, %v2095_v0  ;;  %v7989_v0 = vld [vmem:[#allocation26 + $0xf90] ss:$8 sps:$4 sm:$0xff]   ;;  %v8003_v21 = vld [vmem:[#allocation26 + $0xfb4] ss:$8 sps:$4 sm:$0xff]  }
 0x6f9   :  { %6140 = vmatpush1.bf16.msra.mxu1 %v7914_v41 }
 0x6fa   :  { %6141 = vmatprep.subr.bf16.mxu1 %v7922_v15  ;;  %v2098_v41 = vrot.slane %v2097_v27, 2  ;;  %v7958_v15 = vld [vmem:[#allocation26 + $0x754] ss:$8 sps:$4 sm:$0xff]  }
 0x6fb   :  { %6466 = vmatpush1.bf16.msra.mxu0 %v7917_v12  ;;  %v7953_v12 = vld [vmem:[#allocation26 + $0xf30] ss:$8 sps:$4 sm:$0xff]  }
 0x6fc   :  { %6467 = vmatprep.subr.bf16.mxu0 %v7925_v1  ;;  %v2099_v47 = vadd.f32 %v2098_v41, %v2097_v27  ;;  %v7959_v1 = vld [vmem:[#allocation26 + $0xf40] ss:$8 sps:$4 sm:$0xff]   ;;  %v8004_v27 = vld [vmem:[#allocation26 + $0x7d0] ss:$8 sps:$4 sm:$0xff]  }
 0x6fd   :  { %6142 = vmatpush1.bf16.msra.mxu1 %v7920_v58  ;;  %v7970_v58 = vld [vmem:[#allocation26 + $0x774] ss:$8 sps:$4 sm:$0xff]  }
 0x6fe   :  { %6152 = vmatprep.subr.bf16.mxu1 %v7928_v2  ;;  %v2100_v6 = vrot.slane %v2099_v47, 1  ;;  %v7968_v2 = vld [vmem:[#allocation26 + $0x770] ss:$8 sps:$4 sm:$0xff]  }
 0x6ff   :  { %6468 = vmatpush1.bf16.msra.mxu0 %v7923_v18  ;;  %v2211_v18 = vadd.f32 %v2210_v17, %v2209_v23  ;;  %v8018_v23 = vld [vmem:[#allocation26 + $0x7f4] ss:$8 sps:$4 sm:$0xff]  }
 0x700   :  { %6469 = vmatprep.subr.bf16.mxu0 %v7931_v31  ;;  %6144 = vmatmul.mubr.bf16.vlgmr.msra.gmra.mrb[12].mxu1 %v2761_v52  ;;  %v2101_v31 = vadd.f32 %v2100_v6, %v2099_v47  ;;  %v7982_v52 = vld [vmem:[#allocation26 + $0x794] ss:$8 sps:$4 sm:$0xff]   ;;  %v8021_v47 = vld [vmem:[#allocation26 + $0xfe4] ss:$8 sps:$4 sm:$0xff]   ;;  %v2680_v6 = vrot.slane %v9793_v61, %v8952_v26 }
 0x701   :  { %6153 = vmatpush1.bf16.msra.mxu1 %v7926_v14  ;;  %6184 = vmatprep.mubr.bf16.mxu1 %v2764_v55  ;;  %v2212_v20 = vrot.slane %v2211_v18, 1  ;;  %v7977_v14 = vld [vmem:[#allocation26 + $0xf70] ss:$8 sps:$4 sm:$0xff]  }
 0x702   :  { %6154 = vmatprep.subr.bf16.mxu1 %v7934_v3  ;;  %v2235_v57 = vmul.f32 0.25, %v2101_v31  ;;  %v7985_v3 = vld [vmem:[#allocation26 + $0xf84] ss:$8 sps:$4 sm:$0xff]  }
 0x703   :  { %6470 = vmatpush1.bf16.msra.mxu0 %v7929_v59  ;;  %v2213_v59 = vadd.f32 %v2212_v20, %v2211_v18 }
 0x704   :  { %6480 = vmatprep.subr.bf16.mxu0 %v7937_v10  ;;  %v2267_v55 = vadd.f32 1e-05, %v2235_v57  ;;  %v7988_v10 = vld [vmem:[#allocation26 + $0x7a4] ss:$8 sps:$4 sm:$0xff]  }
 0x705   :  { %6155 = vmatpush1.bf16.msra.mxu1 %v7932_v32  ;;  %v2251_v44 = vmul.f32 0.25, %v2213_v59  ;;  %v7991_v32 = vld [vmem:[#allocation26 + $0xf94] ss:$8 sps:$4 sm:$0xff]  }
 0x706   :  { %6472 = vmatmul.mubr.bf16.vlgmr.msra.gmra.mrb[12].mxu0 %v2777_v28  ;;  %6156 = vmatprep.subr.bf16.mxu1 %v7940_v29  ;;  %8129 = vrsqrt.f32 %v2267_v55  ;;  %v7994_v28 = vld [vmem:[#allocation26 + $0x7b4] ss:$8 sps:$4 sm:$0xff]  }
 0x707   :  { %6481 = vmatpush1.bf16.msra.mxu0 %v7935_v42  ;;  %6512 = vmatprep.mubr.bf16.mxu0 %v2780_v56  ;;  %v7986_v42 = vld [vmem:[#allocation26 + $0x7a0] ss:$8 sps:$4 sm:$0xff]   ;;  %v2283_v29 = vadd.f32 1e-05, %v2251_v44 }
 0x708   :  { %6482 = vmatprep.subr.bf16.mxu0 %v7943_v34  ;;  %v7997_v34 = vld [vmem:[#allocation26 + $0xfa4] ss:$8 sps:$4 sm:$0xff]   ;;  %v7995_v56 = vld [vmem:[#allocation26 + $0xfa0] ss:$8 sps:$4 sm:$0xff]  }
 0x709   :  { %6157 = vmatpush1.bf16.msra.mxu1 %v7938_v33  ;;  %v8000_v33 = vld [vmem:[#allocation26 + $0x7c4] ss:$8 sps:$4 sm:$0xff]   ;;  %8131 = vrsqrt.f32 %v2283_v29 }
 0x70a   :  { %6158 = vmatprep.subr.bf16.mxu1 %v7946_v40  ;;  %v8001_v40 = vld [vmem:[#allocation26 + $0xfb0] ss:$8 sps:$4 sm:$0xff]  }
 0x70b   :  { %6483 = vmatpush1.bf16.msra.mxu0 %v7941_v53  ;;  %v7998_v53 = vld [vmem:[#allocation26 + $0x7c0] ss:$8 sps:$4 sm:$0xff]  }
 0x70c   :  { %6484 = vmatprep.subr.bf16.mxu0 %v7949_v45  ;;  %v8006_v45 = vld [vmem:[#allocation26 + $0x7d4] ss:$8 sps:$4 sm:$0xff]  }
 0x70d   :  { %6159 = vmatpush1.bf16.msra.mxu1 %v7944_v49  ;;  %v8009_v49 = vld [vmem:[#allocation26 + $0xfc4] ss:$8 sps:$4 sm:$0xff]  }
 0x70e   :  { %6160 = vmatprep.subr.bf16.mxu1 %v7952_v48  ;;  %v8012_v48 = vld [vmem:[#allocation26 + $0x7e4] ss:$8 sps:$4 sm:$0xff]  }
 0x70f   :  { %6485 = vmatpush1.bf16.msra.mxu0 %v7947_v62  ;;  %v8007_v62 = vld [vmem:[#allocation26 + $0xfc0] ss:$8 sps:$4 sm:$0xff]  }
 0x710   :  { %6486 = vmatprep.subr.bf16.mxu0 %v7955_v16  ;;  %v8130_v30 = vpop.eup %8129  ;;  %v2416_v16 = vrot.slane %v9771_v37, %v8952_v26  ;;  %v2480_v37 = vrot.slane %v9730_v4, %v8952_v26 }
 0x711   :  { %6161 = vmatpush1.bf16.msra.mxu1 %v7950_v43  ;;  %v2331_v35 = vmul.f32 %v8130_v30, %v9791_v13  ;;  %v8015_v43 = vld [vmem:[#allocation26 + $0xfd4] ss:$8 sps:$4 sm:$0xff]  }
 0x712   :  { %6162 = vmatprep.subr.bf16.mxu1 %v7958_v15  ;;  %v8013_v15 = vld [vmem:[#allocation26 + $0xfd0] ss:$8 sps:$4 sm:$0xff]  }
 0x713   :  { %6487 = vmatpush1.bf16.msra.mxu0 %v7953_v12  ;;  %v8132_v41 = vpop.eup %8131  ;;  %v8010_v12 = vld [vmem:[#allocation26 + $0x7e0] ss:$8 sps:$4 sm:$0xff]  }
 0x714   :  { %6488 = vmatprep.subr.bf16.mxu0 %v7961_v51  ;;  %v2531_v51 = vmul.f32 %v2416_v16, %v2331_v35  ;;  %v2347_v13 = vmul.f32 %v8132_v41, %v9802_v25 }
 0x715   :  { %6163 = vmatpush1.bf16.msra.mxu1 %v7956_v36  ;;  %v2616_v36 = vrot.slane %v9778_v39, %v8952_v26 }
 0x716   :  { %6164 = vmatprep.subr.bf16.mxu1 %v7964_v54  ;;  %v8019_v54 = vld [vmem:[#allocation26 + $0xfe0] ss:$8 sps:$4 sm:$0xff]  }
 0x717   :  { %6489 = vmatpush1.bf16.msra.mxu0 %v7959_v1  ;;  %v8016_v1 = vld [vmem:[#allocation26 + $0x7f0] ss:$8 sps:$4 sm:$0xff]   ;;  %v2731_v17 = vadd.f32 %v2616_v36, %v2531_v51 }
 0x718   :  { %6490 = vmatprep.subr.bf16.mxu0 %v7967_v46  ;;  %v8024_v46 = vld [vmem:[#allocation26 + $0xff4] ss:$8 sps:$4 sm:$0xff]  }
 0x719   :  { %6165 = vmatpush1.bf16.msra.mxu1 %v7962_v5  ;;  %v2547_v5 = vmul.f32 %v2480_v37, %v2347_v13  ;;  %v2763_v39 = vpack.c.bf16 %v2731_v17, %v2731_v17 }
 0x71a   :  { %6166 = vmatprep.subr.bf16.mxu1 %v7970_v58  ;;  %v3293_v58 = vld [vmem:[#allocation28] sm:$0x3] }
 0x71b   :  { %6491 = vmatpush1.bf16.msra.mxu0 %v7965_v63  ;;  %v8022_v63 = vld [vmem:[#allocation26 + $0xff0] ss:$8 sps:$4 sm:$0xff]   ;;  %v2747_v25 = vadd.f32 %v2680_v6, %v2547_v5  ;;  %v3298_v18 = vrot.slane %v3293_v58, %v8934_v7 }
 0x71c   :  { %6492 = vmatprep.subr.bf16.mxu0 %v7973_v50 }
 0x71d   :  { %6167 = vmatpush1.bf16.msra.mxu1 %v7968_v2  ;;  %v2779_v4 = vpack.c.bf16 %v2747_v25, %v2747_v25  ;;  %v3302_v2 = vrot.slane %v3293_v58, %v8938_v11 }
 0x71e   :  { %6168 = vmatprep.subr.bf16.mxu1 %v7976_v22 }
 0x71f   :  { %6493 = vmatpush1.bf16.msra.mxu0 %v7971_v24 }
 0x720   :  { %6494 = vmatprep.subr.bf16.mxu0 %v7979_v9 }
 0x721   :  { %6169 = vmatpush1.bf16.msra.mxu1 %v7974_v60 }
 0x722   :  { %6170 = vmatprep.subr.bf16.mxu1 %v7982_v52 }
 0x723   :  { %6495 = vmatpush1.bf16.msra.mxu0 %v7977_v14 }
 0x724   :  { %6496 = vmatprep.subr.bf16.mxu0 %v7985_v3 }
 0x725   :  { %6171 = vmatpush1.bf16.msra.mxu1 %v7980_v19 }
 0x726   :  { %6172 = vmatprep.subr.bf16.mxu1 %v7988_v10 }
 0x727   :  { %6497 = vmatpush1.bf16.msra.mxu0 %v7983_v38 }
 0x728   :  { %6498 = vmatprep.subr.bf16.mxu0 %v7991_v32 }
 0x729   :  { %6173 = vmatpush1.bf16.msra.mxu1 %v7986_v42 }
 0x72a   :  { %6174 = vmatprep.subr.bf16.mxu1 %v7994_v28 }
 0x72b   :  { %6499 = vmatpush1.bf16.msra.mxu0 %v7989_v0 }
 0x72c   :  { %6500 = vmatprep.subr.bf16.mxu0 %v7997_v34 }
 0x72d   :  { %6175 = vmatpush1.bf16.msra.mxu1 %v7992_v8 }
 0x72e   :  { %6176 = vmatprep.subr.bf16.mxu1 %v8000_v33 }
 0x72f   :  { %6501 = vmatpush1.bf16.msra.mxu0 %v7995_v56 }
 0x730   :  { %6502 = vmatprep.subr.bf16.mxu0 %v8003_v21 }
 0x731   :  { %6177 = vmatpush1.bf16.msra.mxu1 %v7998_v53 }
 0x732   :  { %6178 = vmatprep.subr.bf16.mxu1 %v8006_v45 }
 0x733   :  { %6503 = vmatpush1.bf16.msra.mxu0 %v8001_v40 }
 0x734   :  { %6504 = vmatprep.subr.bf16.mxu0 %v8009_v49 }
 0x735   :  { %6179 = vmatpush1.bf16.msra.mxu1 %v8004_v27 }
 0x736   :  { %6180 = vmatprep.subr.bf16.mxu1 %v8012_v48 }
 0x737   :  { %6505 = vmatpush1.bf16.msra.mxu0 %v8007_v62 }
 0x738   :  { %6506 = vmatprep.subr.bf16.mxu0 %v8015_v43 }
 0x739   :  { %6181 = vmatpush1.bf16.msra.mxu1 %v8010_v12 }
 0x73a   :  { %6182 = vmatprep.subr.bf16.mxu1 %v8018_v23 }
 0x73b   :  { %6507 = vmatpush1.bf16.msra.mxu0 %v8013_v15 }
 0x73c   :  { %6508 = vmatprep.subr.bf16.mxu0 %v8021_v47 }
 0x73d   :  { %6183 = vmatpush1.bf16.msra.mxu1 %v8016_v1 }
 0x73f   :  { %6509 = vmatpush1.bf16.msra.mxu0 %v8019_v54 }
 0x740   :  { %6510 = vmatprep.subr.bf16.mxu0 %v8024_v46  ;;  %6185 = vmatmul.mubr.bf16.vlgmr.msra.gmra.mrb[12].mxu1 %v2763_v39 }
 0x743   :  { %6511 = vmatpush1.bf16.msra.mxu0 %v8022_v63 }
 0x746   :  { %6513 = vmatmul.mubr.bf16.vlgmr.msra.gmra.mrb[12].mxu0 %v2779_v4 }
 0x813   :  { %v6186_v50 = vpop.f32.mrb[12].mxu1 }
 0x814   :  { %v6188_v31 = vpop.f32.mrb[13].mxu1  ;;  %v7172_v26 = vadd.f32 %v6186_v50, %v3298_v18 }
 0x815   :  { %v6190_v24 = vpop.f32.mrb[14].mxu1  ;;  %v7174_v61 = vadd.f32 %v6188_v31, %v3302_v2 }
 0x816   :  { %v6191_v22 = vpop.f32.mrb[15].mxu1 }
 0x819   :  { %v6514_v20 = vpop.f32.mrb[12].mxu0 }
 0x81a   :  { %v7173_v9 = vadd.f32 %v7172_v26, %v6514_v20  ;;  %v6516_v60 = vpop.f32.mrb[13].mxu0 }
 0x81b   :  { %v7175_v57 = vadd.f32 %v7174_v61, %v6516_v60  ;;  %v6518_v14 = vpop.f32.mrb[14].mxu0 }
 0x81c   :  { %8133 = vtanh.f32 %v7173_v9  ;;  %v6519_v52 = vpop.f32.mrb[15].mxu0 }
 0x81d   :  { %8135 = vtanh.f32 %v7175_v57 }
 0x826   :  { %v8134_v59 = vpop.eup %8133 }
 0x827   :  { %v8136_v7 = vpop.eup %8135 }
 0x828   :  { %v6525_v3 = vcombine.low %v8134_v59, %v8136_v7 }
 0x82a   :  { %6527 = vst [vmem:[#allocation29] sm:$0xff] %v6525_v3 }
 0x82b   :  { %8530 = shalt.err (!%p8527_p0)
}
 0x82c   :  { %s8531_s28 = scalar_lea.hbm %s9849_s17, 128 }
 0x82d   :  { %p8532_p1 = scmp.ne.s32.totalorder %s9849_s17, %s8531_s28  ;;  %p8535_p2 = scmp.lt.u32.totalorder %s8531_s28, %s9849_s17 }
 0x82f   :  { %p8537_p3 = pnand %p8535_p2, %p8532_p1 }
 0x831   :  { %8540 = shalt.err (!%p8537_p3)
}
 0x832   :  { %6537 = dma.vmem_to_hbm [thread:$0]  %s6535_s27, 128, %s9849_s17, [#allocation4]  }
 0x833   :  { %8559 = dma.done.wait [#allocation4], 128  }
 0x834   :  { %8560 = vsyncadd [#allocation4], 4294967168 }
 0x835   :  { %6541 = vsyncpa [#allocation3], 1 }
 0x836   :  { %6542 = vsyncpa [#allocation6], 1 }
 0x837   :  { %6543 = vsyncpa [#allocation9], 1 }
 0x838   :  { %6544 = vsyncpa [#allocation12], 1 }
 0x839   :  { %6545 = vsyncpa [#allocation15], 1 }
 0x83a   :  { %6546 = vsyncpa [#allocation18], 1 }
 0x83b   :  { %6547 = vsyncpa [#allocation21], 1 }
 0x83c   :  { %6548 = vsyncpa [#allocation24], 1 }
 0x83d   :  { %6549 = vsyncpa [#allocation27], 1 }
 0x83e   :  { %6550 = vsyncpa [#allocation4], 1 }

</bundles_post_ra>
